<compile_context>
chip_gen: v7x
topology: tpu7x:2x2x1
jax: 0.10.0
libtpu: 0.0.40
codegen_flags: <defaults>
</compile_context>

<pallas_src>
import math

import jax
import jax.numpy as jnp
from jax.experimental import pallas as pl
from jax.experimental.pallas import tpu as pltpu


def _round_up(x, m):
    return ((x + m - 1) // m) * m


def _cdiv(a, b):
    return -(-a // b)


# ----------------------------------------------------------------------------
# Pallas kernels
# ----------------------------------------------------------------------------
def _conv_relu_kernel(p_ref, w_ref, b_ref, o_ref):
    # (tm, K) @ (K, OC) on the MXU, f32 accumulation, fused bias + ReLU.
    acc = jnp.dot(p_ref[...], w_ref[...], preferred_element_type=jnp.float32)
    acc = jnp.maximum(acc + b_ref[...], 0.0)          # F.relu(conv(x))
    o_ref[...] = acc.astype(o_ref.dtype)


def _conv_relu_bn_kernel(p_ref, w_ref, b_ref, s_ref, t_ref, o_ref):
    # Same as above plus eval-mode BatchNorm (per-channel scale/shift) after ReLU.
    acc = jnp.dot(p_ref[...], w_ref[...], preferred_element_type=jnp.float32)
    acc = jnp.maximum(acc + b_ref[...], 0.0)          # F.relu(conv(x))
    acc = acc * s_ref[...] + t_ref[...]               # bn(relu(conv(x))), eval mode
    o_ref[...] = acc.astype(o_ref.dtype)


def _tail_kernel(p_ref, w_ref, b_ref, o_ref):
    # conv6 (as a GEMM) + global-average-pool (1x1 spatial -> identity)
    # + log_softmax over the 10 native lanes, all in one kernel.
    logits = jnp.dot(p_ref[...], w_ref[...], preferred_element_type=jnp.float32)
    logits = logits + b_ref[...]
    m = jnp.max(logits, axis=-1, keepdims=True)
    s = logits - m
    lse = jnp.log(jnp.sum(jnp.exp(s), axis=-1, keepdims=True))
    o_ref[...] = (s - lse).astype(o_ref.dtype)


# ----------------------------------------------------------------------------
# Kernel wrappers
# ----------------------------------------------------------------------------
def _choose_m_tiling(m):
    """Rows-per-block and block count for the M (= N*OH*OW) grid axis.

    Small problems: one full-extent block (no divisibility constraint, no pad).
    Large problems: ~1024-row blocks, rounded to an EVEN block count so both
    v7x TensorCores get equal work (harmless on single-TC v5e/v6e).
    """
    if m <= 1024:
        return m, 1
    nblk = _cdiv(m, 1024)
    nblk += nblk % 2
    tm = _round_up(_cdiv(m, nblk), 8)
    return tm, _cdiv(m, tm)


def conv_gemm(patches, wmat, bias, scale=None, shift=None, out_dtype=jnp.bfloat16):
    """(M, K) @ (K, OC) with fused bias + ReLU (+ eval-BN) epilogue.

    K and OC stay native (full-extent blocks are exempt from the (8,128)
    rule); only the M axis is tiled and pipelined.
    """
    m, k = patches.shape
    oc = wmat.shape[1]
    tm, nblk = _choose_m_tiling(m)

    has_bn = scale is not None
    kernel = _conv_relu_bn_kernel if has_bn else _conv_relu_kernel

    row_spec = pl.BlockSpec((1, oc), lambda i: (0, 0))
    in_specs = [
        pl.BlockSpec((tm, k), lambda i: (i, 0)),      # patches tile (pipelined)
        pl.BlockSpec((k, oc), lambda i: (0, 0)),      # weights (resident)
        row_spec,                                     # conv bias
    ]
    operands = [patches, wmat, bias]
    if has_bn:
        in_specs += [row_spec, row_spec]              # BN scale, shift
        operands += [scale, shift]

    return pl.pallas_call(
        kernel,
        out_shape=jax.ShapeDtypeStruct((m, oc), out_dtype),
        grid=(nblk,),
        in_specs=in_specs,
        out_specs=pl.BlockSpec((tm, oc), lambda i: (i, 0)),
        compiler_params=pltpu.CompilerParams(
            dimension_semantics=("parallel",)),
        cost_estimate=pl.CostEstimate(                # native, unpadded dims
            flops=2 * m * k * oc,
            transcendentals=0,
            bytes_accessed=2 * (m * k + k * oc + m * oc) + 4 * 3 * oc),
    )(*operands)


def conv6_gap_logsoftmax(x5, w6mat, b6row):
    """x5: (N, 2, 2, 16) NHWC. conv6's 2x2 kernel covers the whole map, so its
    im2col is a plain flatten and the 1x1 AdaptiveAvgPool is the identity."""
    n = x5.shape[0]
    k, oc = w6mat.shape
    patches = x5.reshape(n, k)                        # (kh, kw, c) column order
    return pl.pallas_call(
        _tail_kernel,
        out_shape=jax.ShapeDtypeStruct((n, oc), jnp.float32),
        grid=(1,),
        in_specs=[
            pl.BlockSpec((n, k), lambda i: (0, 0)),
            pl.BlockSpec((k, oc), lambda i: (0, 0)),
            pl.BlockSpec((1, oc), lambda i: (0, 0)),
        ],
        out_specs=pl.BlockSpec((n, oc), lambda i: (0, 0)),
        cost_estimate=pl.CostEstimate(
            flops=2 * n * k * oc,
            transcendentals=2 * n * oc,
            bytes_accessed=2 * (n * k + k * oc) + 4 * (n * oc + oc)),
    )(patches, w6mat, b6row)


# ----------------------------------------------------------------------------
# Glue (thin XLA layout plumbing between kernels; no hot compute)
# ----------------------------------------------------------------------------
def _im2col_nhwc(x, kh, kw):
    # (N, H, W, C) -> (N*OH*OW, KH*KW*C), patch columns ordered (kh, kw, c).
    n, h, w, c = x.shape
    oh, ow = h - kh + 1, w - kw + 1
    cols = [x[:, i:i + oh, j:j + ow, :] for i in range(kh) for j in range(kw)]
    p = jnp.concatenate(cols, axis=-1)                # (N, OH, OW, KH*KW*C)
    return p.reshape(n * oh * ow, kh * kw * c), oh, ow


def conv_layer(x, layer, kh=3, kw=3):
    """x NHWC bf16 -> NHWC bf16 (native channel count, no pad/slice copies)."""
    n = x.shape[0]
    patches, oh, ow = _im2col_nhwc(x, kh, kw)
    out = conv_gemm(patches, layer["w"], layer["b"],
                    layer.get("s"), layer.get("t"))
    return out.reshape(n, oh, ow, layer["w"].shape[1])


def maxpool2x2(x):
    n, h, w, c = x.shape
    return x.reshape(n, h // 2, 2, w // 2, 2, c).max(axis=(2, 4))


# ----------------------------------------------------------------------------
# Parameters (deterministic, synthetic) + one-time preparation
# ----------------------------------------------------------------------------
def init_params(key):
    def conv_init(k, oc, ic, kh, kw):
        k1, k2 = jax.random.split(k)
        fan_in = ic * kh * kw
        w = jax.random.normal(k1, (oc, ic, kh, kw), jnp.float32) / math.sqrt(fan_in)
        b = 0.01 * jax.random.normal(k2, (oc,), jnp.float32)
        return w, b

    def bn_init(k, c, eps=1e-5):
        k1, k2 = jax.random.split(k)
        gamma = 1.0 + 0.1 * jax.random.normal(k1, (c,), jnp.float32)
        beta = 0.1 * jax.random.normal(k2, (c,), jnp.float32)
        running_mean = jnp.zeros((c,), jnp.float32)
        running_var = jnp.ones((c,), jnp.float32)
        scale = gamma / jnp.sqrt(running_var + eps)   # eval-mode BN fold
        shift = beta - running_mean * scale
        return scale, shift

    ks = jax.random.split(key, 9)
    p = {}
    p["conv1"] = conv_init(ks[0], 8, 1, 3, 3)
    p["conv2"] = conv_init(ks[1], 16, 8, 3, 3)
    p["conv3"] = conv_init(ks[2], 16, 16, 3, 3)
    p["conv4"] = conv_init(ks[3], 16, 16, 3, 3)
    p["conv5"] = conv_init(ks[4], 16, 16, 3, 3)
    p["conv6"] = conv_init(ks[5], 10, 16, 2, 2)
    p["bn1"] = bn_init(ks[6], 16)
    p["bn2"] = bn_init(ks[7], 16)
    p["bn3"] = bn_init(ks[8], 16)
    return p


def prepare_params(params):
    """One-time parameter prep, hoisted out of the forward path:
    PyTorch-layout conv weights -> (K, OC) bf16 GEMM matrices with rows
    ordered (kh, kw, ic); bias / eval-BN scale & shift -> (1, OC) f32 rows."""
    def wmat(w):
        oc, ic, kh, kw = w.shape
        return w.transpose(2, 3, 1, 0).reshape(kh * kw * ic, oc).astype(jnp.bfloat16)

    def row(v):
        return v.reshape(1, -1).astype(jnp.float32)

    prep = {}
    for name in ("conv1", "conv2", "conv3", "conv4", "conv5", "conv6"):
        w, b = params[name]
        prep[name] = {"w": wmat(w), "b": row(b)}
    for conv, bn in (("conv2", "bn1"), ("conv3", "bn2"), ("conv4", "bn3")):
        s, t = params[bn]
        prep[conv]["s"] = row(s)
        prep[conv]["t"] = row(t)
    return prep


# ----------------------------------------------------------------------------
# Forward pass (mirrors Net.forward, eval mode)
# ----------------------------------------------------------------------------
@jax.jit
def net_forward(x, prep):
    # x arrives NCHW like the PyTorch module; convert once to NHWC bf16 and
    # keep channels-last native-width activations for the whole network.
    x = jnp.transpose(x, (0, 2, 3, 1)).astype(jnp.bfloat16)
    x = conv_layer(x, prep["conv1"])          # relu(conv1)
    x = conv_layer(x, prep["conv2"])          # bn1(relu(conv2)); dropout1 = id
    x = maxpool2x2(x)                         # pool1
    x = conv_layer(x, prep["conv3"])          # bn2(relu(conv3)); dropout2 = id
    x = conv_layer(x, prep["conv4"])          # bn3(relu(conv4)); dropout3 = id
    x = maxpool2x2(x)                         # pool2
    x = conv_layer(x, prep["conv5"])          # relu(conv5)
    # conv6 + gap (1x1 spatial -> identity) + log_softmax fused in one kernel
    return conv6_gap_logsoftmax(x, prep["conv6"]["w"], prep["conv6"]["b"])


# ----------------------------------------------------------------------------
# Pure-JAX f32 reference (for a tolerance-based correctness check)
# ----------------------------------------------------------------------------
def _reference_forward(x, params):
    def conv(x, w, b):
        y = jax.lax.conv_general_dilated(
            x, w, (1, 1), "VALID", dimension_numbers=("NCHW", "OIHW", "NCHW"))
        return y + b[None, :, None, None]

    def bn(x, s, t):
        return x * s[None, :, None, None] + t[None, :, None, None]

    def pool(x):
        n, c, h, w = x.shape
        return x.reshape(n, c, h // 2, 2, w // 2, 2).max(axis=(3, 5))

    w1, b1 = params["conv1"]; w2, b2 = params["conv2"]
    w3, b3 = params["conv3"]; w4, b4 = params["conv4"]
    w5, b5 = params["conv5"]; w6, b6 = params["conv6"]
    s1, t1 = params["bn1"]; s2, t2 = params["bn2"]; s3, t3 = params["bn3"]

    x = jax.nn.relu(conv(x, w1, b1))
    x = bn(jax.nn.relu(conv(x, w2, b2)), s1, t1)
    x = pool(x)
    x = bn(jax.nn.relu(conv(x, w3, b3)), s2, t2)
    x = bn(jax.nn.relu(conv(x, w4, b4)), s3, t3)
    x = pool(x)
    x = jax.nn.relu(conv(x, w5, b5))
    x = conv(x, w6, b6)                        # (N, 10, 1, 1); gap(1) = identity
    return jax.nn.log_softmax(x.reshape(-1, 10), axis=1)


if __name__ == "__main__":
    key = jax.random.PRNGKey(0)
    kx, kp = jax.random.split(key)
    # MNIST-style input implied by the architecture: (N, 1, 28, 28)
    x = jax.random.normal(kx, (2, 1, 28, 28), jnp.float32)
    params = init_params(kp)
    prep = prepare_params(params)              # one-time, outside the forward path

    out = jax.block_until_ready(net_forward(x, prep))

    assert out.shape == (2, 10)
    # log_softmax rows must sum to ~1 in probability space
    assert bool(jnp.all(jnp.abs(jnp.sum(jnp.exp(out), axis=1) - 1.0) < 1e-4))
    # tolerance-based match against a pure-JAX f32 reference (bf16 MXU path)
    ref = _reference_forward(x, params)
    assert bool(jnp.max(jnp.abs(out - ref)) < 0.1)
    print("KERNEL_OK")
</pallas_src>

<mosaic_0001>
module attributes {stable_mosaic.version = 11 : i64} {
  func.func @_conv_relu_kernel(%arg0: i32, %arg1: memref<680x9xbf16, #tpu.memory_space<vmem>>, %arg2: memref<9x8xbf16, #tpu.memory_space<vmem>>, %arg3: memref<1x8xf32, #tpu.memory_space<vmem>>, %arg4: memref<680x8xbf16, #tpu.memory_space<vmem>>) attributes {dimension_semantics = [#tpu.dimension_semantics<parallel>], iteration_bounds = array<i64: 2>, scalar_prefetch = 0 : i64, scratch_operands = 0 : i64, tpu.core_type = #tpu.core_type<tc>, window_params = [{transform_indices = @transform_0, window_bounds = array<i64: 680, 9>}, {pipeline_mode = #tpu.pipeline_mode<synchronous>, transform_indices = @transform_1, window_bounds = array<i64: 9, 8>}, {pipeline_mode = #tpu.pipeline_mode<synchronous>, transform_indices = @transform_2, window_bounds = array<i64: 1, 8>}, {transform_indices = @transform_3, window_bounds = array<i64: 680, 8>}]} {
    %c0 = arith.constant 0 : index
    %c0_0 = arith.constant 0 : index
    %0 = vector.load %arg1[%c0, %c0_0] : memref<680x9xbf16, #tpu.memory_space<vmem>>, vector<680x9xbf16>
    %c0_1 = arith.constant 0 : index
    %c0_2 = arith.constant 0 : index
    %1 = vector.load %arg2[%c0_1, %c0_2] : memref<9x8xbf16, #tpu.memory_space<vmem>>, vector<9x8xbf16>
    %cst = arith.constant dense<0.000000e+00> : vector<680x8xf32>
    %2 = tpu.matmul %0, %1, %cst {dimension_numbers = #tpu.dot_dimension_numbers<[1], [0], [0], [1], [0, 0, 1, 1], [], []>} : vector<680x9xbf16>, vector<9x8xbf16>, vector<680x8xf32> -> vector<680x8xf32>
    %c0_3 = arith.constant 0 : index
    %c0_4 = arith.constant 0 : index
    %3 = vector.load %arg3[%c0_3, %c0_4] : memref<1x8xf32, #tpu.memory_space<vmem>>, vector<1x8xf32>
    %4 = vector.broadcast %3 : vector<1x8xf32> to vector<680x8xf32>
    %5 = arith.addf %2, %4 : vector<680x8xf32>
    %cst_5 = arith.constant 0.000000e+00 : f32
    %6 = vector.broadcast %cst_5 : f32 to vector<680x8xf32>
    %7 = arith.maximumf %5, %6 : vector<680x8xf32>
    %8 = arith.truncf %7 : vector<680x8xf32> to vector<680x8xbf16>
    %c0_6 = arith.constant 0 : index
    %c0_7 = arith.constant 0 : index
    %9 = vector.load %arg4[%c0_6, %c0_7] : memref<680x8xbf16, #tpu.memory_space<vmem>>, vector<680x8xbf16>
    tpu.vector_store %arg4[%c0_6, %c0_7], %8 {strides = array<i32>} : memref<680x8xbf16, #tpu.memory_space<vmem>>, vector<680x8xbf16>,
    return
  }
  func.func @transform_0(%arg0: i32) -> (i32, i32) {
    %c0_i32 = arith.constant 0 : i32
    %c0_i32_0 = arith.constant 0 : i32
    return %arg0, %c0_i32 : i32, i32
  }
  func.func @transform_1(%arg0: i32) -> (i32, i32) {
    %c0_i32 = arith.constant 0 : i32
    %c0_i32_0 = arith.constant 0 : i32
    %c0_i32_1 = arith.constant 0 : i32
    return %c0_i32, %c0_i32_0 : i32, i32
  }
  func.func @transform_2(%arg0: i32) -> (i32, i32) {
    %c0_i32 = arith.constant 0 : i32
    %c0_i32_0 = arith.constant 0 : i32
    %c0_i32_1 = arith.constant 0 : i32
    return %c0_i32, %c0_i32_0 : i32, i32
  }
  func.func @transform_3(%arg0: i32) -> (i32, i32) {
    %c0_i32 = arith.constant 0 : i32
    %c0_i32_0 = arith.constant 0 : i32
    return %arg0, %c0_i32 : i32, i32
  }
}

module attributes {stable_mosaic.version = 11 : i64} {
  func.func @_conv_relu_bn_kernel(%arg0: i32, %arg1: memref<576x72xbf16, #tpu.memory_space<vmem>>, %arg2: memref<72x16xbf16, #tpu.memory_space<vmem>>, %arg3: memref<1x16xf32, #tpu.memory_space<vmem>>, %arg4: memref<1x16xf32, #tpu.memory_space<vmem>>, %arg5: memref<1x16xf32, #tpu.memory_space<vmem>>, %arg6: memref<576x16xbf16, #tpu.memory_space<vmem>>) attributes {dimension_semantics = [#tpu.dimension_semantics<parallel>], iteration_bounds = array<i64: 2>, scalar_prefetch = 0 : i64, scratch_operands = 0 : i64, tpu.core_type = #tpu.core_type<tc>, window_params = [{transform_indices = @transform_0, window_bounds = array<i64: 576, 72>}, {pipeline_mode = #tpu.pipeline_mode<synchronous>, transform_indices = @transform_1, window_bounds = array<i64: 72, 16>}, {pipeline_mode = #tpu.pipeline_mode<synchronous>, transform_indices = @transform_2, window_bounds = array<i64: 1, 16>}, {pipeline_mode = #tpu.pipeline_mode<synchronous>, transform_indices = @transform_3, window_bounds = array<i64: 1, 16>}, {pipeline_mode = #tpu.pipeline_mode<synchronous>, transform_indices = @transform_4, window_bounds = array<i64: 1, 16>}, {transform_indices = @transform_5, window_bounds = array<i64: 576, 16>}]} {
    %c0 = arith.constant 0 : index
    %c0_0 = arith.constant 0 : index
    %0 = vector.load %arg1[%c0, %c0_0] : memref<576x72xbf16, #tpu.memory_space<vmem>>, vector<576x72xbf16>
    %c0_1 = arith.constant 0 : index
    %c0_2 = arith.constant 0 : index
    %1 = vector.load %arg2[%c0_1, %c0_2] : memref<72x16xbf16, #tpu.memory_space<vmem>>, vector<72x16xbf16>
    %cst = arith.constant dense<0.000000e+00> : vector<576x16xf32>
    %2 = tpu.matmul %0, %1, %cst {dimension_numbers = #tpu.dot_dimension_numbers<[1], [0], [0], [1], [0, 0, 1, 1], [], []>} : vector<576x72xbf16>, vector<72x16xbf16>, vector<576x16xf32> -> vector<576x16xf32>
    %c0_3 = arith.constant 0 : index
    %c0_4 = arith.constant 0 : index
    %3 = vector.load %arg3[%c0_3, %c0_4] : memref<1x16xf32, #tpu.memory_space<vmem>>, vector<1x16xf32>
    %4 = vector.broadcast %3 : vector<1x16xf32> to vector<576x16xf32>
    %5 = arith.addf %2, %4 : vector<576x16xf32>
    %cst_5 = arith.constant 0.000000e+00 : f32
    %6 = vector.broadcast %cst_5 : f32 to vector<576x16xf32>
    %7 = arith.maximumf %5, %6 : vector<576x16xf32>
    %c0_6 = arith.constant 0 : index
    %c0_7 = arith.constant 0 : index
    %8 = vector.load %arg4[%c0_6, %c0_7] : memref<1x16xf32, #tpu.memory_space<vmem>>, vector<1x16xf32>
    %9 = vector.broadcast %8 : vector<1x16xf32> to vector<576x16xf32>
    %10 = arith.mulf %7, %9 : vector<576x16xf32>
    %c0_8 = arith.constant 0 : index
    %c0_9 = arith.constant 0 : index
    %11 = vector.load %arg5[%c0_8, %c0_9] : memref<1x16xf32, #tpu.memory_space<vmem>>, vector<1x16xf32>
    %12 = vector.broadcast %11 : vector<1x16xf32> to vector<576x16xf32>
    %13 = arith.addf %10, %12 : vector<576x16xf32>
    %14 = arith.truncf %13 : vector<576x16xf32> to vector<576x16xbf16>
    %c0_10 = arith.constant 0 : index
    %c0_11 = arith.constant 0 : index
    %15 = vector.load %arg6[%c0_10, %c0_11] : memref<576x16xbf16, #tpu.memory_space<vmem>>, vector<576x16xbf16>
    tpu.vector_store %arg6[%c0_10, %c0_11], %14 {strides = array<i32>} : memref<576x16xbf16, #tpu.memory_space<vmem>>, vector<576x16xbf16>,
    return
  }
  func.func @transform_0(%arg0: i32) -> (i32, i32) {
    %c0_i32 = arith.constant 0 : i32
    %c0_i32_0 = arith.constant 0 : i32
    return %arg0, %c0_i32 : i32, i32
  }
  func.func @transform_1(%arg0: i32) -> (i32, i32) {
    %c0_i32 = arith.constant 0 : i32
    %c0_i32_0 = arith.constant 0 : i32
    %c0_i32_1 = arith.constant 0 : i32
    return %c0_i32, %c0_i32_0 : i32, i32
  }
  func.func @transform_2(%arg0: i32) -> (i32, i32) {
    %c0_i32 = arith.constant 0 : i32
    %c0_i32_0 = arith.constant 0 : i32
    %c0_i32_1 = arith.constant 0 : i32
    return %c0_i32, %c0_i32_0 : i32, i32
  }
  func.func @transform_3(%arg0: i32) -> (i32, i32) {
    %c0_i32 = arith.constant 0 : i32
    %c0_i32_0 = arith.constant 0 : i32
    %c0_i32_1 = arith.constant 0 : i32
    return %c0_i32, %c0_i32_0 : i32, i32
  }
  func.func @transform_4(%arg0: i32) -> (i32, i32) {
    %c0_i32 = arith.constant 0 : i32
    %c0_i32_0 = arith.constant 0 : i32
    %c0_i32_1 = arith.constant 0 : i32
    return %c0_i32, %c0_i32_0 : i32, i32
  }
  func.func @transform_5(%arg0: i32) -> (i32, i32) {
    %c0_i32 = arith.constant 0 : i32
    %c0_i32_0 = arith.constant 0 : i32
    return %arg0, %c0_i32 : i32, i32
  }
}

module attributes {stable_mosaic.version = 11 : i64} {
  func.func @_conv_relu_bn_kernel(%arg0: i32, %arg1: memref<200x144xbf16, #tpu.memory_space<vmem>>, %arg2: memref<144x16xbf16, #tpu.memory_space<vmem>>, %arg3: memref<1x16xf32, #tpu.memory_space<vmem>>, %arg4: memref<1x16xf32, #tpu.memory_space<vmem>>, %arg5: memref<1x16xf32, #tpu.memory_space<vmem>>, %arg6: memref<200x16xbf16, #tpu.memory_space<vmem>>) attributes {dimension_semantics = [#tpu.dimension_semantics<parallel>], iteration_bounds = array<i64: 1>, scalar_prefetch = 0 : i64, scratch_operands = 0 : i64, tpu.core_type = #tpu.core_type<tc>, window_params = [{transform_indices = @transform_0, window_bounds = array<i64: 200, 144>}, {pipeline_mode = #tpu.pipeline_mode<synchronous>, transform_indices = @transform_1, window_bounds = array<i64: 144, 16>}, {pipeline_mode = #tpu.pipeline_mode<synchronous>, transform_indices = @transform_2, window_bounds = array<i64: 1, 16>}, {pipeline_mode = #tpu.pipeline_mode<synchronous>, transform_indices = @transform_3, window_bounds = array<i64: 1, 16>}, {pipeline_mode = #tpu.pipeline_mode<synchronous>, transform_indices = @transform_4, window_bounds = array<i64: 1, 16>}, {transform_indices = @transform_5, window_bounds = array<i64: 200, 16>}]} {
    %c0 = arith.constant 0 : index
    %c0_0 = arith.constant 0 : index
    %0 = vector.load %arg1[%c0, %c0_0] : memref<200x144xbf16, #tpu.memory_space<vmem>>, vector<200x144xbf16>
    %c0_1 = arith.constant 0 : index
    %c0_2 = arith.constant 0 : index
    %1 = vector.load %arg2[%c0_1, %c0_2] : memref<144x16xbf16, #tpu.memory_space<vmem>>, vector<144x16xbf16>
    %cst = arith.constant dense<0.000000e+00> : vector<200x16xf32>
    %2 = tpu.matmul %0, %1, %cst {dimension_numbers = #tpu.dot_dimension_numbers<[1], [0], [0], [1], [0, 0, 1, 1], [], []>} : vector<200x144xbf16>, vector<144x16xbf16>, vector<200x16xf32> -> vector<200x16xf32>
    %c0_3 = arith.constant 0 : index
    %c0_4 = arith.constant 0 : index
    %3 = vector.load %arg3[%c0_3, %c0_4] : memref<1x16xf32, #tpu.memory_space<vmem>>, vector<1x16xf32>
    %4 = vector.broadcast %3 : vector<1x16xf32> to vector<200x16xf32>
    %5 = arith.addf %2, %4 : vector<200x16xf32>
    %cst_5 = arith.constant 0.000000e+00 : f32
    %6 = vector.broadcast %cst_5 : f32 to vector<200x16xf32>
    %7 = arith.maximumf %5, %6 : vector<200x16xf32>
    %c0_6 = arith.constant 0 : index
    %c0_7 = arith.constant 0 : index
    %8 = vector.load %arg4[%c0_6, %c0_7] : memref<1x16xf32, #tpu.memory_space<vmem>>, vector<1x16xf32>
    %9 = vector.broadcast %8 : vector<1x16xf32> to vector<200x16xf32>
    %10 = arith.mulf %7, %9 : vector<200x16xf32>
    %c0_8 = arith.constant 0 : index
    %c0_9 = arith.constant 0 : index
    %11 = vector.load %arg5[%c0_8, %c0_9] : memref<1x16xf32, #tpu.memory_space<vmem>>, vector<1x16xf32>
    %12 = vector.broadcast %11 : vector<1x16xf32> to vector<200x16xf32>
    %13 = arith.addf %10, %12 : vector<200x16xf32>
    %14 = arith.truncf %13 : vector<200x16xf32> to vector<200x16xbf16>
    %c0_10 = arith.constant 0 : index
    %c0_11 = arith.constant 0 : index
    %15 = vector.load %arg6[%c0_10, %c0_11] : memref<200x16xbf16, #tpu.memory_space<vmem>>, vector<200x16xbf16>
    tpu.vector_store %arg6[%c0_10, %c0_11], %14 {strides = array<i32>} : memref<200x16xbf16, #tpu.memory_space<vmem>>, vector<200x16xbf16>,
    return
  }
  func.func @transform_0(%arg0: i32) -> (i32, i32) {
    %c0_i32 = arith.constant 0 : i32
    %c0_i32_0 = arith.constant 0 : i32
    return %arg0, %c0_i32 : i32, i32
  }
  func.func @transform_1(%arg0: i32) -> (i32, i32) {
    %c0_i32 = arith.constant 0 : i32
    %c0_i32_0 = arith.constant 0 : i32
    %c0_i32_1 = arith.constant 0 : i32
    return %c0_i32, %c0_i32_0 : i32, i32
  }
  func.func @transform_2(%arg0: i32) -> (i32, i32) {
    %c0_i32 = arith.constant 0 : i32
    %c0_i32_0 = arith.constant 0 : i32
    %c0_i32_1 = arith.constant 0 : i32
    return %c0_i32, %c0_i32_0 : i32, i32
  }
  func.func @transform_3(%arg0: i32) -> (i32, i32) {
    %c0_i32 = arith.constant 0 : i32
    %c0_i32_0 = arith.constant 0 : i32
    %c0_i32_1 = arith.constant 0 : i32
    return %c0_i32, %c0_i32_0 : i32, i32
  }
  func.func @transform_4(%arg0: i32) -> (i32, i32) {
    %c0_i32 = arith.constant 0 : i32
    %c0_i32_0 = arith.constant 0 : i32
    %c0_i32_1 = arith.constant 0 : i32
    return %c0_i32, %c0_i32_0 : i32, i32
  }
  func.func @transform_5(%arg0: i32) -> (i32, i32) {
    %c0_i32 = arith.constant 0 : i32
    %c0_i32_0 = arith.constant 0 : i32
    return %arg0, %c0_i32 : i32, i32
  }
}

module attributes {stable_mosaic.version = 11 : i64} {
  func.func @_conv_relu_bn_kernel(%arg0: i32, %arg1: memref<128x144xbf16, #tpu.memory_space<vmem>>, %arg2: memref<144x16xbf16, #tpu.memory_space<vmem>>, %arg3: memref<1x16xf32, #tpu.memory_space<vmem>>, %arg4: memref<1x16xf32, #tpu.memory_space<vmem>>, %arg5: memref<1x16xf32, #tpu.memory_space<vmem>>, %arg6: memref<128x16xbf16, #tpu.memory_space<vmem>>) attributes {dimension_semantics = [#tpu.dimension_semantics<parallel>], iteration_bounds = array<i64: 1>, scalar_prefetch = 0 : i64, scratch_operands = 0 : i64, tpu.core_type = #tpu.core_type<tc>, window_params = [{transform_indices = @transform_0, window_bounds = array<i64: 128, 144>}, {pipeline_mode = #tpu.pipeline_mode<synchronous>, transform_indices = @transform_1, window_bounds = array<i64: 144, 16>}, {pipeline_mode = #tpu.pipeline_mode<synchronous>, transform_indices = @transform_2, window_bounds = array<i64: 1, 16>}, {pipeline_mode = #tpu.pipeline_mode<synchronous>, transform_indices = @transform_3, window_bounds = array<i64: 1, 16>}, {pipeline_mode = #tpu.pipeline_mode<synchronous>, transform_indices = @transform_4, window_bounds = array<i64: 1, 16>}, {transform_indices = @transform_5, window_bounds = array<i64: 128, 16>}]} {
    %c0 = arith.constant 0 : index
    %c0_0 = arith.constant 0 : index
    %0 = vector.load %arg1[%c0, %c0_0] : memref<128x144xbf16, #tpu.memory_space<vmem>>, vector<128x144xbf16>
    %c0_1 = arith.constant 0 : index
    %c0_2 = arith.constant 0 : index
    %1 = vector.load %arg2[%c0_1, %c0_2] : memref<144x16xbf16, #tpu.memory_space<vmem>>, vector<144x16xbf16>
    %cst = arith.constant dense<0.000000e+00> : vector<128x16xf32>
    %2 = tpu.matmul %0, %1, %cst {dimension_numbers = #tpu.dot_dimension_numbers<[1], [0], [0], [1], [0, 0, 1, 1], [], []>} : vector<128x144xbf16>, vector<144x16xbf16>, vector<128x16xf32> -> vector<128x16xf32>
    %c0_3 = arith.constant 0 : index
    %c0_4 = arith.constant 0 : index
    %3 = vector.load %arg3[%c0_3, %c0_4] : memref<1x16xf32, #tpu.memory_space<vmem>>, vector<1x16xf32>
    %4 = vector.broadcast %3 : vector<1x16xf32> to vector<128x16xf32>
    %5 = arith.addf %2, %4 : vector<128x16xf32>
    %cst_5 = arith.constant 0.000000e+00 : f32
    %6 = vector.broadcast %cst_5 : f32 to vector<128x16xf32>
    %7 = arith.maximumf %5, %6 : vector<128x16xf32>
    %c0_6 = arith.constant 0 : index
    %c0_7 = arith.constant 0 : index
    %8 = vector.load %arg4[%c0_6, %c0_7] : memref<1x16xf32, #tpu.memory_space<vmem>>, vector<1x16xf32>
    %9 = vector.broadcast %8 : vector<1x16xf32> to vector<128x16xf32>
    %10 = arith.mulf %7, %9 : vector<128x16xf32>
    %c0_8 = arith.constant 0 : index
    %c0_9 = arith.constant 0 : index
    %11 = vector.load %arg5[%c0_8, %c0_9] : memref<1x16xf32, #tpu.memory_space<vmem>>, vector<1x16xf32>
    %12 = vector.broadcast %11 : vector<1x16xf32> to vector<128x16xf32>
    %13 = arith.addf %10, %12 : vector<128x16xf32>
    %14 = arith.truncf %13 : vector<128x16xf32> to vector<128x16xbf16>
    %c0_10 = arith.constant 0 : index
    %c0_11 = arith.constant 0 : index
    %15 = vector.load %arg6[%c0_10, %c0_11] : memref<128x16xbf16, #tpu.memory_space<vmem>>, vector<128x16xbf16>
    tpu.vector_store %arg6[%c0_10, %c0_11], %14 {strides = array<i32>} : memref<128x16xbf16, #tpu.memory_space<vmem>>, vector<128x16xbf16>,
    return
  }
  func.func @transform_0(%arg0: i32) -> (i32, i32) {
    %c0_i32 = arith.constant 0 : i32
    %c0_i32_0 = arith.constant 0 : i32
    return %arg0, %c0_i32 : i32, i32
  }
  func.func @transform_1(%arg0: i32) -> (i32, i32) {
    %c0_i32 = arith.constant 0 : i32
    %c0_i32_0 = arith.constant 0 : i32
    %c0_i32_1 = arith.constant 0 : i32
    return %c0_i32, %c0_i32_0 : i32, i32
  }
  func.func @transform_2(%arg0: i32) -> (i32, i32) {
    %c0_i32 = arith.constant 0 : i32
    %c0_i32_0 = arith.constant 0 : i32
    %c0_i32_1 = arith.constant 0 : i32
    return %c0_i32, %c0_i32_0 : i32, i32
  }
  func.func @transform_3(%arg0: i32) -> (i32, i32) {
    %c0_i32 = arith.constant 0 : i32
    %c0_i32_0 = arith.constant 0 : i32
    %c0_i32_1 = arith.constant 0 : i32
    return %c0_i32, %c0_i32_0 : i32, i32
  }
  func.func @transform_4(%arg0: i32) -> (i32, i32) {
    %c0_i32 = arith.constant 0 : i32
    %c0_i32_0 = arith.constant 0 : i32
    %c0_i32_1 = arith.constant 0 : i32
    return %c0_i32, %c0_i32_0 : i32, i32
  }
  func.func @transform_5(%arg0: i32) -> (i32, i32) {
    %c0_i32 = arith.constant 0 : i32
    %c0_i32_0 = arith.constant 0 : i32
    return %arg0, %c0_i32 : i32, i32
  }
}

module attributes {stable_mosaic.version = 11 : i64} {
  func.func @_conv_relu_kernel(%arg0: i32, %arg1: memref<8x144xbf16, #tpu.memory_space<vmem>>, %arg2: memref<144x16xbf16, #tpu.memory_space<vmem>>, %arg3: memref<1x16xf32, #tpu.memory_space<vmem>>, %arg4: memref<8x16xbf16, #tpu.memory_space<vmem>>) attributes {dimension_semantics = [#tpu.dimension_semantics<parallel>], iteration_bounds = array<i64: 1>, scalar_prefetch = 0 : i64, scratch_operands = 0 : i64, tpu.core_type = #tpu.core_type<tc>, window_params = [{transform_indices = @transform_0, window_bounds = array<i64: 8, 144>}, {pipeline_mode = #tpu.pipeline_mode<synchronous>, transform_indices = @transform_1, window_bounds = array<i64: 144, 16>}, {pipeline_mode = #tpu.pipeline_mode<synchronous>, transform_indices = @transform_2, window_bounds = array<i64: 1, 16>}, {transform_indices = @transform_3, window_bounds = array<i64: 8, 16>}]} {
    %c0 = arith.constant 0 : index
    %c0_0 = arith.constant 0 : index
    %0 = vector.load %arg1[%c0, %c0_0] : memref<8x144xbf16, #tpu.memory_space<vmem>>, vector<8x144xbf16>
    %c0_1 = arith.constant 0 : index
    %c0_2 = arith.constant 0 : index
    %1 = vector.load %arg2[%c0_1, %c0_2] : memref<144x16xbf16, #tpu.memory_space<vmem>>, vector<144x16xbf16>
    %cst = arith.constant dense<0.000000e+00> : vector<8x16xf32>
    %2 = tpu.matmul %0, %1, %cst {dimension_numbers = #tpu.dot_dimension_numbers<[1], [0], [0], [1], [0, 0, 1, 1], [], []>} : vector<8x144xbf16>, vector<144x16xbf16>, vector<8x16xf32> -> vector<8x16xf32>
    %c0_3 = arith.constant 0 : index
    %c0_4 = arith.constant 0 : index
    %3 = vector.load %arg3[%c0_3, %c0_4] : memref<1x16xf32, #tpu.memory_space<vmem>>, vector<1x16xf32>
    %4 = vector.broadcast %3 : vector<1x16xf32> to vector<8x16xf32>
    %5 = arith.addf %2, %4 : vector<8x16xf32>
    %cst_5 = arith.constant 0.000000e+00 : f32
    %6 = vector.broadcast %cst_5 : f32 to vector<8x16xf32>
    %7 = arith.maximumf %5, %6 : vector<8x16xf32>
    %8 = arith.truncf %7 : vector<8x16xf32> to vector<8x16xbf16>
    %c0_6 = arith.constant 0 : index
    %c0_7 = arith.constant 0 : index
    %9 = vector.load %arg4[%c0_6, %c0_7] : memref<8x16xbf16, #tpu.memory_space<vmem>>, vector<8x16xbf16>
    tpu.vector_store %arg4[%c0_6, %c0_7], %8 {strides = array<i32>} : memref<8x16xbf16, #tpu.memory_space<vmem>>, vector<8x16xbf16>,
    return
  }
  func.func @transform_0(%arg0: i32) -> (i32, i32) {
    %c0_i32 = arith.constant 0 : i32
    %c0_i32_0 = arith.constant 0 : i32
    return %arg0, %c0_i32 : i32, i32
  }
  func.func @transform_1(%arg0: i32) -> (i32, i32) {
    %c0_i32 = arith.constant 0 : i32
    %c0_i32_0 = arith.constant 0 : i32
    %c0_i32_1 = arith.constant 0 : i32
    return %c0_i32, %c0_i32_0 : i32, i32
  }
  func.func @transform_2(%arg0: i32) -> (i32, i32) {
    %c0_i32 = arith.constant 0 : i32
    %c0_i32_0 = arith.constant 0 : i32
    %c0_i32_1 = arith.constant 0 : i32
    return %c0_i32, %c0_i32_0 : i32, i32
  }
  func.func @transform_3(%arg0: i32) -> (i32, i32) {
    %c0_i32 = arith.constant 0 : i32
    %c0_i32_0 = arith.constant 0 : i32
    return %arg0, %c0_i32 : i32, i32
  }
}

module attributes {stable_mosaic.version = 11 : i64} {
  func.func @_tail_kernel(%arg0: i32, %arg1: memref<2x64xbf16, #tpu.memory_space<vmem>>, %arg2: memref<64x10xbf16, #tpu.memory_space<vmem>>, %arg3: memref<1x10xf32, #tpu.memory_space<vmem>>, %arg4: memref<2x10xf32, #tpu.memory_space<vmem>>) attributes {dimension_semantics = [#tpu.dimension_semantics<arbitrary>], iteration_bounds = array<i64: 1>, scalar_prefetch = 0 : i64, scratch_operands = 0 : i64, tpu.core_type = #tpu.core_type<tc>, window_params = [{pipeline_mode = #tpu.pipeline_mode<synchronous>, transform_indices = @transform_0, window_bounds = array<i64: 2, 64>}, {pipeline_mode = #tpu.pipeline_mode<synchronous>, transform_indices = @transform_1, window_bounds = array<i64: 64, 10>}, {pipeline_mode = #tpu.pipeline_mode<synchronous>, transform_indices = @transform_2, window_bounds = array<i64: 1, 10>}, {pipeline_mode = #tpu.pipeline_mode<synchronous>, transform_indices = @transform_3, window_bounds = array<i64: 2, 10>}]} {
    %c0 = arith.constant 0 : index
    %c0_0 = arith.constant 0 : index
    %0 = vector.load %arg1[%c0, %c0_0] : memref<2x64xbf16, #tpu.memory_space<vmem>>, vector<2x64xbf16>
    %c0_1 = arith.constant 0 : index
    %c0_2 = arith.constant 0 : index
    %1 = vector.load %arg2[%c0_1, %c0_2] : memref<64x10xbf16, #tpu.memory_space<vmem>>, vector<64x10xbf16>
    %cst = arith.constant dense<0.000000e+00> : vector<2x10xf32>
    %2 = tpu.matmul %0, %1, %cst {dimension_numbers = #tpu.dot_dimension_numbers<[1], [0], [0], [1], [0, 0, 1, 1], [], []>} : vector<2x64xbf16>, vector<64x10xbf16>, vector<2x10xf32> -> vector<2x10xf32>
    %c0_3 = arith.constant 0 : index
    %c0_4 = arith.constant 0 : index
    %3 = vector.load %arg3[%c0_3, %c0_4] : memref<1x10xf32, #tpu.memory_space<vmem>>, vector<1x10xf32>
    %4 = vector.broadcast %3 : vector<1x10xf32> to vector<2x10xf32>
    %5 = arith.addf %2, %4 : vector<2x10xf32>
    %cst_5 = arith.constant dense<0xFF800000> : vector<2xf32>
    %6 = vector.multi_reduction <maximumf>, %5, %cst_5 [1] : vector<2x10xf32> to vector<2xf32>
    %7 = vector.shape_cast %6 : vector<2xf32> to vector<2x1xf32>
    %8 = vector.broadcast %7 : vector<2x1xf32> to vector<2x10xf32>
    %9 = arith.subf %5, %8 : vector<2x10xf32>
    %10 = math.exp %9 : vector<2x10xf32>
    %cst_6 = arith.constant dense<0.000000e+00> : vector<2xf32>
    %11 = vector.multi_reduction <add>, %10, %cst_6 [1] : vector<2x10xf32> to vector<2xf32>
    %12 = vector.shape_cast %11 : vector<2xf32> to vector<2x1xf32>
    %13 = math.log %12 : vector<2x1xf32>
    %14 = vector.broadcast %13 : vector<2x1xf32> to vector<2x10xf32>
    %15 = arith.subf %9, %14 : vector<2x10xf32>
    %c0_7 = arith.constant 0 : index
    %c0_8 = arith.constant 0 : index
    %16 = vector.load %arg4[%c0_7, %c0_8] : memref<2x10xf32, #tpu.memory_space<vmem>>, vector<2x10xf32>
    tpu.vector_store %arg4[%c0_7, %c0_8], %15 {strides = array<i32>} : memref<2x10xf32, #tpu.memory_space<vmem>>, vector<2x10xf32>,
    return
  }
  func.func @transform_0(%arg0: i32) -> (i32, i32) {
    %c0_i32 = arith.constant 0 : i32
    %c0_i32_0 = arith.constant 0 : i32
    %c0_i32_1 = arith.constant 0 : i32
    return %c0_i32, %c0_i32_0 : i32, i32
  }
  func.func @transform_1(%arg0: i32) -> (i32, i32) {
    %c0_i32 = arith.constant 0 : i32
    %c0_i32_0 = arith.constant 0 : i32
    %c0_i32_1 = arith.constant 0 : i32
    return %c0_i32, %c0_i32_0 : i32, i32
  }
  func.func @transform_2(%arg0: i32) -> (i32, i32) {
    %c0_i32 = arith.constant 0 : i32
    %c0_i32_0 = arith.constant 0 : i32
    %c0_i32_1 = arith.constant 0 : i32
    return %c0_i32, %c0_i32_0 : i32, i32
  }
  func.func @transform_3(%arg0: i32) -> (i32, i32) {
    %c0_i32 = arith.constant 0 : i32
    %c0_i32_0 = arith.constant 0 : i32
    %c0_i32_1 = arith.constant 0 : i32
    return %c0_i32, %c0_i32_0 : i32, i32
  }
}

</mosaic_0001>

<bundles_post_ra>
// kernel: net_forward.6
= control target key start
LH: loop header
LB: loop body
LE: loop exit
PB: predicated region body
PF: predicated region fallthrough
CT: control target
= control target key end

     0   :  { %s2744_s12 = smov 0   ;;  %s2746_s13 = smov 0   ;;  %s3422_s0 = inlined_call_operand.vmem [shape: bf16[1352,9], index: 0, kind: input, shape index: {}]   ;;  %s3423_s1 = inlined_call_operand.vmem [shape: bf16[9,8], index: 1, kind: input, shape index: {}]   ;;  %s3424_s2 = inlined_call_operand.vmem [shape: f32[1,8], index: 2, kind: input, shape index: {}]   ;;  %s3425_s3 = inlined_call_operand.vmem [shape: bf16[1352,8], index: 3, kind: output, shape index: {}]  }
   0x1   :  { %s2748_s14 = smov 0  }
   0x2 LB: > { %s2757_s15 = sadd.s32 4294967295, %s2687_s14   ;;  %s2759_s16 = sadd.s32 1, %s2687_s14   ;;  %s2687_s14 = sphi %s2748_s14, %s3432_s14   ;;  %s2683_s13 = sphi %s2746_s13, %s3431_s13   ;;  %s2679_s12 = sphi %s2744_s12, %s3430_s12  }
   0x3   : > { %s85_s17 = ssub.s32 %s2687_s14, %s2759_s16  ;;  %s88_s18 = sadd.s32 1, %s2683_s13 }
   0x4   : > { %p86_p0 = scmp.eq.s32.totalorder %s85_s17, 0  ;;  %p98_p1 = scmp.ne.s32.totalorder %s2683_s13, %s2679_s12 }
   0x5   : > { %p99_p2 = scmp.eq.s32.totalorder %s2757_s15, 1  ;;  %p1999_p3 = scmp.ge.s32.totalorder %s2687_s14, 1 }
   0x6   : > { %s2767_s19 = scalar_select %p86_p0, %s2683_s13, %s88_s18  }
   0x7   : > { %p2769_p4 = por %p99_p2, %p98_p1  ;;  %p146_p5 = scmp.lt.s32.totalorder %s2687_s14, 3 }
   0x9   : > { %p147_p6 = pnand %p1999_p3, %p146_p5 }
   0xa   : > { %vm635_vm0 = vcmask (!%p147_p6), 1043456   ;;  %v2721_v0 = vmov (!%p147_p6), 0.0   ;;  %v2589_v1 = vld [vmem:[%s3423_s1] sm:$0x1f] (!%p147_p6)   ;;  %vm636_vm1 = vcmask (!%p147_p6), 1044480   ;;  %s2778_s23 = smul.u32 (!%p147_p6), 85, %s2757_s15 }
   0xb   : > { %150 = sbr.rel (%p147_p6) target bundleno = 503 (0x1f7), region = 32  ;;  %2321 = vmatprep.subr.bf16.mxu0 (!%p147_p6), %v2721_v0  ;;  %2495 = vmatprep.subr.bf16.mxu1 (!%p147_p6), %v2721_v0  ;;  %v2722_v2 = vmov (!%p147_p6), 65535   ;;  %vm2723_vm2 = vmmov (!%p147_p6), 0   ;;  %vm505_vm3 = vcmask (!%p147_p6), 72704   ;;  %s170_s29 = sand.u32 (!%p147_p6), 1, %s2679_s12   ;;  %vm1444_vm4 = vcmask (!%p147_p6), 60416  }
   0xc   : > { %v637_v3 = vsel (!%p147_p6), %vm635_vm0, 4294967295, %v2722_v2  ;;  %2323 = vmatprep.mubr.msk.bf16.mxu0 (!%p147_p6), %vm2723_vm2, %v2721_v0  ;;  %2411 = vmatprep.mubr.msk.bf16.mxu1 (!%p147_p6), %vm2723_vm2, %v2721_v0  ;;  %p178_p7 = scmp.lt.s32.totalorder (!%p147_p6), %s2778_s23, 168  ;;  %v2964_v49 = vld [vmem:[%s3424_s2] ss:$0 sm:$0xff] (!%p147_p6)  ;;  %s2497_s5 = smul.u32 (!%p147_p6), 340, %s170_s29 }
   0xd   : > { %v638_v4 = vsel (!%p147_p6), %vm636_vm1, %v637_v3, 0 }
   0xe   : > { %v640_v5 = vand.u32 (!%p147_p6), %v2589_v1, %v638_v4  ;;  %s2970_s6 = scalar_lea.vmem (!%p147_p6), [#allocation2], %s2497_s5  }
  0x10   : > { %2322 = vmatpush3.bf16.msra.mxu0 (!%p147_p6), %v640_v5  ;;  %2496 = vmatpush3.bf16.msra.mxu1 (!%p147_p6), %v640_v5 }
  0x12   : > { %s179_s24 = scalar_select %p178_p7, %s2778_s23, 168 }
  0x13   : > { %s1538_s7 = ssub.s32 (%p2769_p4), 169, %s2778_s23  ;;  %s2274_s8 = smul.u32 (%p2769_p4), 340, %s2757_s15 }
  0x14   : > { %s2000_s25 = sshll.u32 %s179_s24, 2  ;;  %p1539_p8 = scmp.lt.s32.totalorder (%p2769_p4), %s1538_s7, 85 }
  0x15   : > { %s2790_s28 = scalar_lea.vmem %s3422_s0, %s2000_s25  ;;  %s3230_s11 = scalar_lea.vmem (%p2769_p4), %s3425_s3, %s2274_s8  }
  0x16   : > { %v2590_v6 = vld [vmem:[%s2790_s28] sm:$0xff]   ;;  %v2591_v7 = vld [vmem:[%s2790_s28 + $0xb0] sm:$0xff]   ;;  %v2592_v8 = vld [vmem:[%s2790_s28 + $0x8] sm:$0xff]  }
  0x17   : > { %2324 = vmatmul.mubr.msk.bf16.vlgmr.msra.gmra.mrb[0].mxu0 %vm505_vm3, %v2590_v6  ;;  %2412 = vmatmul.mubr.msk.bf16.vlgmr.msra.gmra.mrb[0].mxu1 %vm505_vm3, %v2591_v7  ;;  %v2593_v9 = vld [vmem:[%s2790_s28 + $0xb8] sm:$0xff]   ;;  %v2594_v10 = vld [vmem:[%s2790_s28 + $0x10] sm:$0xff]   ;;  %v2595_v11 = vld [vmem:[%s2790_s28 + $0xc0] sm:$0xff]  }
  0x18   : > { %2327 = vmatprep.mubr.msk.bf16.mxu0 %vm2723_vm2, %v2721_v0  ;;  %2415 = vmatprep.mubr.msk.bf16.mxu1 %vm2723_vm2, %v2721_v0  ;;  %v2596_v12 = vld [vmem:[%s2790_s28 + $0x18] sm:$0xff]   ;;  %v2597_v13 = vld [vmem:[%s2790_s28 + $0xc8] sm:$0xff]   ;;  %v2598_v14 = vld [vmem:[%s2790_s28 + $0x20] sm:$0xff]  }
  0x19   : > { %v2599_v15 = vld [vmem:[%s2790_s28 + $0xd0] sm:$0xff]   ;;  %v2600_v16 = vld [vmem:[%s2790_s28 + $0x28] sm:$0xff]   ;;  %v2601_v17 = vld [vmem:[%s2790_s28 + $0xd8] sm:$0xff]  }
  0x1a   : > { %v2602_v18 = vld [vmem:[%s2790_s28 + $0x30] sm:$0xff]   ;;  %v2603_v19 = vld [vmem:[%s2790_s28 + $0xe0] sm:$0xff]   ;;  %v2604_v20 = vld [vmem:[%s2790_s28 + $0x38] sm:$0xff]  }
  0x1b   : > { %v2605_v21 = vld [vmem:[%s2790_s28 + $0xe8] sm:$0xff]   ;;  %v2606_v22 = vld [vmem:[%s2790_s28 + $0x40] sm:$0xff]   ;;  %v2607_v23 = vld [vmem:[%s2790_s28 + $0xf0] sm:$0xff]  }
  0x1c   : > { %v2608_v24 = vld [vmem:[%s2790_s28 + $0x48] sm:$0xff]   ;;  %v2609_v25 = vld [vmem:[%s2790_s28 + $0xf8] sm:$0xff]   ;;  %v2610_v26 = vld [vmem:[%s2790_s28 + $0x50] sm:$0xff]  }
  0x1d   : > { %v2611_v27 = vld [vmem:[%s2790_s28 + $0x100] sm:$0xff]   ;;  %v2612_v28 = vld [vmem:[%s2790_s28 + $0x58] sm:$0xff]   ;;  %v2613_v29 = vld [vmem:[%s2790_s28 + $0x108] sm:$0xff]  }
  0x1e   : > { %v2614_v30 = vld [vmem:[%s2790_s28 + $0x60] sm:$0xff]   ;;  %v2615_v31 = vld [vmem:[%s2790_s28 + $0x110] sm:$0xff]   ;;  %v2616_v32 = vld [vmem:[%s2790_s28 + $0x68] sm:$0xff]  }
  0x1f   : > { %2328 = vmatmul.mubr.msk.bf16.gmra.mrb[4].mxu0 %vm505_vm3, %v2592_v8  ;;  %2416 = vmatmul.mubr.msk.bf16.gmra.mrb[4].mxu1 %vm505_vm3, %v2593_v9  ;;  %v2617_v33 = vld [vmem:[%s2790_s28 + $0x118] sm:$0xff]   ;;  %v2618_v34 = vld [vmem:[%s2790_s28 + $0x70] sm:$0xff]   ;;  %v2619_v35 = vld [vmem:[%s2790_s28 + $0x120] sm:$0xff]  }
  0x20   : > { %2331 = vmatprep.mubr.msk.bf16.mxu0 %vm2723_vm2, %v2721_v0  ;;  %2419 = vmatprep.mubr.msk.bf16.mxu1 %vm2723_vm2, %v2721_v0  ;;  %v2620_v36 = vld [vmem:[%s2790_s28 + $0x78] sm:$0xff]   ;;  %v2621_v37 = vld [vmem:[%s2790_s28 + $0x128] sm:$0xff]   ;;  %v2622_v38 = vld [vmem:[%s2790_s28 + $0x80] sm:$0xff]  }
  0x21   : > { %v2623_v39 = vld [vmem:[%s2790_s28 + $0x130] sm:$0xff]   ;;  %v2624_v40 = vld [vmem:[%s2790_s28 + $0x88] sm:$0xff]   ;;  %v2625_v41 = vld [vmem:[%s2790_s28 + $0x138] sm:$0xff]  }
  0x22   : > { %v2626_v42 = vld [vmem:[%s2790_s28 + $0x90] sm:$0xff]   ;;  %v2627_v43 = vld [vmem:[%s2790_s28 + $0x140] sm:$0xff]   ;;  %v2628_v44 = vld [vmem:[%s2790_s28 + $0x98] sm:$0xff]  }
  0x23   : > { %v2629_v45 = vld [vmem:[%s2790_s28 + $0x148] sm:$0xff]   ;;  %v2630_v46 = vld [vmem:[%s2790_s28 + $0xa0] sm:$0xff]   ;;  %v2631_v47 = vld [vmem:[%s2790_s28 + $0x150] ss:$0 sps:$4 sm:$0xff]  }
  0x24   : > { %v2632_v48 = vld [vmem:[%s2790_s28 + $0xa8] sm:$0xff]  }
  0x27   : > { %2332 = vmatmul.mubr.msk.bf16.gmra.mrb[8].mxu0 %vm505_vm3, %v2594_v10  ;;  %2420 = vmatmul.mubr.msk.bf16.gmra.mrb[8].mxu1 %vm505_vm3, %v2595_v11 }
  0x28   : > { %2335 = vmatprep.mubr.msk.bf16.mxu0 %vm2723_vm2, %v2721_v0  ;;  %2423 = vmatprep.mubr.msk.bf16.mxu1 %vm2723_vm2, %v2721_v0 }
  0x2f   : > { %2336 = vmatmul.mubr.msk.bf16.gmra.mrb[12].mxu0 %vm505_vm3, %v2596_v12  ;;  %2424 = vmatmul.mubr.msk.bf16.gmra.mrb[12].mxu1 %vm505_vm3, %v2597_v13 }
  0x30   : > { %2339 = vmatprep.mubr.msk.bf16.mxu0 %vm2723_vm2, %v2721_v0  ;;  %2427 = vmatprep.mubr.msk.bf16.mxu1 %vm2723_vm2, %v2721_v0 }
  0x37   : > { %2340 = vmatmul.mubr.msk.bf16.gmra.mrb[16].mxu0 %vm505_vm3, %v2598_v14  ;;  %2428 = vmatmul.mubr.msk.bf16.gmra.mrb[16].mxu1 %vm505_vm3, %v2599_v15 }
  0x38   : > { %2343 = vmatprep.mubr.msk.bf16.mxu0 %vm2723_vm2, %v2721_v0  ;;  %2431 = vmatprep.mubr.msk.bf16.mxu1 %vm2723_vm2, %v2721_v0 }
  0x3f   : > { %2344 = vmatmul.mubr.msk.bf16.gmra.mrb[20].mxu0 %vm505_vm3, %v2600_v16  ;;  %2432 = vmatmul.mubr.msk.bf16.gmra.mrb[20].mxu1 %vm505_vm3, %v2601_v17 }
  0x40   : > { %2347 = vmatprep.mubr.msk.bf16.mxu0 %vm2723_vm2, %v2721_v0  ;;  %2435 = vmatprep.mubr.msk.bf16.mxu1 %vm2723_vm2, %v2721_v0 }
  0x47   : > { %2348 = vmatmul.mubr.msk.bf16.gmra.mrb[24].mxu0 %vm505_vm3, %v2602_v18  ;;  %2436 = vmatmul.mubr.msk.bf16.gmra.mrb[24].mxu1 %vm505_vm3, %v2603_v19 }
  0x48   : > { %2351 = vmatprep.mubr.msk.bf16.mxu0 %vm2723_vm2, %v2721_v0  ;;  %2439 = vmatprep.mubr.msk.bf16.mxu1 %vm2723_vm2, %v2721_v0 }
  0x4f   : > { %2352 = vmatmul.mubr.msk.bf16.gmra.mrb[28].mxu0 %vm505_vm3, %v2604_v20  ;;  %2440 = vmatmul.mubr.msk.bf16.gmra.mrb[28].mxu1 %vm505_vm3, %v2605_v21 }
  0x50   : > { %2355 = vmatprep.mubr.msk.bf16.mxu0 %vm2723_vm2, %v2721_v0  ;;  %2443 = vmatprep.mubr.msk.bf16.mxu1 %vm2723_vm2, %v2721_v0 }
  0x57   : > { %2356 = vmatmul.mubr.msk.bf16.gmra.mrb[32].mxu0 %vm505_vm3, %v2606_v22  ;;  %2444 = vmatmul.mubr.msk.bf16.gmra.mrb[32].mxu1 %vm505_vm3, %v2607_v23 }
  0x58   : > { %2359 = vmatprep.mubr.msk.bf16.mxu0 %vm2723_vm2, %v2721_v0  ;;  %2447 = vmatprep.mubr.msk.bf16.mxu1 %vm2723_vm2, %v2721_v0 }
  0x5f   : > { %2360 = vmatmul.mubr.msk.bf16.gmra.mrb[36].mxu0 %vm505_vm3, %v2608_v24  ;;  %2448 = vmatmul.mubr.msk.bf16.gmra.mrb[36].mxu1 %vm505_vm3, %v2609_v25 }
  0x60   : > { %2363 = vmatprep.mubr.msk.bf16.mxu0 %vm2723_vm2, %v2721_v0  ;;  %2451 = vmatprep.mubr.msk.bf16.mxu1 %vm2723_vm2, %v2721_v0 }
  0x67   : > { %2364 = vmatmul.mubr.msk.bf16.gmra.mrb[40].mxu0 %vm505_vm3, %v2610_v26  ;;  %2452 = vmatmul.mubr.msk.bf16.gmra.mrb[40].mxu1 %vm505_vm3, %v2611_v27 }
  0x68   : > { %2367 = vmatprep.mubr.msk.bf16.mxu0 %vm2723_vm2, %v2721_v0  ;;  %2455 = vmatprep.mubr.msk.bf16.mxu1 %vm2723_vm2, %v2721_v0 }
  0x6f   : > { %2368 = vmatmul.mubr.msk.bf16.gmra.mrb[44].mxu0 %vm505_vm3, %v2612_v28  ;;  %2456 = vmatmul.mubr.msk.bf16.gmra.mrb[44].mxu1 %vm505_vm3, %v2613_v29 }
  0x70   : > { %2371 = vmatprep.mubr.msk.bf16.mxu0 %vm2723_vm2, %v2721_v0  ;;  %2459 = vmatprep.mubr.msk.bf16.mxu1 %vm2723_vm2, %v2721_v0 }
  0x77   : > { %2372 = vmatmul.mubr.msk.bf16.gmra.mrb[48].mxu0 %vm505_vm3, %v2614_v30  ;;  %2460 = vmatmul.mubr.msk.bf16.gmra.mrb[48].mxu1 %vm505_vm3, %v2615_v31 }
  0x78   : > { %2375 = vmatprep.mubr.msk.bf16.mxu0 %vm2723_vm2, %v2721_v0  ;;  %2463 = vmatprep.mubr.msk.bf16.mxu1 %vm2723_vm2, %v2721_v0 }
  0x7f   : > { %2376 = vmatmul.mubr.msk.bf16.gmra.mrb[52].mxu0 %vm505_vm3, %v2616_v32  ;;  %2464 = vmatmul.mubr.msk.bf16.gmra.mrb[52].mxu1 %vm505_vm3, %v2617_v33 }
  0x80   : > { %2379 = vmatprep.mubr.msk.bf16.mxu0 %vm2723_vm2, %v2721_v0  ;;  %2467 = vmatprep.mubr.msk.bf16.mxu1 %vm2723_vm2, %v2721_v0 }
  0x87   : > { %2380 = vmatmul.mubr.msk.bf16.gmra.mrb[56].mxu0 %vm505_vm3, %v2618_v34  ;;  %2468 = vmatmul.mubr.msk.bf16.gmra.mrb[56].mxu1 %vm505_vm3, %v2619_v35 }
  0x88   : > { %2383 = vmatprep.mubr.msk.bf16.mxu0 %vm2723_vm2, %v2721_v0  ;;  %2471 = vmatprep.mubr.msk.bf16.mxu1 %vm2723_vm2, %v2721_v0 }
  0x8f   : > { %2384 = vmatmul.mubr.msk.bf16.gmra.mrb[60].mxu0 %vm505_vm3, %v2620_v36  ;;  %2472 = vmatmul.mubr.msk.bf16.gmra.mrb[60].mxu1 %vm505_vm3, %v2621_v37 }
  0x90   : > { %2387 = vmatprep.mubr.msk.bf16.mxu0 %vm2723_vm2, %v2721_v0  ;;  %2475 = vmatprep.mubr.msk.bf16.mxu1 %vm2723_vm2, %v2721_v0 }
  0x97   : > { %2388 = vmatmul.mubr.msk.bf16.gmra.mrb[64].mxu0 %vm505_vm3, %v2622_v38  ;;  %2476 = vmatmul.mubr.msk.bf16.gmra.mrb[64].mxu1 %vm505_vm3, %v2623_v39 }
  0x98   : > { %2391 = vmatprep.mubr.msk.bf16.mxu0 %vm2723_vm2, %v2721_v0  ;;  %2479 = vmatprep.mubr.msk.bf16.mxu1 %vm2723_vm2, %v2721_v0 }
  0x9f   : > { %2392 = vmatmul.mubr.msk.bf16.gmra.mrb[68].mxu0 %vm505_vm3, %v2624_v40  ;;  %2480 = vmatmul.mubr.msk.bf16.gmra.mrb[68].mxu1 %vm505_vm3, %v2625_v41 }
  0xa0   : > { %2395 = vmatprep.mubr.msk.bf16.mxu0 %vm2723_vm2, %v2721_v0  ;;  %2483 = vmatprep.mubr.msk.bf16.mxu1 %vm2723_vm2, %v2721_v0 }
  0xa7   : > { %2396 = vmatmul.mubr.msk.bf16.gmra.mrb[72].mxu0 %vm505_vm3, %v2626_v42  ;;  %2484 = vmatmul.mubr.msk.bf16.gmra.mrb[72].mxu1 %vm505_vm3, %v2627_v43 }
  0xa8   : > { %2399 = vmatprep.mubr.msk.bf16.mxu0 %vm2723_vm2, %v2721_v0  ;;  %2487 = vmatprep.mubr.msk.bf16.mxu1 %vm2723_vm2, %v2721_v0 }
  0xaf   : > { %2400 = vmatmul.mubr.msk.bf16.gmra.mrb[76].mxu0 %vm505_vm3, %v2628_v44  ;;  %2488 = vmatmul.mubr.msk.bf16.gmra.mrb[76].mxu1 %vm505_vm3, %v2629_v45 }
  0xb0   : > { %2403 = vmatprep.mubr.msk.bf16.mxu0 %vm2723_vm2, %v2721_v0  ;;  %2491 = vmatprep.mubr.msk.bf16.mxu1 %vm2723_vm2, %v2721_v0 }
  0xb7   : > { %2404 = vmatmul.mubr.msk.bf16.gmra.mrb[80].mxu0 %vm505_vm3, %v2630_v46  ;;  %2492 = vmatmul.mubr.msk.bf16.gmra.mrb[80].mxu1 %vm505_vm3, %v2631_v47 }
  0xb8   : > { %2407 = vmatprep.mubr.msk.bf16.mxu0 %vm2723_vm2, %v2721_v0 }
  0xbf   : > { %2408 = vmatmul.mubr.msk.bf16.gmra.mrb[84].mxu0 %vm505_vm3, %v2632_v48 }
  0xea   : > { %v676_v50 = vpop.f32.mrb[0].mxu0  ;;  %v852_v53 = vpop.f32.mrb[0].mxu1 }
  0xeb   : > { %v677_v51 = vadd.f32 %v2964_v49, %v676_v50  ;;  %v2325_v52 = vpop.f32.mrb[1].mxu0  ;;  %v853_v55 = vadd.f32 %v2964_v49, %v852_v53  ;;  %v2413_v56 = vpop.f32.mrb[1].mxu1 }
  0xec   : > { %v679_v54 = vpop.f32.mrb[2].mxu0  ;;  %v855_v60 = vpop.f32.mrb[2].mxu1 }
  0xed   : > { %v1018_v57 = vmax.f32 %v677_v51, 0.0  ;;  %v680_v58 = vadd.f32 %v2964_v49, %v679_v54  ;;  %v2326_v59 = vpop.f32.mrb[3].mxu0  ;;  %v1062_v61 = vmax.f32 %v853_v55, 0.0  ;;  %v856_v62 = vadd.f32 %v2964_v49, %v855_v60  ;;  %v2414_v63 = vpop.f32.mrb[3].mxu1 }
  0xef   : > { %v2189_v0 = vpack.c.bf16 %v1018_v57, %v1018_v57  ;;  %v1019_v1 = vmax.f32 %v680_v58, 0.0  ;;  %v2233_v2 = vpack.c.bf16 %v1062_v61, %v1062_v61  ;;  %v1063_v3 = vmax.f32 %v856_v62, 0.0 }
  0xf1   : > { %1445 = vst.msk [vmem:[%s2970_s6] sm:$0xf] %vm1444_vm4, %v2189_v0  ;;  %v2190_v4 = vpack.c.bf16 %v1019_v1, %v1019_v1  ;;  %1489 = vst.msk [vmem:[%s2970_s6 + $0xb0] sm:$0xf] %vm1444_vm4, %v2233_v2  ;;  %v2234_v6 = vpack.c.bf16 %v1063_v3, %v1063_v3 }
  0xf2   : > { %v684_v5 = vpop.f32.mrb[4].mxu0  ;;  %v860_v9 = vpop.f32.mrb[4].mxu1 }
  0xf3   : > { %1446 = vst.msk [vmem:[%s2970_s6 + $0x4] sm:$0xf] %vm1444_vm4, %v2190_v4  ;;  %v685_v7 = vadd.f32 %v2964_v49, %v684_v5  ;;  %v2329_v8 = vpop.f32.mrb[5].mxu0  ;;  %1490 = vst.msk [vmem:[%s2970_s6 + $0xb4] sm:$0xf] %vm1444_vm4, %v2234_v6  ;;  %v861_v11 = vadd.f32 %v2964_v49, %v860_v9  ;;  %v2417_v12 = vpop.f32.mrb[5].mxu1 }
  0xf4   : > { %v687_v10 = vpop.f32.mrb[6].mxu0  ;;  %v863_v16 = vpop.f32.mrb[6].mxu1 }
  0xf5   : > { %v1020_v13 = vmax.f32 %v685_v7, 0.0  ;;  %v688_v14 = vadd.f32 %v2964_v49, %v687_v10  ;;  %v2330_v15 = vpop.f32.mrb[7].mxu0  ;;  %v1064_v17 = vmax.f32 %v861_v11, 0.0  ;;  %v864_v18 = vadd.f32 %v2964_v49, %v863_v16  ;;  %v2418_v19 = vpop.f32.mrb[7].mxu1 }
  0xf7   : > { %v2191_v20 = vpack.c.bf16 %v1020_v13, %v1020_v13  ;;  %v1021_v21 = vmax.f32 %v688_v14, 0.0  ;;  %v2235_v22 = vpack.c.bf16 %v1064_v17, %v1064_v17  ;;  %v1065_v23 = vmax.f32 %v864_v18, 0.0 }
  0xf9   : > { %1447 = vst.msk [vmem:[%s2970_s6 + $0x8] sm:$0xf] %vm1444_vm4, %v2191_v20  ;;  %v2192_v24 = vpack.c.bf16 %v1021_v21, %v1021_v21  ;;  %1491 = vst.msk [vmem:[%s2970_s6 + $0xb8] sm:$0xf] %vm1444_vm4, %v2235_v22  ;;  %v2236_v26 = vpack.c.bf16 %v1065_v23, %v1065_v23 }
  0xfa   : > { %v692_v25 = vpop.f32.mrb[8].mxu0  ;;  %v868_v29 = vpop.f32.mrb[8].mxu1 }
  0xfb   : > { %1448 = vst.msk [vmem:[%s2970_s6 + $0xc] sm:$0xf] %vm1444_vm4, %v2192_v24  ;;  %v693_v27 = vadd.f32 %v2964_v49, %v692_v25  ;;  %v2333_v28 = vpop.f32.mrb[9].mxu0  ;;  %1492 = vst.msk [vmem:[%s2970_s6 + $0xbc] sm:$0xf] %vm1444_vm4, %v2236_v26  ;;  %v869_v31 = vadd.f32 %v2964_v49, %v868_v29  ;;  %v2421_v32 = vpop.f32.mrb[9].mxu1 }
  0xfc   : > { %v695_v30 = vpop.f32.mrb[10].mxu0  ;;  %v871_v36 = vpop.f32.mrb[10].mxu1 }
  0xfd   : > { %v1022_v33 = vmax.f32 %v693_v27, 0.0  ;;  %v696_v34 = vadd.f32 %v2964_v49, %v695_v30  ;;  %v2334_v35 = vpop.f32.mrb[11].mxu0  ;;  %v1066_v37 = vmax.f32 %v869_v31, 0.0  ;;  %v872_v38 = vadd.f32 %v2964_v49, %v871_v36  ;;  %v2422_v39 = vpop.f32.mrb[11].mxu1 }
  0xff   : > { %v2193_v40 = vpack.c.bf16 %v1022_v33, %v1022_v33  ;;  %v1023_v41 = vmax.f32 %v696_v34, 0.0  ;;  %v2237_v42 = vpack.c.bf16 %v1066_v37, %v1066_v37  ;;  %v1067_v43 = vmax.f32 %v872_v38, 0.0 }
 0x101   : > { %1449 = vst.msk [vmem:[%s2970_s6 + $0x10] sm:$0xf] %vm1444_vm4, %v2193_v40  ;;  %v2194_v44 = vpack.c.bf16 %v1023_v41, %v1023_v41  ;;  %1493 = vst.msk [vmem:[%s2970_s6 + $0xc0] sm:$0xf] %vm1444_vm4, %v2237_v42  ;;  %v2238_v46 = vpack.c.bf16 %v1067_v43, %v1067_v43 }
 0x102   : > { %v700_v45 = vpop.f32.mrb[12].mxu0  ;;  %v876_v50 = vpop.f32.mrb[12].mxu1 }
 0x103   : > { %1450 = vst.msk [vmem:[%s2970_s6 + $0x14] sm:$0xf] %vm1444_vm4, %v2194_v44  ;;  %v701_v47 = vadd.f32 %v2964_v49, %v700_v45  ;;  %v2337_v48 = vpop.f32.mrb[13].mxu0  ;;  %1494 = vst.msk [vmem:[%s2970_s6 + $0xc4] sm:$0xf] %vm1444_vm4, %v2238_v46  ;;  %v877_v52 = vadd.f32 %v2964_v49, %v876_v50  ;;  %v2425_v53 = vpop.f32.mrb[13].mxu1 }
 0x104   : > { %v703_v51 = vpop.f32.mrb[14].mxu0  ;;  %v879_v57 = vpop.f32.mrb[14].mxu1 }
 0x105   : > { %v1024_v54 = vmax.f32 %v701_v47, 0.0  ;;  %v704_v55 = vadd.f32 %v2964_v49, %v703_v51  ;;  %v2338_v56 = vpop.f32.mrb[15].mxu0  ;;  %v1068_v58 = vmax.f32 %v877_v52, 0.0  ;;  %v880_v59 = vadd.f32 %v2964_v49, %v879_v57  ;;  %v2426_v60 = vpop.f32.mrb[15].mxu1 }
 0x107   : > { %v2195_v61 = vpack.c.bf16 %v1024_v54, %v1024_v54  ;;  %v1025_v62 = vmax.f32 %v704_v55, 0.0  ;;  %v2239_v63 = vpack.c.bf16 %v1068_v58, %v1068_v58  ;;  %v1069_v0 = vmax.f32 %v880_v59, 0.0 }
 0x109   : > { %1451 = vst.msk [vmem:[%s2970_s6 + $0x18] sm:$0xf] %vm1444_vm4, %v2195_v61  ;;  %v2196_v1 = vpack.c.bf16 %v1025_v62, %v1025_v62  ;;  %1495 = vst.msk [vmem:[%s2970_s6 + $0xc8] sm:$0xf] %vm1444_vm4, %v2239_v63  ;;  %v2240_v3 = vpack.c.bf16 %v1069_v0, %v1069_v0 }
 0x10a   : > { %v708_v2 = vpop.f32.mrb[16].mxu0  ;;  %v884_v6 = vpop.f32.mrb[16].mxu1 }
 0x10b   : > { %1452 = vst.msk [vmem:[%s2970_s6 + $0x1c] sm:$0xf] %vm1444_vm4, %v2196_v1  ;;  %v709_v4 = vadd.f32 %v2964_v49, %v708_v2  ;;  %v2341_v5 = vpop.f32.mrb[17].mxu0  ;;  %1496 = vst.msk [vmem:[%s2970_s6 + $0xcc] sm:$0xf] %vm1444_vm4, %v2240_v3  ;;  %v885_v8 = vadd.f32 %v2964_v49, %v884_v6  ;;  %v2429_v9 = vpop.f32.mrb[17].mxu1 }
 0x10c   : > { %v711_v7 = vpop.f32.mrb[18].mxu0  ;;  %v887_v13 = vpop.f32.mrb[18].mxu1 }
 0x10d   : > { %v1026_v10 = vmax.f32 %v709_v4, 0.0  ;;  %v712_v11 = vadd.f32 %v2964_v49, %v711_v7  ;;  %v2342_v12 = vpop.f32.mrb[19].mxu0  ;;  %v1070_v14 = vmax.f32 %v885_v8, 0.0  ;;  %v888_v15 = vadd.f32 %v2964_v49, %v887_v13  ;;  %v2430_v16 = vpop.f32.mrb[19].mxu1 }
 0x10f   : > { %v2197_v17 = vpack.c.bf16 %v1026_v10, %v1026_v10  ;;  %v1027_v18 = vmax.f32 %v712_v11, 0.0  ;;  %v2241_v19 = vpack.c.bf16 %v1070_v14, %v1070_v14  ;;  %v1071_v20 = vmax.f32 %v888_v15, 0.0 }
 0x111   : > { %1453 = vst.msk [vmem:[%s2970_s6 + $0x20] sm:$0xf] %vm1444_vm4, %v2197_v17  ;;  %v2198_v21 = vpack.c.bf16 %v1027_v18, %v1027_v18  ;;  %1497 = vst.msk [vmem:[%s2970_s6 + $0xd0] sm:$0xf] %vm1444_vm4, %v2241_v19  ;;  %v2242_v23 = vpack.c.bf16 %v1071_v20, %v1071_v20 }
 0x112   : > { %v716_v22 = vpop.f32.mrb[20].mxu0  ;;  %v892_v26 = vpop.f32.mrb[20].mxu1 }
 0x113   : > { %1454 = vst.msk [vmem:[%s2970_s6 + $0x24] sm:$0xf] %vm1444_vm4, %v2198_v21  ;;  %v717_v24 = vadd.f32 %v2964_v49, %v716_v22  ;;  %v2345_v25 = vpop.f32.mrb[21].mxu0  ;;  %1498 = vst.msk [vmem:[%s2970_s6 + $0xd4] sm:$0xf] %vm1444_vm4, %v2242_v23  ;;  %v893_v28 = vadd.f32 %v2964_v49, %v892_v26  ;;  %v2433_v29 = vpop.f32.mrb[21].mxu1 }
 0x114   : > { %v719_v27 = vpop.f32.mrb[22].mxu0  ;;  %v895_v33 = vpop.f32.mrb[22].mxu1 }
 0x115   : > { %v1028_v30 = vmax.f32 %v717_v24, 0.0  ;;  %v720_v31 = vadd.f32 %v2964_v49, %v719_v27  ;;  %v2346_v32 = vpop.f32.mrb[23].mxu0  ;;  %v1072_v34 = vmax.f32 %v893_v28, 0.0  ;;  %v896_v35 = vadd.f32 %v2964_v49, %v895_v33  ;;  %v2434_v36 = vpop.f32.mrb[23].mxu1 }
 0x117   : > { %v2199_v37 = vpack.c.bf16 %v1028_v30, %v1028_v30  ;;  %v1029_v38 = vmax.f32 %v720_v31, 0.0  ;;  %v2243_v39 = vpack.c.bf16 %v1072_v34, %v1072_v34  ;;  %v1073_v40 = vmax.f32 %v896_v35, 0.0 }
 0x119   : > { %1455 = vst.msk [vmem:[%s2970_s6 + $0x28] sm:$0xf] %vm1444_vm4, %v2199_v37  ;;  %v2200_v41 = vpack.c.bf16 %v1029_v38, %v1029_v38  ;;  %1499 = vst.msk [vmem:[%s2970_s6 + $0xd8] sm:$0xf] %vm1444_vm4, %v2243_v39  ;;  %v2244_v43 = vpack.c.bf16 %v1073_v40, %v1073_v40 }
 0x11a   : > { %v724_v42 = vpop.f32.mrb[24].mxu0  ;;  %v900_v46 = vpop.f32.mrb[24].mxu1 }
 0x11b   : > { %1456 = vst.msk [vmem:[%s2970_s6 + $0x2c] sm:$0xf] %vm1444_vm4, %v2200_v41  ;;  %v725_v44 = vadd.f32 %v2964_v49, %v724_v42  ;;  %v2349_v45 = vpop.f32.mrb[25].mxu0  ;;  %1500 = vst.msk [vmem:[%s2970_s6 + $0xdc] sm:$0xf] %vm1444_vm4, %v2244_v43  ;;  %v901_v48 = vadd.f32 %v2964_v49, %v900_v46  ;;  %v2437_v50 = vpop.f32.mrb[25].mxu1 }
 0x11c   : > { %v727_v47 = vpop.f32.mrb[26].mxu0  ;;  %v903_v54 = vpop.f32.mrb[26].mxu1 }
 0x11d   : > { %v1030_v51 = vmax.f32 %v725_v44, 0.0  ;;  %v728_v52 = vadd.f32 %v2964_v49, %v727_v47  ;;  %v2350_v53 = vpop.f32.mrb[27].mxu0  ;;  %v1074_v55 = vmax.f32 %v901_v48, 0.0  ;;  %v904_v56 = vadd.f32 %v2964_v49, %v903_v54  ;;  %v2438_v57 = vpop.f32.mrb[27].mxu1 }
 0x11f   : > { %v2201_v58 = vpack.c.bf16 %v1030_v51, %v1030_v51  ;;  %v1031_v59 = vmax.f32 %v728_v52, 0.0  ;;  %v2245_v60 = vpack.c.bf16 %v1074_v55, %v1074_v55  ;;  %v1075_v61 = vmax.f32 %v904_v56, 0.0 }
 0x121   : > { %1457 = vst.msk [vmem:[%s2970_s6 + $0x30] sm:$0xf] %vm1444_vm4, %v2201_v58  ;;  %v2202_v62 = vpack.c.bf16 %v1031_v59, %v1031_v59  ;;  %1501 = vst.msk [vmem:[%s2970_s6 + $0xe0] sm:$0xf] %vm1444_vm4, %v2245_v60  ;;  %v2246_v0 = vpack.c.bf16 %v1075_v61, %v1075_v61 }
 0x122   : > { %v732_v63 = vpop.f32.mrb[28].mxu0  ;;  %v908_v3 = vpop.f32.mrb[28].mxu1 }
 0x123   : > { %1458 = vst.msk [vmem:[%s2970_s6 + $0x34] sm:$0xf] %vm1444_vm4, %v2202_v62  ;;  %v733_v1 = vadd.f32 %v2964_v49, %v732_v63  ;;  %v2353_v2 = vpop.f32.mrb[29].mxu0  ;;  %1502 = vst.msk [vmem:[%s2970_s6 + $0xe4] sm:$0xf] %vm1444_vm4, %v2246_v0  ;;  %v909_v5 = vadd.f32 %v2964_v49, %v908_v3  ;;  %v2441_v6 = vpop.f32.mrb[29].mxu1 }
 0x124   : > { %v735_v4 = vpop.f32.mrb[30].mxu0  ;;  %v911_v10 = vpop.f32.mrb[30].mxu1 }
 0x125   : > { %v1032_v7 = vmax.f32 %v733_v1, 0.0  ;;  %v736_v8 = vadd.f32 %v2964_v49, %v735_v4  ;;  %v2354_v9 = vpop.f32.mrb[31].mxu0  ;;  %v1076_v11 = vmax.f32 %v909_v5, 0.0  ;;  %v912_v12 = vadd.f32 %v2964_v49, %v911_v10  ;;  %v2442_v13 = vpop.f32.mrb[31].mxu1 }
 0x127   : > { %v2203_v14 = vpack.c.bf16 %v1032_v7, %v1032_v7  ;;  %v1033_v15 = vmax.f32 %v736_v8, 0.0  ;;  %v2247_v16 = vpack.c.bf16 %v1076_v11, %v1076_v11  ;;  %v1077_v17 = vmax.f32 %v912_v12, 0.0 }
 0x129   : > { %1459 = vst.msk [vmem:[%s2970_s6 + $0x38] sm:$0xf] %vm1444_vm4, %v2203_v14  ;;  %v2204_v18 = vpack.c.bf16 %v1033_v15, %v1033_v15  ;;  %1503 = vst.msk [vmem:[%s2970_s6 + $0xe8] sm:$0xf] %vm1444_vm4, %v2247_v16  ;;  %v2248_v20 = vpack.c.bf16 %v1077_v17, %v1077_v17 }
 0x12a   : > { %v740_v19 = vpop.f32.mrb[32].mxu0  ;;  %v916_v23 = vpop.f32.mrb[32].mxu1 }
 0x12b   : > { %1460 = vst.msk [vmem:[%s2970_s6 + $0x3c] sm:$0xf] %vm1444_vm4, %v2204_v18  ;;  %v741_v21 = vadd.f32 %v2964_v49, %v740_v19  ;;  %v2357_v22 = vpop.f32.mrb[33].mxu0  ;;  %1504 = vst.msk [vmem:[%s2970_s6 + $0xec] sm:$0xf] %vm1444_vm4, %v2248_v20  ;;  %v917_v25 = vadd.f32 %v2964_v49, %v916_v23  ;;  %v2445_v26 = vpop.f32.mrb[33].mxu1 }
 0x12c   : > { %v743_v24 = vpop.f32.mrb[34].mxu0  ;;  %v919_v30 = vpop.f32.mrb[34].mxu1 }
 0x12d   : > { %v1034_v27 = vmax.f32 %v741_v21, 0.0  ;;  %v744_v28 = vadd.f32 %v2964_v49, %v743_v24  ;;  %v2358_v29 = vpop.f32.mrb[35].mxu0  ;;  %v1078_v31 = vmax.f32 %v917_v25, 0.0  ;;  %v920_v32 = vadd.f32 %v2964_v49, %v919_v30  ;;  %v2446_v33 = vpop.f32.mrb[35].mxu1 }
 0x12f   : > { %v2205_v34 = vpack.c.bf16 %v1034_v27, %v1034_v27  ;;  %v1035_v35 = vmax.f32 %v744_v28, 0.0  ;;  %v2249_v36 = vpack.c.bf16 %v1078_v31, %v1078_v31  ;;  %v1079_v37 = vmax.f32 %v920_v32, 0.0 }
 0x131   : > { %1461 = vst.msk [vmem:[%s2970_s6 + $0x40] sm:$0xf] %vm1444_vm4, %v2205_v34  ;;  %v2206_v38 = vpack.c.bf16 %v1035_v35, %v1035_v35  ;;  %1505 = vst.msk [vmem:[%s2970_s6 + $0xf0] sm:$0xf] %vm1444_vm4, %v2249_v36  ;;  %v2250_v40 = vpack.c.bf16 %v1079_v37, %v1079_v37 }
 0x132   : > { %v748_v39 = vpop.f32.mrb[36].mxu0  ;;  %v924_v43 = vpop.f32.mrb[36].mxu1 }
 0x133   : > { %1462 = vst.msk [vmem:[%s2970_s6 + $0x44] sm:$0xf] %vm1444_vm4, %v2206_v38  ;;  %v749_v41 = vadd.f32 %v2964_v49, %v748_v39  ;;  %v2361_v42 = vpop.f32.mrb[37].mxu0  ;;  %1506 = vst.msk [vmem:[%s2970_s6 + $0xf4] sm:$0xf] %vm1444_vm4, %v2250_v40  ;;  %v925_v45 = vadd.f32 %v2964_v49, %v924_v43  ;;  %v2449_v46 = vpop.f32.mrb[37].mxu1 }
 0x134   : > { %v751_v44 = vpop.f32.mrb[38].mxu0  ;;  %v927_v51 = vpop.f32.mrb[38].mxu1 }
 0x135   : > { %v1036_v47 = vmax.f32 %v749_v41, 0.0  ;;  %v752_v48 = vadd.f32 %v2964_v49, %v751_v44  ;;  %v2362_v50 = vpop.f32.mrb[39].mxu0  ;;  %v1080_v52 = vmax.f32 %v925_v45, 0.0  ;;  %v928_v53 = vadd.f32 %v2964_v49, %v927_v51  ;;  %v2450_v54 = vpop.f32.mrb[39].mxu1 }
 0x137   : > { %v2207_v55 = vpack.c.bf16 %v1036_v47, %v1036_v47  ;;  %v1037_v56 = vmax.f32 %v752_v48, 0.0  ;;  %v2251_v57 = vpack.c.bf16 %v1080_v52, %v1080_v52  ;;  %v1081_v58 = vmax.f32 %v928_v53, 0.0 }
 0x139   : > { %1463 = vst.msk [vmem:[%s2970_s6 + $0x48] sm:$0xf] %vm1444_vm4, %v2207_v55  ;;  %v2208_v59 = vpack.c.bf16 %v1037_v56, %v1037_v56  ;;  %1507 = vst.msk [vmem:[%s2970_s6 + $0xf8] sm:$0xf] %vm1444_vm4, %v2251_v57  ;;  %v2252_v61 = vpack.c.bf16 %v1081_v58, %v1081_v58 }
 0x13a   : > { %v756_v60 = vpop.f32.mrb[40].mxu0  ;;  %v932_v0 = vpop.f32.mrb[40].mxu1 }
 0x13b   : > { %1464 = vst.msk [vmem:[%s2970_s6 + $0x4c] sm:$0xf] %vm1444_vm4, %v2208_v59  ;;  %v757_v62 = vadd.f32 %v2964_v49, %v756_v60  ;;  %v2365_v63 = vpop.f32.mrb[41].mxu0  ;;  %1508 = vst.msk [vmem:[%s2970_s6 + $0xfc] sm:$0xf] %vm1444_vm4, %v2252_v61  ;;  %v933_v2 = vadd.f32 %v2964_v49, %v932_v0  ;;  %v2453_v3 = vpop.f32.mrb[41].mxu1 }
 0x13c   : > { %v759_v1 = vpop.f32.mrb[42].mxu0  ;;  %v935_v7 = vpop.f32.mrb[42].mxu1 }
 0x13d   : > { %v1038_v4 = vmax.f32 %v757_v62, 0.0  ;;  %v760_v5 = vadd.f32 %v2964_v49, %v759_v1  ;;  %v2366_v6 = vpop.f32.mrb[43].mxu0  ;;  %v1082_v8 = vmax.f32 %v933_v2, 0.0  ;;  %v936_v9 = vadd.f32 %v2964_v49, %v935_v7  ;;  %v2454_v10 = vpop.f32.mrb[43].mxu1 }
 0x13f   : > { %v2209_v11 = vpack.c.bf16 %v1038_v4, %v1038_v4  ;;  %v1039_v12 = vmax.f32 %v760_v5, 0.0  ;;  %v2253_v13 = vpack.c.bf16 %v1082_v8, %v1082_v8  ;;  %v1083_v14 = vmax.f32 %v936_v9, 0.0 }
 0x141   : > { %1465 = vst.msk [vmem:[%s2970_s6 + $0x50] sm:$0xf] %vm1444_vm4, %v2209_v11  ;;  %v2210_v15 = vpack.c.bf16 %v1039_v12, %v1039_v12  ;;  %1509 = vst.msk [vmem:[%s2970_s6 + $0x100] sm:$0xf] %vm1444_vm4, %v2253_v13  ;;  %v2254_v17 = vpack.c.bf16 %v1083_v14, %v1083_v14 }
 0x142   : > { %v764_v16 = vpop.f32.mrb[44].mxu0  ;;  %v940_v20 = vpop.f32.mrb[44].mxu1 }
 0x143   : > { %1466 = vst.msk [vmem:[%s2970_s6 + $0x54] sm:$0xf] %vm1444_vm4, %v2210_v15  ;;  %v765_v18 = vadd.f32 %v2964_v49, %v764_v16  ;;  %v2369_v19 = vpop.f32.mrb[45].mxu0  ;;  %1510 = vst.msk [vmem:[%s2970_s6 + $0x104] sm:$0xf] %vm1444_vm4, %v2254_v17  ;;  %v941_v22 = vadd.f32 %v2964_v49, %v940_v20  ;;  %v2457_v23 = vpop.f32.mrb[45].mxu1 }
 0x144   : > { %v767_v21 = vpop.f32.mrb[46].mxu0  ;;  %v943_v27 = vpop.f32.mrb[46].mxu1 }
 0x145   : > { %v1040_v24 = vmax.f32 %v765_v18, 0.0  ;;  %v768_v25 = vadd.f32 %v2964_v49, %v767_v21  ;;  %v2370_v26 = vpop.f32.mrb[47].mxu0  ;;  %v1084_v28 = vmax.f32 %v941_v22, 0.0  ;;  %v944_v29 = vadd.f32 %v2964_v49, %v943_v27  ;;  %v2458_v30 = vpop.f32.mrb[47].mxu1 }
 0x147   : > { %v2211_v31 = vpack.c.bf16 %v1040_v24, %v1040_v24  ;;  %v1041_v32 = vmax.f32 %v768_v25, 0.0  ;;  %v2255_v33 = vpack.c.bf16 %v1084_v28, %v1084_v28  ;;  %v1085_v34 = vmax.f32 %v944_v29, 0.0 }
 0x149   : > { %1467 = vst.msk [vmem:[%s2970_s6 + $0x58] sm:$0xf] %vm1444_vm4, %v2211_v31  ;;  %v2212_v35 = vpack.c.bf16 %v1041_v32, %v1041_v32  ;;  %1511 = vst.msk [vmem:[%s2970_s6 + $0x108] sm:$0xf] %vm1444_vm4, %v2255_v33  ;;  %v2256_v37 = vpack.c.bf16 %v1085_v34, %v1085_v34 }
 0x14a   : > { %v772_v36 = vpop.f32.mrb[48].mxu0  ;;  %v948_v40 = vpop.f32.mrb[48].mxu1 }
 0x14b   : > { %1468 = vst.msk [vmem:[%s2970_s6 + $0x5c] sm:$0xf] %vm1444_vm4, %v2212_v35  ;;  %v773_v38 = vadd.f32 %v2964_v49, %v772_v36  ;;  %v2373_v39 = vpop.f32.mrb[49].mxu0  ;;  %1512 = vst.msk [vmem:[%s2970_s6 + $0x10c] sm:$0xf] %vm1444_vm4, %v2256_v37  ;;  %v949_v42 = vadd.f32 %v2964_v49, %v948_v40  ;;  %v2461_v43 = vpop.f32.mrb[49].mxu1 }
 0x14c   : > { %v775_v41 = vpop.f32.mrb[50].mxu0  ;;  %v951_v47 = vpop.f32.mrb[50].mxu1 }
 0x14d   : > { %v1042_v44 = vmax.f32 %v773_v38, 0.0  ;;  %v776_v45 = vadd.f32 %v2964_v49, %v775_v41  ;;  %v2374_v46 = vpop.f32.mrb[51].mxu0  ;;  %v1086_v48 = vmax.f32 %v949_v42, 0.0  ;;  %v952_v50 = vadd.f32 %v2964_v49, %v951_v47  ;;  %v2462_v51 = vpop.f32.mrb[51].mxu1 }
 0x14f   : > { %v2213_v52 = vpack.c.bf16 %v1042_v44, %v1042_v44  ;;  %v1043_v53 = vmax.f32 %v776_v45, 0.0  ;;  %v2257_v54 = vpack.c.bf16 %v1086_v48, %v1086_v48  ;;  %v1087_v55 = vmax.f32 %v952_v50, 0.0 }
 0x151   : > { %1469 = vst.msk [vmem:[%s2970_s6 + $0x60] sm:$0xf] %vm1444_vm4, %v2213_v52  ;;  %v2214_v56 = vpack.c.bf16 %v1043_v53, %v1043_v53  ;;  %1513 = vst.msk [vmem:[%s2970_s6 + $0x110] sm:$0xf] %vm1444_vm4, %v2257_v54  ;;  %v2258_v58 = vpack.c.bf16 %v1087_v55, %v1087_v55 }
 0x152   : > { %v780_v57 = vpop.f32.mrb[52].mxu0  ;;  %v956_v61 = vpop.f32.mrb[52].mxu1 }
 0x153   : > { %1470 = vst.msk [vmem:[%s2970_s6 + $0x64] sm:$0xf] %vm1444_vm4, %v2214_v56  ;;  %v781_v59 = vadd.f32 %v2964_v49, %v780_v57  ;;  %v2377_v60 = vpop.f32.mrb[53].mxu0  ;;  %1514 = vst.msk [vmem:[%s2970_s6 + $0x114] sm:$0xf] %vm1444_vm4, %v2258_v58  ;;  %v957_v63 = vadd.f32 %v2964_v49, %v956_v61  ;;  %v2465_v0 = vpop.f32.mrb[53].mxu1 }
 0x154   : > { %v783_v62 = vpop.f32.mrb[54].mxu0  ;;  %v959_v4 = vpop.f32.mrb[54].mxu1 }
 0x155   : > { %v1044_v1 = vmax.f32 %v781_v59, 0.0  ;;  %v784_v2 = vadd.f32 %v2964_v49, %v783_v62  ;;  %v2378_v3 = vpop.f32.mrb[55].mxu0  ;;  %v1088_v5 = vmax.f32 %v957_v63, 0.0  ;;  %v960_v6 = vadd.f32 %v2964_v49, %v959_v4  ;;  %v2466_v7 = vpop.f32.mrb[55].mxu1 }
 0x157   : > { %v2215_v8 = vpack.c.bf16 %v1044_v1, %v1044_v1  ;;  %v1045_v9 = vmax.f32 %v784_v2, 0.0  ;;  %v2259_v10 = vpack.c.bf16 %v1088_v5, %v1088_v5  ;;  %v1089_v11 = vmax.f32 %v960_v6, 0.0 }
 0x159   : > { %1471 = vst.msk [vmem:[%s2970_s6 + $0x68] sm:$0xf] %vm1444_vm4, %v2215_v8  ;;  %v2216_v12 = vpack.c.bf16 %v1045_v9, %v1045_v9  ;;  %1515 = vst.msk [vmem:[%s2970_s6 + $0x118] sm:$0xf] %vm1444_vm4, %v2259_v10  ;;  %v2260_v14 = vpack.c.bf16 %v1089_v11, %v1089_v11 }
 0x15a   : > { %v788_v13 = vpop.f32.mrb[56].mxu0  ;;  %v964_v17 = vpop.f32.mrb[56].mxu1 }
 0x15b   : > { %1472 = vst.msk [vmem:[%s2970_s6 + $0x6c] sm:$0xf] %vm1444_vm4, %v2216_v12  ;;  %v789_v15 = vadd.f32 %v2964_v49, %v788_v13  ;;  %v2381_v16 = vpop.f32.mrb[57].mxu0  ;;  %1516 = vst.msk [vmem:[%s2970_s6 + $0x11c] sm:$0xf] %vm1444_vm4, %v2260_v14  ;;  %v965_v19 = vadd.f32 %v2964_v49, %v964_v17  ;;  %v2469_v20 = vpop.f32.mrb[57].mxu1 }
 0x15c   : > { %v791_v18 = vpop.f32.mrb[58].mxu0  ;;  %v967_v24 = vpop.f32.mrb[58].mxu1 }
 0x15d   : > { %v1046_v21 = vmax.f32 %v789_v15, 0.0  ;;  %v792_v22 = vadd.f32 %v2964_v49, %v791_v18  ;;  %v2382_v23 = vpop.f32.mrb[59].mxu0  ;;  %v1090_v25 = vmax.f32 %v965_v19, 0.0  ;;  %v968_v26 = vadd.f32 %v2964_v49, %v967_v24  ;;  %v2470_v27 = vpop.f32.mrb[59].mxu1 }
 0x15f   : > { %v2217_v28 = vpack.c.bf16 %v1046_v21, %v1046_v21  ;;  %v1047_v29 = vmax.f32 %v792_v22, 0.0  ;;  %v2261_v30 = vpack.c.bf16 %v1090_v25, %v1090_v25  ;;  %v1091_v31 = vmax.f32 %v968_v26, 0.0 }
 0x161   : > { %1473 = vst.msk [vmem:[%s2970_s6 + $0x70] sm:$0xf] %vm1444_vm4, %v2217_v28  ;;  %v2218_v32 = vpack.c.bf16 %v1047_v29, %v1047_v29  ;;  %1517 = vst.msk [vmem:[%s2970_s6 + $0x120] sm:$0xf] %vm1444_vm4, %v2261_v30  ;;  %v2262_v34 = vpack.c.bf16 %v1091_v31, %v1091_v31 }
 0x162   : > { %v796_v33 = vpop.f32.mrb[60].mxu0  ;;  %v972_v37 = vpop.f32.mrb[60].mxu1 }
 0x163   : > { %1474 = vst.msk [vmem:[%s2970_s6 + $0x74] sm:$0xf] %vm1444_vm4, %v2218_v32  ;;  %v797_v35 = vadd.f32 %v2964_v49, %v796_v33  ;;  %v2385_v36 = vpop.f32.mrb[61].mxu0  ;;  %1518 = vst.msk [vmem:[%s2970_s6 + $0x124] sm:$0xf] %vm1444_vm4, %v2262_v34  ;;  %v973_v39 = vadd.f32 %v2964_v49, %v972_v37  ;;  %v2473_v40 = vpop.f32.mrb[61].mxu1 }
 0x164   : > { %v799_v38 = vpop.f32.mrb[62].mxu0  ;;  %v975_v44 = vpop.f32.mrb[62].mxu1 }
 0x165   : > { %v1048_v41 = vmax.f32 %v797_v35, 0.0  ;;  %v800_v42 = vadd.f32 %v2964_v49, %v799_v38  ;;  %v2386_v43 = vpop.f32.mrb[63].mxu0  ;;  %v1092_v45 = vmax.f32 %v973_v39, 0.0  ;;  %v976_v46 = vadd.f32 %v2964_v49, %v975_v44  ;;  %v2474_v47 = vpop.f32.mrb[63].mxu1 }
 0x167   : > { %v2219_v48 = vpack.c.bf16 %v1048_v41, %v1048_v41  ;;  %v1049_v50 = vmax.f32 %v800_v42, 0.0  ;;  %v2263_v51 = vpack.c.bf16 %v1092_v45, %v1092_v45  ;;  %v1093_v52 = vmax.f32 %v976_v46, 0.0 }
 0x169   : > { %1475 = vst.msk [vmem:[%s2970_s6 + $0x78] sm:$0xf] %vm1444_vm4, %v2219_v48  ;;  %v2220_v53 = vpack.c.bf16 %v1049_v50, %v1049_v50  ;;  %1519 = vst.msk [vmem:[%s2970_s6 + $0x128] sm:$0xf] %vm1444_vm4, %v2263_v51  ;;  %v2264_v55 = vpack.c.bf16 %v1093_v52, %v1093_v52 }
 0x16a   : > { %v804_v54 = vpop.f32.mrb[64].mxu0  ;;  %v980_v58 = vpop.f32.mrb[64].mxu1 }
 0x16b   : > { %1476 = vst.msk [vmem:[%s2970_s6 + $0x7c] sm:$0xf] %vm1444_vm4, %v2220_v53  ;;  %v805_v56 = vadd.f32 %v2964_v49, %v804_v54  ;;  %v2389_v57 = vpop.f32.mrb[65].mxu0  ;;  %1520 = vst.msk [vmem:[%s2970_s6 + $0x12c] sm:$0xf] %vm1444_vm4, %v2264_v55  ;;  %v981_v60 = vadd.f32 %v2964_v49, %v980_v58  ;;  %v2477_v61 = vpop.f32.mrb[65].mxu1 }
 0x16c   : > { %v807_v59 = vpop.f32.mrb[66].mxu0  ;;  %v983_v1 = vpop.f32.mrb[66].mxu1 }
 0x16d   : > { %v1050_v62 = vmax.f32 %v805_v56, 0.0  ;;  %v808_v63 = vadd.f32 %v2964_v49, %v807_v59  ;;  %v2390_v0 = vpop.f32.mrb[67].mxu0  ;;  %v1094_v2 = vmax.f32 %v981_v60, 0.0  ;;  %v984_v3 = vadd.f32 %v2964_v49, %v983_v1  ;;  %v2478_v4 = vpop.f32.mrb[67].mxu1 }
 0x16f   : > { %v2221_v5 = vpack.c.bf16 %v1050_v62, %v1050_v62  ;;  %v1051_v6 = vmax.f32 %v808_v63, 0.0  ;;  %v2265_v7 = vpack.c.bf16 %v1094_v2, %v1094_v2  ;;  %v1095_v8 = vmax.f32 %v984_v3, 0.0 }
 0x171   : > { %1477 = vst.msk [vmem:[%s2970_s6 + $0x80] sm:$0xf] %vm1444_vm4, %v2221_v5  ;;  %v2222_v9 = vpack.c.bf16 %v1051_v6, %v1051_v6  ;;  %1521 = vst.msk [vmem:[%s2970_s6 + $0x130] sm:$0xf] %vm1444_vm4, %v2265_v7  ;;  %v2266_v11 = vpack.c.bf16 %v1095_v8, %v1095_v8 }
 0x172   : > { %v812_v10 = vpop.f32.mrb[68].mxu0  ;;  %v988_v14 = vpop.f32.mrb[68].mxu1 }
 0x173   : > { %1478 = vst.msk [vmem:[%s2970_s6 + $0x84] sm:$0xf] %vm1444_vm4, %v2222_v9  ;;  %v813_v12 = vadd.f32 %v2964_v49, %v812_v10  ;;  %v2393_v13 = vpop.f32.mrb[69].mxu0  ;;  %1522 = vst.msk [vmem:[%s2970_s6 + $0x134] sm:$0xf] %vm1444_vm4, %v2266_v11  ;;  %v989_v16 = vadd.f32 %v2964_v49, %v988_v14  ;;  %v2481_v17 = vpop.f32.mrb[69].mxu1 }
 0x174   : > { %v815_v15 = vpop.f32.mrb[70].mxu0  ;;  %v991_v21 = vpop.f32.mrb[70].mxu1 }
 0x175   : > { %v1052_v18 = vmax.f32 %v813_v12, 0.0  ;;  %v816_v19 = vadd.f32 %v2964_v49, %v815_v15  ;;  %v2394_v20 = vpop.f32.mrb[71].mxu0  ;;  %v1096_v22 = vmax.f32 %v989_v16, 0.0  ;;  %v992_v23 = vadd.f32 %v2964_v49, %v991_v21  ;;  %v2482_v24 = vpop.f32.mrb[71].mxu1 }
 0x177   : > { %v2223_v25 = vpack.c.bf16 %v1052_v18, %v1052_v18  ;;  %v1053_v26 = vmax.f32 %v816_v19, 0.0  ;;  %v2267_v27 = vpack.c.bf16 %v1096_v22, %v1096_v22  ;;  %v1097_v28 = vmax.f32 %v992_v23, 0.0 }
 0x179   : > { %1479 = vst.msk [vmem:[%s2970_s6 + $0x88] sm:$0xf] %vm1444_vm4, %v2223_v25  ;;  %v2224_v29 = vpack.c.bf16 %v1053_v26, %v1053_v26  ;;  %1523 = vst.msk [vmem:[%s2970_s6 + $0x138] sm:$0xf] %vm1444_vm4, %v2267_v27  ;;  %v2268_v31 = vpack.c.bf16 %v1097_v28, %v1097_v28 }
 0x17a   : > { %v820_v30 = vpop.f32.mrb[72].mxu0  ;;  %v996_v34 = vpop.f32.mrb[72].mxu1 }
 0x17b   : > { %1480 = vst.msk [vmem:[%s2970_s6 + $0x8c] sm:$0xf] %vm1444_vm4, %v2224_v29  ;;  %v821_v32 = vadd.f32 %v2964_v49, %v820_v30  ;;  %v2397_v33 = vpop.f32.mrb[73].mxu0  ;;  %1524 = vst.msk [vmem:[%s2970_s6 + $0x13c] sm:$0xf] %vm1444_vm4, %v2268_v31  ;;  %v997_v36 = vadd.f32 %v2964_v49, %v996_v34  ;;  %v2485_v37 = vpop.f32.mrb[73].mxu1 }
 0x17c   : > { %v823_v35 = vpop.f32.mrb[74].mxu0  ;;  %v999_v41 = vpop.f32.mrb[74].mxu1 }
 0x17d   : > { %v1054_v38 = vmax.f32 %v821_v32, 0.0  ;;  %v824_v39 = vadd.f32 %v2964_v49, %v823_v35  ;;  %v2398_v40 = vpop.f32.mrb[75].mxu0  ;;  %v1098_v42 = vmax.f32 %v997_v36, 0.0  ;;  %v1000_v43 = vadd.f32 %v2964_v49, %v999_v41  ;;  %v2486_v44 = vpop.f32.mrb[75].mxu1 }
 0x17f   : > { %v2225_v45 = vpack.c.bf16 %v1054_v38, %v1054_v38  ;;  %v1055_v46 = vmax.f32 %v824_v39, 0.0  ;;  %v2269_v47 = vpack.c.bf16 %v1098_v42, %v1098_v42  ;;  %v1099_v48 = vmax.f32 %v1000_v43, 0.0 }
 0x181   : > { %1481 = vst.msk [vmem:[%s2970_s6 + $0x90] sm:$0xf] %vm1444_vm4, %v2225_v45  ;;  %v2226_v50 = vpack.c.bf16 %v1055_v46, %v1055_v46  ;;  %1525 = vst.msk [vmem:[%s2970_s6 + $0x140] sm:$0xf] %vm1444_vm4, %v2269_v47  ;;  %v2270_v52 = vpack.c.bf16 %v1099_v48, %v1099_v48 }
 0x182   : > { %v828_v51 = vpop.f32.mrb[76].mxu0  ;;  %v1004_v55 = vpop.f32.mrb[76].mxu1 }
 0x183   : > { %1482 = vst.msk [vmem:[%s2970_s6 + $0x94] sm:$0xf] %vm1444_vm4, %v2226_v50  ;;  %v829_v53 = vadd.f32 %v2964_v49, %v828_v51  ;;  %v2401_v54 = vpop.f32.mrb[77].mxu0  ;;  %1526 = vst.msk [vmem:[%s2970_s6 + $0x144] sm:$0xf] %vm1444_vm4, %v2270_v52  ;;  %v1005_v57 = vadd.f32 %v2964_v49, %v1004_v55  ;;  %v2489_v58 = vpop.f32.mrb[77].mxu1 }
 0x184   : > { %v831_v56 = vpop.f32.mrb[78].mxu0  ;;  %v1007_v62 = vpop.f32.mrb[78].mxu1 }
 0x185   : > { %v1056_v59 = vmax.f32 %v829_v53, 0.0  ;;  %v832_v60 = vadd.f32 %v2964_v49, %v831_v56  ;;  %v2402_v61 = vpop.f32.mrb[79].mxu0  ;;  %v1100_v63 = vmax.f32 %v1005_v57, 0.0  ;;  %v1008_v0 = vadd.f32 %v2964_v49, %v1007_v62  ;;  %v2490_v1 = vpop.f32.mrb[79].mxu1 }
 0x187   : > { %v2227_v2 = vpack.c.bf16 %v1056_v59, %v1056_v59  ;;  %v1057_v3 = vmax.f32 %v832_v60, 0.0  ;;  %v2271_v4 = vpack.c.bf16 %v1100_v63, %v1100_v63  ;;  %v1101_v5 = vmax.f32 %v1008_v0, 0.0 }
 0x189   : > { %1483 = vst.msk [vmem:[%s2970_s6 + $0x98] sm:$0xf] %vm1444_vm4, %v2227_v2  ;;  %v2228_v6 = vpack.c.bf16 %v1057_v3, %v1057_v3  ;;  %1527 = vst.msk [vmem:[%s2970_s6 + $0x148] sm:$0xf] %vm1444_vm4, %v2271_v4  ;;  %v2272_v8 = vpack.c.bf16 %v1101_v5, %v1101_v5 }
 0x18a   : > { %v836_v7 = vpop.f32.mrb[80].mxu0  ;;  %v1012_v11 = vpop.f32.mrb[80].mxu1 }
 0x18b   : > { %1484 = vst.msk [vmem:[%s2970_s6 + $0x9c] sm:$0xf] %vm1444_vm4, %v2228_v6  ;;  %v837_v9 = vadd.f32 %v2964_v49, %v836_v7  ;;  %v2405_v10 = vpop.f32.mrb[81].mxu0  ;;  %1528 = vst.msk [vmem:[%s2970_s6 + $0x14c] sm:$0xf] %vm1444_vm4, %v2272_v8  ;;  %v1013_v13 = vadd.f32 %v2964_v49, %v1012_v11  ;;  %v2493_v14 = vpop.f32.mrb[81].mxu1 }
 0x18c   : > { %v839_v12 = vpop.f32.mrb[82].mxu0  ;;  %v1015_v18 = vpop.f32.mrb[82].mxu1 }
 0x18d   : > { %v1058_v15 = vmax.f32 %v837_v9, 0.0  ;;  %v840_v16 = vadd.f32 %v2964_v49, %v839_v12  ;;  %v2406_v17 = vpop.f32.mrb[83].mxu0  ;;  %v1102_v19 = vmax.f32 %v1013_v13, 0.0  ;;  %v2494_v20 = vpop.f32.mrb[83].mxu1 }
 0x18f   : > { %v2229_v21 = vpack.c.bf16 %v1058_v15, %v1058_v15  ;;  %v1059_v22 = vmax.f32 %v840_v16, 0.0  ;;  %v2273_v23 = vpack.c.bf16 %v1102_v19, %v1102_v19 }
 0x191   : > { %1485 = vst.msk [vmem:[%s2970_s6 + $0xa0] sm:$0xf] %vm1444_vm4, %v2229_v21  ;;  %v2230_v24 = vpack.c.bf16 %v1059_v22, %v1059_v22  ;;  %1529 = vst.msk [vmem:[%s2970_s6 + $0x150] sm:$0xf] %vm1444_vm4, %v2273_v23 }
 0x192   : > { %v844_v25 = vpop.f32.mrb[84].mxu0 }
 0x193   : > { %1486 = vst.msk [vmem:[%s2970_s6 + $0xa4] sm:$0xf] %vm1444_vm4, %v2230_v24  ;;  %v845_v26 = vadd.f32 %v2964_v49, %v844_v25  ;;  %v2409_v27 = vpop.f32.mrb[85].mxu0 }
 0x194   : > { %v847_v28 = vpop.f32.mrb[86].mxu0 }
 0x195   : > { %v1060_v29 = vmax.f32 %v845_v26, 0.0  ;;  %v848_v30 = vadd.f32 %v2964_v49, %v847_v28  ;;  %v2410_v31 = vpop.f32.mrb[87].mxu0  ;;  %1536 = sbr.rel (!%p2769_p4) target bundleno = 503 (0x1f7), region = 36 }
 0x197   : > { %v2231_v32 = vpack.c.bf16 %v1060_v29, %v1060_v29  ;;  %v1061_v33 = vmax.f32 %v848_v30, 0.0 }
 0x199   : > { %1487 = vst.msk [vmem:[%s2970_s6 + $0xa8] sm:$0xf] %vm1444_vm4, %v2231_v32  ;;  %v2232_v34 = vpack.c.bf16 %v1061_v33, %v1061_v33 }
 0x19b   : > { %1488 = vst.msk [vmem:[%s2970_s6 + $0xac] sm:$0xf] %vm1444_vm4, %v2232_v34 }
 0x19c   : > { %s3434_s7 = smov (!%p1539_p8, %s1538_s7), 85 }
 0x19d   : > { %s2174_s12 = sshll.u32 %s3434_s7, 6 }
 0x19e   : > { %p2177_p9 = scmp.eq.s32.totalorder %s2174_s12, 0 }
 0x19f   : > { %s3236_s14 = sshrl.u32 (!%p2177_p9), %s3434_s7, 6 }
 0x1a0   : > { %1547 = sbr.rel (%p2177_p9) target bundleno = 503 (0x1f7), region = 40  ;;  %p2178_p10 = scmp.le.s32.totalorder (!%p2177_p9), %s3236_s14, 0 }
 0x1a7   : > { %1952 = sbr.rel (%p2178_p10) target bundleno = 482 (0x1e2), region = 112  ;;  %s3427_s15 = smov (!%p2178_p10), %s3230_s11 }
 0x1a8   : > { %s3428_s17 = smov (!%p2178_p10), %s2970_s6  ;;  %s3245_s18 = smov (!%p2178_p10), 0  }
 0x1a9   : > { %s3247_s20 = smov (!%p2178_p10), 0  }
 0x1ae LB: >> { %v1563_v49 = vld [vmem:[%s2695_s17] sm:$0xf]  ;;  %v1565_v35 = vld [vmem:[%s2695_s17 + $0x4] sm:$0xf]  ;;  %v1567_v36 = vld [vmem:[%s2695_s17 + $0x8] sm:$0xf]  ;;  %s2703_s20 = sphi %s3247_s20, %s1557_s20   ;;  %s2699_s18 = sphi %s3245_s18, %s3429_s18   ;;  %s2695_s17 = sphi %s3428_s17, %s1696_s17   ;;  %s2691_s15 = sphi %s3427_s15, %s1697_s15  }
 0x1af   : >> { %1564 = vst [vmem:[%s2691_s15] sm:$0xf] %v1563_v49  ;;  %1566 = vst [vmem:[%s2691_s15 + $0x4] sm:$0xf] %v1565_v35  ;;  %v1569_v37 = vld [vmem:[%s2695_s17 + $0xc] sm:$0xf]  ;;  %s1691_s21 = sadd.s32 1, %s2699_s18 }
 0x1b0   : >> { %1568 = vst [vmem:[%s2691_s15 + $0x8] sm:$0xf] %v1567_v36  ;;  %v1571_v38 = vld [vmem:[%s2695_s17 + $0x10] sm:$0xf]  ;;  %v1573_v39 = vld [vmem:[%s2695_s17 + $0x14] sm:$0xf]  ;;  %p1692_p11 = scmp.ge.s32.totalorder %s1691_s21, %s3236_s14 }
 0x1b1   : >> { %1570 = vst [vmem:[%s2691_s15 + $0xc] sm:$0xf] %v1569_v37  ;;  %1572 = vst [vmem:[%s2691_s15 + $0x10] sm:$0xf] %v1571_v38  ;;  %v1575_v40 = vld [vmem:[%s2695_s17 + $0x18] sm:$0xf] }
 0x1b2   : >> { %1574 = vst [vmem:[%s2691_s15 + $0x14] sm:$0xf] %v1573_v39  ;;  %v1577_v41 = vld [vmem:[%s2695_s17 + $0x1c] sm:$0xf]  ;;  %v1579_v42 = vld [vmem:[%s2695_s17 + $0x20] sm:$0xf] }
 0x1b3   : >> { %1576 = vst [vmem:[%s2691_s15 + $0x18] sm:$0xf] %v1575_v40  ;;  %1578 = vst [vmem:[%s2691_s15 + $0x1c] sm:$0xf] %v1577_v41  ;;  %v1581_v43 = vld [vmem:[%s2695_s17 + $0x24] sm:$0xf] }
 0x1b4   : >> { %1580 = vst [vmem:[%s2691_s15 + $0x20] sm:$0xf] %v1579_v42  ;;  %v1583_v44 = vld [vmem:[%s2695_s17 + $0x28] sm:$0xf]  ;;  %v1585_v45 = vld [vmem:[%s2695_s17 + $0x2c] sm:$0xf] }
 0x1b5   : >> { %1582 = vst [vmem:[%s2691_s15 + $0x24] sm:$0xf] %v1581_v43  ;;  %1584 = vst [vmem:[%s2691_s15 + $0x28] sm:$0xf] %v1583_v44  ;;  %v1587_v46 = vld [vmem:[%s2695_s17 + $0x30] sm:$0xf] }
 0x1b6   : >> { %1586 = vst [vmem:[%s2691_s15 + $0x2c] sm:$0xf] %v1585_v45  ;;  %v1589_v47 = vld [vmem:[%s2695_s17 + $0x34] sm:$0xf]  ;;  %v1591_v48 = vld [vmem:[%s2695_s17 + $0x38] sm:$0xf] }
 0x1b7   : >> { %1588 = vst [vmem:[%s2691_s15 + $0x30] sm:$0xf] %v1587_v46  ;;  %1590 = vst [vmem:[%s2691_s15 + $0x34] sm:$0xf] %v1589_v47  ;;  %v1593_v50 = vld [vmem:[%s2695_s17 + $0x3c] sm:$0xf] }
 0x1b8   : >> { %1592 = vst [vmem:[%s2691_s15 + $0x38] sm:$0xf] %v1591_v48  ;;  %v1595_v51 = vld [vmem:[%s2695_s17 + $0x40] sm:$0xf]  ;;  %v1597_v52 = vld [vmem:[%s2695_s17 + $0x44] sm:$0xf] }
 0x1b9   : >> { %1594 = vst [vmem:[%s2691_s15 + $0x3c] sm:$0xf] %v1593_v50  ;;  %1596 = vst [vmem:[%s2691_s15 + $0x40] sm:$0xf] %v1595_v51  ;;  %v1599_v53 = vld [vmem:[%s2695_s17 + $0x48] sm:$0xf] }
 0x1ba   : >> { %1598 = vst [vmem:[%s2691_s15 + $0x44] sm:$0xf] %v1597_v52  ;;  %v1601_v54 = vld [vmem:[%s2695_s17 + $0x4c] sm:$0xf]  ;;  %v1603_v55 = vld [vmem:[%s2695_s17 + $0x50] sm:$0xf] }
 0x1bb   : >> { %1600 = vst [vmem:[%s2691_s15 + $0x48] sm:$0xf] %v1599_v53  ;;  %1602 = vst [vmem:[%s2691_s15 + $0x4c] sm:$0xf] %v1601_v54  ;;  %v1605_v56 = vld [vmem:[%s2695_s17 + $0x54] sm:$0xf] }
 0x1bc   : >> { %1604 = vst [vmem:[%s2691_s15 + $0x50] sm:$0xf] %v1603_v55  ;;  %v1607_v57 = vld [vmem:[%s2695_s17 + $0x58] sm:$0xf]  ;;  %v1609_v58 = vld [vmem:[%s2695_s17 + $0x5c] sm:$0xf] }
 0x1bd   : >> { %1606 = vst [vmem:[%s2691_s15 + $0x54] sm:$0xf] %v1605_v56  ;;  %1608 = vst [vmem:[%s2691_s15 + $0x58] sm:$0xf] %v1607_v57  ;;  %v1611_v59 = vld [vmem:[%s2695_s17 + $0x60] sm:$0xf] }
 0x1be   : >> { %1610 = vst [vmem:[%s2691_s15 + $0x5c] sm:$0xf] %v1609_v58  ;;  %v1613_v60 = vld [vmem:[%s2695_s17 + $0x64] sm:$0xf]  ;;  %v1615_v61 = vld [vmem:[%s2695_s17 + $0x68] sm:$0xf] }
 0x1bf   : >> { %1612 = vst [vmem:[%s2691_s15 + $0x60] sm:$0xf] %v1611_v59  ;;  %1614 = vst [vmem:[%s2691_s15 + $0x64] sm:$0xf] %v1613_v60  ;;  %v1617_v62 = vld [vmem:[%s2695_s17 + $0x6c] sm:$0xf] }
 0x1c0   : >> { %1616 = vst [vmem:[%s2691_s15 + $0x68] sm:$0xf] %v1615_v61  ;;  %v1619_v63 = vld [vmem:[%s2695_s17 + $0x70] sm:$0xf]  ;;  %v1621_v0 = vld [vmem:[%s2695_s17 + $0x74] sm:$0xf] }
 0x1c1   : >> { %1618 = vst [vmem:[%s2691_s15 + $0x6c] sm:$0xf] %v1617_v62  ;;  %1620 = vst [vmem:[%s2691_s15 + $0x70] sm:$0xf] %v1619_v63  ;;  %v1623_v1 = vld [vmem:[%s2695_s17 + $0x78] sm:$0xf] }
 0x1c2   : >> { %1622 = vst [vmem:[%s2691_s15 + $0x74] sm:$0xf] %v1621_v0  ;;  %v1625_v2 = vld [vmem:[%s2695_s17 + $0x7c] sm:$0xf]  ;;  %v1627_v3 = vld [vmem:[%s2695_s17 + $0x80] sm:$0xf] }
 0x1c3   : >> { %1624 = vst [vmem:[%s2691_s15 + $0x78] sm:$0xf] %v1623_v1  ;;  %1626 = vst [vmem:[%s2691_s15 + $0x7c] sm:$0xf] %v1625_v2  ;;  %v1629_v4 = vld [vmem:[%s2695_s17 + $0x84] sm:$0xf] }
 0x1c4   : >> { %1628 = vst [vmem:[%s2691_s15 + $0x80] sm:$0xf] %v1627_v3  ;;  %v1631_v5 = vld [vmem:[%s2695_s17 + $0x88] sm:$0xf]  ;;  %v1633_v6 = vld [vmem:[%s2695_s17 + $0x8c] sm:$0xf] }
 0x1c5   : >> { %1630 = vst [vmem:[%s2691_s15 + $0x84] sm:$0xf] %v1629_v4  ;;  %1632 = vst [vmem:[%s2691_s15 + $0x88] sm:$0xf] %v1631_v5  ;;  %v1635_v7 = vld [vmem:[%s2695_s17 + $0x90] sm:$0xf] }
 0x1c6   : >> { %1634 = vst [vmem:[%s2691_s15 + $0x8c] sm:$0xf] %v1633_v6  ;;  %v1637_v8 = vld [vmem:[%s2695_s17 + $0x94] sm:$0xf]  ;;  %v1639_v9 = vld [vmem:[%s2695_s17 + $0x98] sm:$0xf] }
 0x1c7   : >> { %1636 = vst [vmem:[%s2691_s15 + $0x90] sm:$0xf] %v1635_v7  ;;  %1638 = vst [vmem:[%s2691_s15 + $0x94] sm:$0xf] %v1637_v8  ;;  %v1641_v10 = vld [vmem:[%s2695_s17 + $0x9c] sm:$0xf] }
 0x1c8   : >> { %1640 = vst [vmem:[%s2691_s15 + $0x98] sm:$0xf] %v1639_v9  ;;  %v1643_v11 = vld [vmem:[%s2695_s17 + $0xa0] sm:$0xf]  ;;  %v1645_v12 = vld [vmem:[%s2695_s17 + $0xa4] sm:$0xf] }
 0x1c9   : >> { %1642 = vst [vmem:[%s2691_s15 + $0x9c] sm:$0xf] %v1641_v10  ;;  %1644 = vst [vmem:[%s2691_s15 + $0xa0] sm:$0xf] %v1643_v11  ;;  %v1647_v13 = vld [vmem:[%s2695_s17 + $0xa8] sm:$0xf] }
 0x1ca   : >> { %1646 = vst [vmem:[%s2691_s15 + $0xa4] sm:$0xf] %v1645_v12  ;;  %v1649_v14 = vld [vmem:[%s2695_s17 + $0xac] sm:$0xf]  ;;  %v1651_v15 = vld [vmem:[%s2695_s17 + $0xb0] sm:$0xf] }
 0x1cb   : >> { %1648 = vst [vmem:[%s2691_s15 + $0xa8] sm:$0xf] %v1647_v13  ;;  %1650 = vst [vmem:[%s2691_s15 + $0xac] sm:$0xf] %v1649_v14  ;;  %v1653_v16 = vld [vmem:[%s2695_s17 + $0xb4] sm:$0xf] }
 0x1cc   : >> { %1652 = vst [vmem:[%s2691_s15 + $0xb0] sm:$0xf] %v1651_v15  ;;  %v1655_v17 = vld [vmem:[%s2695_s17 + $0xb8] sm:$0xf]  ;;  %v1657_v18 = vld [vmem:[%s2695_s17 + $0xbc] sm:$0xf] }
 0x1cd   : >> { %1654 = vst [vmem:[%s2691_s15 + $0xb4] sm:$0xf] %v1653_v16  ;;  %1656 = vst [vmem:[%s2691_s15 + $0xb8] sm:$0xf] %v1655_v17  ;;  %v1659_v19 = vld [vmem:[%s2695_s17 + $0xc0] sm:$0xf] }
 0x1ce   : >> { %1658 = vst [vmem:[%s2691_s15 + $0xbc] sm:$0xf] %v1657_v18  ;;  %v1661_v20 = vld [vmem:[%s2695_s17 + $0xc4] sm:$0xf]  ;;  %v1663_v21 = vld [vmem:[%s2695_s17 + $0xc8] sm:$0xf] }
 0x1cf   : >> { %1660 = vst [vmem:[%s2691_s15 + $0xc0] sm:$0xf] %v1659_v19  ;;  %1662 = vst [vmem:[%s2691_s15 + $0xc4] sm:$0xf] %v1661_v20  ;;  %v1665_v22 = vld [vmem:[%s2695_s17 + $0xcc] sm:$0xf] }
 0x1d0   : >> { %1664 = vst [vmem:[%s2691_s15 + $0xc8] sm:$0xf] %v1663_v21  ;;  %v1667_v23 = vld [vmem:[%s2695_s17 + $0xd0] sm:$0xf]  ;;  %v1669_v24 = vld [vmem:[%s2695_s17 + $0xd4] sm:$0xf] }
 0x1d1   : >> { %1666 = vst [vmem:[%s2691_s15 + $0xcc] sm:$0xf] %v1665_v22  ;;  %1668 = vst [vmem:[%s2691_s15 + $0xd0] sm:$0xf] %v1667_v23  ;;  %v1671_v25 = vld [vmem:[%s2695_s17 + $0xd8] sm:$0xf] }
 0x1d2   : >> { %1670 = vst [vmem:[%s2691_s15 + $0xd4] sm:$0xf] %v1669_v24  ;;  %v1673_v26 = vld [vmem:[%s2695_s17 + $0xdc] sm:$0xf]  ;;  %v1675_v27 = vld [vmem:[%s2695_s17 + $0xe0] sm:$0xf] }
 0x1d3   : >> { %1672 = vst [vmem:[%s2691_s15 + $0xd8] sm:$0xf] %v1671_v25  ;;  %1674 = vst [vmem:[%s2691_s15 + $0xdc] sm:$0xf] %v1673_v26  ;;  %v1677_v28 = vld [vmem:[%s2695_s17 + $0xe4] sm:$0xf] }
 0x1d4   : >> { %1676 = vst [vmem:[%s2691_s15 + $0xe0] sm:$0xf] %v1675_v27  ;;  %v1679_v29 = vld [vmem:[%s2695_s17 + $0xe8] sm:$0xf]  ;;  %v1681_v30 = vld [vmem:[%s2695_s17 + $0xec] sm:$0xf] }
 0x1d5   : >> { %1678 = vst [vmem:[%s2691_s15 + $0xe4] sm:$0xf] %v1677_v28  ;;  %1680 = vst [vmem:[%s2691_s15 + $0xe8] sm:$0xf] %v1679_v29  ;;  %v1683_v31 = vld [vmem:[%s2695_s17 + $0xf0] sm:$0xf] }
 0x1d6   : >> { %1682 = vst [vmem:[%s2691_s15 + $0xec] sm:$0xf] %v1681_v30  ;;  %v1685_v32 = vld [vmem:[%s2695_s17 + $0xf4] sm:$0xf]  ;;  %v1687_v33 = vld [vmem:[%s2695_s17 + $0xf8] sm:$0xf] }
 0x1d7   : >> { %1684 = vst [vmem:[%s2691_s15 + $0xf0] sm:$0xf] %v1683_v31  ;;  %1686 = vst [vmem:[%s2691_s15 + $0xf4] sm:$0xf] %v1685_v32  ;;  %v1689_v34 = vld [vmem:[%s2695_s17 + $0xfc] sm:$0xf] }
 0x1d8   : >> { %1688 = vst [vmem:[%s2691_s15 + $0xf8] sm:$0xf] %v1687_v33  ;;  %1690 = vst [vmem:[%s2691_s15 + $0xfc] sm:$0xf] %v1689_v34  ;;  %s3436_s21 = smov (%p1692_p11, %s1691_s21), 0  ;;  %s1557_s20 = sadd.s32 1, %s2703_s20  }
 0x1d9   : >> { %s2179_s22 = sshll.u32 %s3436_s21, 8  ;;  %p1556_p12 = scmp.ge.s32.totalorder %s1557_s20, %s3236_s14 }
 0x1da   : >> { %s1696_s17 = scalar_lea.vmem %s2970_s6, %s2179_s22 [#allocation2]   ;;  %s1697_s15 = scalar_lea.vmem %s3230_s11, %s2179_s22  }
 0x1db   : >> { %s3429_s18 = smov %s3436_s21  ;;  %1559 = sbr.rel (!%p1556_p12) target bundleno = 430 (0x1ae), region = 118 }
 0x1e2 PF: > { %s3404_s23 = sand.u32 63, %s3434_s7   ;;  %s2275_s24 = sshll.u32 %s3236_s14, 8 }
 0x1e3   : > { %s1702_s25 = scalar_lea.vmem %s2970_s6, %s2275_s24 [#allocation2]   ;;  %s1704_s26 = scalar_lea.vmem %s3230_s11, %s2275_s24  }
 0x1e4   : > { %p2184_p13 = scmp.le.s32.totalorder %s3404_s23, 0 }
 0x1e5   : > { %s2705_s27 = smov (!%p2184_p13), %s1704_s26   ;;  %s2709_s28 = smov (!%p2184_p13), %s1702_s25  }
 0x1e6   : > { %1966 = sbr.rel (%p2184_p13) target bundleno = 503 (0x1f7), region = 123  ;;  %s2713_s29 = smov (!%p2184_p13), 0  }
 0x1e7   : > { %s2717_s30 = smov (!%p2184_p13), 0  }
 0x1ed LB: >> { %v1714_v49 = vld [vmem:[%s2711_s28] sm:$0xf]  ;;  %s1716_s4 = sadd.s32 1, %s2715_s29  ;;  %s1708_s30 = sadd.s32 1, %s2719_s30   ;;  %s2719_s30 = sphi %s2717_s30, %s1708_s30   ;;  %s2715_s29 = sphi %s2713_s29, %s2714_s29   ;;  %s2711_s28 = sphi %s2709_s28, %s1721_s28   ;;  %s2707_s27 = sphi %s2705_s27, %s1722_s27  }
 0x1ee   : >> { %1715 = vst [vmem:[%s2707_s27] sm:$0xf] %v1714_v49  ;;  %p1717_p0 = scmp.ge.s32.totalorder %s1716_s4, %s3404_s23  ;;  %p1707_p1 = scmp.ge.s32.totalorder %s1708_s30, %s3404_s23 }
 0x1f0   : >> { %s3438_s4 = smov (%p1717_p0, %s1716_s4), 0  ;;  %1710 = sbr.rel (!%p1707_p1) target bundleno = 493 (0x1ed), region = 129 }
 0x1f1   : >> { %s2185_s5 = sshll.u32 %s3438_s4, 2  ;;  %s2714_s29 = smov %s3438_s4  }
 0x1f2   : >> { %s1721_s28 = scalar_lea.vmem %s1702_s25, %s2185_s5 [#allocation2]   ;;  %s1722_s27 = scalar_lea.vmem %s1704_s26, %s2185_s5  }
 0x1f7 PF: > { %p10_p2 = scmp.ge.s32.totalorder %s2759_s16, 4   ;;  %s3430_s12 = smov %s2683_s13 }
 0x1f8   : > { %s3431_s13 = smov %s2767_s19  ;;  %s3432_s14 = smov %s2759_s16 }
 0x1f9   :  { %12 = sbr.rel (!%p10_p2) target bundleno = 2 (0x2), region = 140 }

// kernel: net_forward.7
= control target key start
LH: loop header
LB: loop body
LE: loop exit
PB: predicated region body
PF: predicated region fallthrough
CT: control target
= control target key end

     0   :  { %s2060_s18 = smov 0   ;;  %s2640_s0 = inlined_call_operand.vmem [shape: bf16[1152,72], index: 0, kind: input, shape index: {}]   ;;  %s2641_s1 = inlined_call_operand.vmem [shape: bf16[72,16], index: 1, kind: input, shape index: {}]   ;;  %s2642_s2 = inlined_call_operand.vmem [shape: f32[1,16], index: 2, kind: input, shape index: {}]   ;;  %s2643_s3 = inlined_call_operand.vmem [shape: f32[1,16], index: 3, kind: input, shape index: {}]   ;;  %s2644_s4 = inlined_call_operand.vmem [shape: f32[1,16], index: 4, kind: input, shape index: {}]   ;;  %s2645_s5 = inlined_call_operand.vmem [shape: bf16[1152,16], index: 5, kind: output, shape index: {}]  }
   0x1 LB: > { %s1605_s19 = sadd.s32 4294967295, %s2028_s18   ;;  %p1609_p0 = scmp.ge.s32.totalorder %s2028_s18, 1  ;;  %s2028_s18 = sphi %s2060_s18, %s15_s18  }
   0x2   : > { %p188_p1 = scmp.lt.s32.totalorder %s2028_s18, 3 }
   0x4   : > { %p189_p2 = pnand %p1609_p0, %p188_p1 }
   0x5   : > { %v1981_v0 = vld [vmem:[%s2641_s1] sm:$0xff] (!%p189_p2)   ;;  %v1982_v1 = vld [vmem:[%s2641_s1 + $0x8] sm:$0xff] (!%p189_p2)   ;;  %s216_s24 = smul.u32 (!%p189_p2), 72, %s1605_s19  ;;  %v1983_v2 = vld [vmem:[%s2641_s1 + $0x10] sm:$0xff] (!%p189_p2)   ;;  %vm524_vm0 = vcmask (!%p189_p2), 588800   ;;  %vm633_vm1 = vcmask (!%p189_p2), 1043456  }
   0x6   : > { %192 = sbr.rel (%p189_p2) target bundleno = 333 (0x14d), region = 40  ;;  %1879 = vmatprep.subr.bf16.mxu0 (!%p189_p2), %v1981_v0  ;;  %1961 = vmatprep.subr.bf16.mxu1 (!%p189_p2), %v1981_v0  ;;  %v1984_v3 = vld [vmem:[%s2641_s1 + $0x18] sm:$0xff] (!%p189_p2)   ;;  %v1985_v6 = vld [vmem:[%s2641_s1 + $0x20] ss:$0 sps:$4 sm:$0xff] (!%p189_p2)   ;;  %vm1476_vm2 = vcmask (!%p189_p2), 125952  }
   0x7   : > { %1880 = vmatpush3.bf16.msra.mxu0 (!%p189_p2), %v1981_v0  ;;  %1966 = vmatpush3.bf16.msra.mxu1 (!%p189_p2), %v1981_v0  ;;  %p217_p3 = scmp.lt.s32.totalorder (!%p189_p2), %s216_s24, 143  ;;  %v635_v7 = vsel (!%p189_p2), %vm633_vm1, %v1985_v6, 0  ;;  %v2168_v42 = vld [vmem:[%s2642_s2] ss:$0 sm:$0xff] (!%p189_p2) }
   0x8   : > { %1881 = vmatprep.subr.bf16.mxu0 (!%p189_p2), %v1982_v1  ;;  %1962 = vmatprep.subr.bf16.mxu1 (!%p189_p2), %v1982_v1  ;;  %v2175_v49 = vld [vmem:[%s2643_s3] ss:$0 sm:$0xff] (!%p189_p2) }
   0x9   : > { %v2184_v60 = vld [vmem:[%s2644_s4] ss:$0 sm:$0xff] (!%p189_p2) }
   0xb   : > { %1882 = vmatpush3.bf16.msra.mxu0 (!%p189_p2), %v1982_v1  ;;  %1967 = vmatpush3.bf16.msra.mxu1 (!%p189_p2), %v1982_v1 }
   0xc   : > { %1883 = vmatprep.subr.bf16.mxu0 (!%p189_p2), %v1983_v2  ;;  %1963 = vmatprep.subr.bf16.mxu1 (!%p189_p2), %v1983_v2 }
   0xd   : > { %s2647_s24 = smov (!%p217_p3, %s216_s24), 143 }
   0xe   : > { %s1610_s27 = sshll.u32 %s2647_s24, 2 }
   0xf   : > { %s2088_s7 = scalar_lea.vmem %s2640_s0, %s1610_s27  ;;  %1884 = vmatpush3.bf16.msra.mxu0 %v1983_v2  ;;  %1968 = vmatpush3.bf16.msra.mxu1 %v1983_v2  ;;  %s2201_s19 = scalar_lea.vmem %s2645_s5, %s1610_s27 }
  0x10   : > { %v1986_v4 = vld [vmem:[%s2088_s7] sm:$0xff]   ;;  %v1987_v5 = vld [vmem:[%s2088_s7 + $0x90] sm:$0xff]   ;;  %1885 = vmatprep.subr.bf16.mxu0 %v1984_v3  ;;  %1964 = vmatprep.subr.bf16.mxu1 %v1984_v3  ;;  %v1988_v8 = vld [vmem:[%s2088_s7 + $0x8] sm:$0xff]  }
  0x11   : > { %1889 = vmatprep.mubr.msk.bf16.mxu0 %vm524_vm0, %v1986_v4  ;;  %1925 = vmatprep.mubr.msk.bf16.mxu1 %vm524_vm0, %v1987_v5  ;;  %v1989_v9 = vld [vmem:[%s2088_s7 + $0x98] sm:$0xff]   ;;  %v1990_v10 = vld [vmem:[%s2088_s7 + $0x10] sm:$0xff]   ;;  %v1991_v11 = vld [vmem:[%s2088_s7 + $0xa0] sm:$0xff]  }
  0x12   : > { %v1992_v12 = vld [vmem:[%s2088_s7 + $0x18] sm:$0xff]   ;;  %v1993_v13 = vld [vmem:[%s2088_s7 + $0xa8] sm:$0xff]   ;;  %v1994_v14 = vld [vmem:[%s2088_s7 + $0x20] sm:$0xff]  }
  0x13   : > { %1886 = vmatpush3.bf16.msra.mxu0 %v1984_v3  ;;  %1969 = vmatpush3.bf16.msra.mxu1 %v1984_v3  ;;  %v1995_v15 = vld [vmem:[%s2088_s7 + $0xb0] sm:$0xff]   ;;  %v1996_v16 = vld [vmem:[%s2088_s7 + $0x28] sm:$0xff]   ;;  %v1997_v17 = vld [vmem:[%s2088_s7 + $0xb8] sm:$0xff]  }
  0x14   : > { %1971 = vmatprep.subr.msk.bf16.mxu0 %vm633_vm1, %v1985_v6  ;;  %1972 = vmatprep.subr.msk.bf16.mxu1 %vm633_vm1, %v1985_v6  ;;  %v1998_v18 = vld [vmem:[%s2088_s7 + $0x30] sm:$0xff]   ;;  %v1999_v19 = vld [vmem:[%s2088_s7 + $0xc0] sm:$0xff]   ;;  %v2000_v20 = vld [vmem:[%s2088_s7 + $0x38] sm:$0xff]  }
  0x15   : > { %v2001_v21 = vld [vmem:[%s2088_s7 + $0xc8] sm:$0xff]   ;;  %v2002_v22 = vld [vmem:[%s2088_s7 + $0x40] sm:$0xff]   ;;  %v2003_v23 = vld [vmem:[%s2088_s7 + $0xd0] sm:$0xff]  }
  0x16   : > { %v2004_v24 = vld [vmem:[%s2088_s7 + $0x48] sm:$0xff]   ;;  %v2005_v25 = vld [vmem:[%s2088_s7 + $0xd8] sm:$0xff]   ;;  %v2006_v26 = vld [vmem:[%s2088_s7 + $0x50] sm:$0xff]  }
  0x17   : > { %1888 = vmatpush3.bf16.msra.mxu0 %v635_v7  ;;  %1970 = vmatpush3.bf16.msra.mxu1 %v635_v7  ;;  %v2007_v27 = vld [vmem:[%s2088_s7 + $0xe0] sm:$0xff]   ;;  %v2008_v28 = vld [vmem:[%s2088_s7 + $0x58] sm:$0xff]   ;;  %v2009_v29 = vld [vmem:[%s2088_s7 + $0xe8] sm:$0xff]  }
  0x18   : > { %v2010_v30 = vld [vmem:[%s2088_s7 + $0x60] sm:$0xff]   ;;  %v2011_v31 = vld [vmem:[%s2088_s7 + $0xf0] sm:$0xff]   ;;  %v2012_v32 = vld [vmem:[%s2088_s7 + $0x68] sm:$0xff]  }
  0x19   : > { %v2013_v33 = vld [vmem:[%s2088_s7 + $0xf8] sm:$0xff]   ;;  %v2014_v34 = vld [vmem:[%s2088_s7 + $0x70] sm:$0xff]   ;;  %v2015_v35 = vld [vmem:[%s2088_s7 + $0x100] sm:$0xff]  }
  0x1a   : > { %1890 = vmatmul.mubr.msk.bf16.vlgmr.msra.gmra.mrb[0].mxu0 %vm524_vm0, %v1988_v8  ;;  %1926 = vmatmul.mubr.msk.bf16.vlgmr.msra.gmra.mrb[0].mxu1 %vm524_vm0, %v1989_v9  ;;  %v2016_v36 = vld [vmem:[%s2088_s7 + $0x78] sm:$0xff]   ;;  %v2017_v37 = vld [vmem:[%s2088_s7 + $0x108] sm:$0xff]   ;;  %v2018_v38 = vld [vmem:[%s2088_s7 + $0x80] sm:$0xff]  }
  0x1b   : > { %1893 = vmatprep.mubr.msk.bf16.mxu0 %vm524_vm0, %v1990_v10  ;;  %1929 = vmatprep.mubr.msk.bf16.mxu1 %vm524_vm0, %v1991_v11  ;;  %v2019_v39 = vld [vmem:[%s2088_s7 + $0x110] sm:$0xff]   ;;  %v2020_v40 = vld [vmem:[%s2088_s7 + $0x88] sm:$0xff]   ;;  %v2021_v41 = vld [vmem:[%s2088_s7 + $0x118] sm:$0xff]  }
  0x22   : > { %1894 = vmatmul.mubr.msk.bf16.gmra.mrb[4].mxu0 %vm524_vm0, %v1992_v12  ;;  %1930 = vmatmul.mubr.msk.bf16.gmra.mrb[4].mxu1 %vm524_vm0, %v1993_v13 }
  0x23   : > { %1897 = vmatprep.mubr.msk.bf16.mxu0 %vm524_vm0, %v1994_v14  ;;  %1933 = vmatprep.mubr.msk.bf16.mxu1 %vm524_vm0, %v1995_v15 }
  0x2a   : > { %1898 = vmatmul.mubr.msk.bf16.gmra.mrb[8].mxu0 %vm524_vm0, %v1996_v16  ;;  %1934 = vmatmul.mubr.msk.bf16.gmra.mrb[8].mxu1 %vm524_vm0, %v1997_v17 }
  0x2b   : > { %1901 = vmatprep.mubr.msk.bf16.mxu0 %vm524_vm0, %v1998_v18  ;;  %1937 = vmatprep.mubr.msk.bf16.mxu1 %vm524_vm0, %v1999_v19 }
  0x32   : > { %1902 = vmatmul.mubr.msk.bf16.gmra.mrb[12].mxu0 %vm524_vm0, %v2000_v20  ;;  %1938 = vmatmul.mubr.msk.bf16.gmra.mrb[12].mxu1 %vm524_vm0, %v2001_v21 }
  0x33   : > { %1905 = vmatprep.mubr.msk.bf16.mxu0 %vm524_vm0, %v2002_v22  ;;  %1941 = vmatprep.mubr.msk.bf16.mxu1 %vm524_vm0, %v2003_v23 }
  0x3a   : > { %1906 = vmatmul.mubr.msk.bf16.gmra.mrb[16].mxu0 %vm524_vm0, %v2004_v24  ;;  %1942 = vmatmul.mubr.msk.bf16.gmra.mrb[16].mxu1 %vm524_vm0, %v2005_v25 }
  0x3b   : > { %1909 = vmatprep.mubr.msk.bf16.mxu0 %vm524_vm0, %v2006_v26  ;;  %1945 = vmatprep.mubr.msk.bf16.mxu1 %vm524_vm0, %v2007_v27 }
  0x42   : > { %1910 = vmatmul.mubr.msk.bf16.gmra.mrb[20].mxu0 %vm524_vm0, %v2008_v28  ;;  %1946 = vmatmul.mubr.msk.bf16.gmra.mrb[20].mxu1 %vm524_vm0, %v2009_v29 }
  0x43   : > { %1913 = vmatprep.mubr.msk.bf16.mxu0 %vm524_vm0, %v2010_v30  ;;  %1949 = vmatprep.mubr.msk.bf16.mxu1 %vm524_vm0, %v2011_v31 }
  0x4a   : > { %1914 = vmatmul.mubr.msk.bf16.gmra.mrb[24].mxu0 %vm524_vm0, %v2012_v32  ;;  %1950 = vmatmul.mubr.msk.bf16.gmra.mrb[24].mxu1 %vm524_vm0, %v2013_v33 }
  0x4b   : > { %1917 = vmatprep.mubr.msk.bf16.mxu0 %vm524_vm0, %v2014_v34  ;;  %1953 = vmatprep.mubr.msk.bf16.mxu1 %vm524_vm0, %v2015_v35 }
  0x52   : > { %1918 = vmatmul.mubr.msk.bf16.gmra.mrb[28].mxu0 %vm524_vm0, %v2016_v36  ;;  %1954 = vmatmul.mubr.msk.bf16.gmra.mrb[28].mxu1 %vm524_vm0, %v2017_v37 }
  0x53   : > { %1921 = vmatprep.mubr.msk.bf16.mxu0 %vm524_vm0, %v2018_v38  ;;  %1957 = vmatprep.mubr.msk.bf16.mxu1 %vm524_vm0, %v2019_v39 }
  0x5a   : > { %1922 = vmatmul.mubr.msk.bf16.gmra.mrb[32].mxu0 %vm524_vm0, %v2020_v40  ;;  %1958 = vmatmul.mubr.msk.bf16.gmra.mrb[32].mxu1 %vm524_vm0, %v2021_v41 }
  0xed   : > { %v1891_v43 = vpop.f32.mrb[0].mxu0  ;;  %v1927_v44 = vpop.f32.mrb[0].mxu1 }
  0xee   : > { %v680_v45 = vadd.f32 %v1891_v43, %v2168_v42  ;;  %v824_v46 = vadd.f32 %v1927_v44, %v2168_v42  ;;  %v671_v47 = vpop.f32.mrb[1].mxu0  ;;  %v815_v48 = vpop.f32.mrb[1].mxu1 }
  0xef   : > { %v672_v50 = vadd.f32 %v2168_v42, %v671_v47  ;;  %v816_v51 = vadd.f32 %v2168_v42, %v815_v48  ;;  %v1892_v52 = vpop.f32.mrb[2].mxu0  ;;  %v1928_v53 = vpop.f32.mrb[2].mxu1 }
  0xf0   : > { %v960_v54 = vmax.f32 %v680_v45, 0.0  ;;  %v996_v55 = vmax.f32 %v824_v46, 0.0  ;;  %v683_v56 = vadd.f32 %v1892_v52, %v2168_v42  ;;  %v827_v57 = vadd.f32 %v1928_v53, %v2168_v42  ;;  %v674_v58 = vpop.f32.mrb[3].mxu0  ;;  %v818_v59 = vpop.f32.mrb[3].mxu1 }
  0xf1   : > { %v958_v61 = vmax.f32 %v672_v50, 0.0  ;;  %v994_v62 = vmax.f32 %v816_v51, 0.0  ;;  %v675_v63 = vadd.f32 %v2168_v42, %v674_v58  ;;  %v819_v0 = vadd.f32 %v2168_v42, %v818_v59 }
  0xf2   : > { %v1039_v1 = vmul.f32 %v2175_v49, %v960_v54  ;;  %v1075_v2 = vmul.f32 %v2175_v49, %v996_v55  ;;  %v961_v3 = vmax.f32 %v683_v56, 0.0  ;;  %v997_v4 = vmax.f32 %v827_v57, 0.0 }
  0xf3   : > { %v1037_v5 = vmul.f32 %v2175_v49, %v958_v61  ;;  %v1073_v6 = vmul.f32 %v2175_v49, %v994_v62  ;;  %v959_v7 = vmax.f32 %v675_v63, 0.0  ;;  %v995_v8 = vmax.f32 %v819_v0, 0.0 }
  0xf4   : > { %v1118_v9 = vadd.f32 %v2184_v60, %v1039_v1  ;;  %v1154_v10 = vadd.f32 %v2184_v60, %v1075_v2  ;;  %v1040_v11 = vmul.f32 %v2175_v49, %v961_v3  ;;  %v1076_v12 = vmul.f32 %v2175_v49, %v997_v4 }
  0xf5   : > { %v1116_v13 = vadd.f32 %v2184_v60, %v1037_v5  ;;  %v1152_v14 = vadd.f32 %v2184_v60, %v1073_v6  ;;  %v1038_v15 = vmul.f32 %v2175_v49, %v959_v7  ;;  %v1074_v16 = vmul.f32 %v2175_v49, %v995_v8  ;;  %v1895_v17 = vpop.f32.mrb[4].mxu0  ;;  %v1931_v18 = vpop.f32.mrb[4].mxu1 }
  0xf6   : > { %v1768_v19 = vpack.c.bf16 %v1118_v9, %v1118_v9  ;;  %v1804_v20 = vpack.c.bf16 %v1154_v10, %v1154_v10  ;;  %v1119_v21 = vadd.f32 %v2184_v60, %v1040_v11  ;;  %v1155_v22 = vadd.f32 %v2184_v60, %v1076_v12  ;;  %v687_v23 = vpop.f32.mrb[5].mxu0  ;;  %v831_v24 = vpop.f32.mrb[5].mxu1 }
  0xf7   : > { %v1766_v25 = vpack.c.bf16 %v1116_v13, %v1116_v13  ;;  %v1802_v26 = vpack.c.bf16 %v1152_v14, %v1152_v14  ;;  %v1117_v27 = vadd.f32 %v2184_v60, %v1038_v15  ;;  %v1153_v28 = vadd.f32 %v2184_v60, %v1074_v16  ;;  %v1896_v29 = vpop.f32.mrb[6].mxu0  ;;  %v1932_v30 = vpop.f32.mrb[6].mxu1 }
  0xf8   : > { %1479 = vst.msk [vmem:[%s2201_s19 + $0x8] sm:$0xf] %vm1476_vm2, %v1768_v19  ;;  %1515 = vst.msk [vmem:[%s2201_s19 + $0x98] sm:$0xf] %vm1476_vm2, %v1804_v20  ;;  %v1769_v31 = vpack.c.bf16 %v1119_v21, %v1119_v21  ;;  %v1805_v32 = vpack.c.bf16 %v1155_v22, %v1155_v22  ;;  %v696_v33 = vadd.f32 %v1895_v17, %v2168_v42  ;;  %v690_v35 = vpop.f32.mrb[7].mxu0  ;;  %v834_v36 = vpop.f32.mrb[7].mxu1 }
  0xf9   : > { %v840_v34 = vadd.f32 %v1931_v18, %v2168_v42  ;;  %1477 = vst.msk [vmem:[%s2201_s19] sm:$0xf] %vm1476_vm2, %v1766_v25  ;;  %1513 = vst.msk [vmem:[%s2201_s19 + $0x90] sm:$0xf] %vm1476_vm2, %v1802_v26  ;;  %v1767_v37 = vpack.c.bf16 %v1117_v27, %v1117_v27  ;;  %v1803_v38 = vpack.c.bf16 %v1153_v28, %v1153_v28 }
  0xfa   : > { %v688_v39 = vadd.f32 %v2168_v42, %v687_v23  ;;  %v832_v40 = vadd.f32 %v2168_v42, %v831_v24  ;;  %1480 = vst.msk [vmem:[%s2201_s19 + $0xc] sm:$0xf] %vm1476_vm2, %v1769_v31  ;;  %1516 = vst.msk [vmem:[%s2201_s19 + $0x9c] sm:$0xf] %vm1476_vm2, %v1805_v32  ;;  %v964_v41 = vmax.f32 %v696_v33, 0.0  ;;  %v699_v44 = vadd.f32 %v1896_v29, %v2168_v42 }
  0xfb   : > { %v1000_v43 = vmax.f32 %v840_v34, 0.0  ;;  %v843_v45 = vadd.f32 %v1932_v30, %v2168_v42  ;;  %1478 = vst.msk [vmem:[%s2201_s19 + $0x4] sm:$0xf] %vm1476_vm2, %v1767_v37  ;;  %1514 = vst.msk [vmem:[%s2201_s19 + $0x94] sm:$0xf] %vm1476_vm2, %v1803_v38  ;;  %v691_v48 = vadd.f32 %v2168_v42, %v690_v35  ;;  %v835_v50 = vadd.f32 %v2168_v42, %v834_v36 }
  0xfc   : > { %v962_v46 = vmax.f32 %v688_v39, 0.0  ;;  %v998_v47 = vmax.f32 %v832_v40, 0.0  ;;  %v1043_v51 = vmul.f32 %v2175_v49, %v964_v41  ;;  %v965_v53 = vmax.f32 %v699_v44, 0.0 }
  0xfd   : > { %v1079_v52 = vmul.f32 %v2175_v49, %v1000_v43  ;;  %v1001_v54 = vmax.f32 %v843_v45, 0.0  ;;  %v963_v57 = vmax.f32 %v691_v48, 0.0  ;;  %v999_v58 = vmax.f32 %v835_v50, 0.0  ;;  %v1899_v59 = vpop.f32.mrb[8].mxu0  ;;  %v1935_v61 = vpop.f32.mrb[8].mxu1 }
  0xfe   : > { %v1041_v55 = vmul.f32 %v2175_v49, %v962_v46  ;;  %v1077_v56 = vmul.f32 %v2175_v49, %v998_v47  ;;  %v1122_v62 = vadd.f32 %v2184_v60, %v1043_v51  ;;  %v1044_v0 = vmul.f32 %v2175_v49, %v965_v53  ;;  %v703_v2 = vpop.f32.mrb[9].mxu0  ;;  %v847_v3 = vpop.f32.mrb[9].mxu1 }
  0xff   : > { %v1158_v63 = vadd.f32 %v2184_v60, %v1079_v52  ;;  %v1080_v1 = vmul.f32 %v2175_v49, %v1001_v54  ;;  %v1042_v6 = vmul.f32 %v2175_v49, %v963_v57  ;;  %v1078_v7 = vmul.f32 %v2175_v49, %v999_v58  ;;  %v1900_v8 = vpop.f32.mrb[10].mxu0  ;;  %v1936_v9 = vpop.f32.mrb[10].mxu1 }
 0x100   : > { %v1120_v4 = vadd.f32 %v2184_v60, %v1041_v55  ;;  %v1156_v5 = vadd.f32 %v2184_v60, %v1077_v56  ;;  %v1772_v10 = vpack.c.bf16 %v1122_v62, %v1122_v62  ;;  %v1123_v12 = vadd.f32 %v2184_v60, %v1044_v0  ;;  %v706_v14 = vpop.f32.mrb[11].mxu0  ;;  %v850_v15 = vpop.f32.mrb[11].mxu1 }
 0x101   : > { %v1808_v11 = vpack.c.bf16 %v1158_v63, %v1158_v63  ;;  %v1159_v13 = vadd.f32 %v2184_v60, %v1080_v1  ;;  %v1121_v18 = vadd.f32 %v2184_v60, %v1042_v6  ;;  %v1157_v19 = vadd.f32 %v2184_v60, %v1078_v7 }
 0x102   : > { %v1770_v16 = vpack.c.bf16 %v1120_v4, %v1120_v4  ;;  %v1806_v17 = vpack.c.bf16 %v1156_v5, %v1156_v5  ;;  %1483 = vst.msk [vmem:[%s2201_s19 + $0x18] sm:$0xf] %vm1476_vm2, %v1772_v10  ;;  %v1773_v20 = vpack.c.bf16 %v1123_v12, %v1123_v12  ;;  %v712_v22 = vadd.f32 %v1899_v59, %v2168_v42 }
 0x103   : > { %1519 = vst.msk [vmem:[%s2201_s19 + $0xa8] sm:$0xf] %vm1476_vm2, %v1808_v11  ;;  %v1809_v21 = vpack.c.bf16 %v1159_v13, %v1159_v13  ;;  %v856_v23 = vadd.f32 %v1935_v61, %v2168_v42  ;;  %v1771_v24 = vpack.c.bf16 %v1121_v18, %v1121_v18  ;;  %v1807_v25 = vpack.c.bf16 %v1157_v19, %v1157_v19 }
 0x104   : > { %1481 = vst.msk [vmem:[%s2201_s19 + $0x10] sm:$0xf] %vm1476_vm2, %v1770_v16  ;;  %1517 = vst.msk [vmem:[%s2201_s19 + $0xa0] sm:$0xf] %vm1476_vm2, %v1806_v17  ;;  %v704_v26 = vadd.f32 %v2168_v42, %v703_v2  ;;  %v848_v27 = vadd.f32 %v2168_v42, %v847_v3  ;;  %v968_v28 = vmax.f32 %v712_v22, 0.0  ;;  %v715_v30 = vadd.f32 %v1900_v8, %v2168_v42 }
 0x105   : > { %1484 = vst.msk [vmem:[%s2201_s19 + $0x1c] sm:$0xf] %vm1476_vm2, %v1773_v20  ;;  %1520 = vst.msk [vmem:[%s2201_s19 + $0xac] sm:$0xf] %vm1476_vm2, %v1809_v21  ;;  %v1004_v29 = vmax.f32 %v856_v23, 0.0  ;;  %v859_v31 = vadd.f32 %v1936_v9, %v2168_v42  ;;  %v707_v34 = vadd.f32 %v2168_v42, %v706_v14  ;;  %v851_v35 = vadd.f32 %v2168_v42, %v850_v15  ;;  %v1903_v36 = vpop.f32.mrb[12].mxu0 }
 0x106   : > { %1482 = vst.msk [vmem:[%s2201_s19 + $0x14] sm:$0xf] %vm1476_vm2, %v1771_v24  ;;  %1518 = vst.msk [vmem:[%s2201_s19 + $0xa4] sm:$0xf] %vm1476_vm2, %v1807_v25  ;;  %v966_v32 = vmax.f32 %v704_v26, 0.0  ;;  %v1002_v33 = vmax.f32 %v848_v27, 0.0  ;;  %v1047_v38 = vmul.f32 %v2175_v49, %v968_v28  ;;  %v728_v9 = vadd.f32 %v1903_v36, %v2168_v42 }
 0x107   : > { %v1939_v37 = vpop.f32.mrb[12].mxu1  ;;  %v1083_v39 = vmul.f32 %v2175_v49, %v1004_v29  ;;  %v969_v40 = vmax.f32 %v715_v30, 0.0  ;;  %v1005_v41 = vmax.f32 %v859_v31, 0.0  ;;  %v719_v43 = vpop.f32.mrb[13].mxu0  ;;  %v967_v47 = vmax.f32 %v707_v34, 0.0 }
 0x108   : > { %v863_v44 = vpop.f32.mrb[13].mxu1  ;;  %v1045_v45 = vmul.f32 %v2175_v49, %v966_v32  ;;  %v1081_v46 = vmul.f32 %v2175_v49, %v1002_v33  ;;  %v1003_v48 = vmax.f32 %v851_v35, 0.0  ;;  %v1904_v50 = vpop.f32.mrb[14].mxu0  ;;  %v1126_v52 = vadd.f32 %v2184_v60, %v1047_v38 }
 0x109   : > { %v1940_v51 = vpop.f32.mrb[14].mxu1  ;;  %v1162_v53 = vadd.f32 %v2184_v60, %v1083_v39  ;;  %v1048_v54 = vmul.f32 %v2175_v49, %v969_v40  ;;  %v1084_v55 = vmul.f32 %v2175_v49, %v1005_v41  ;;  %v722_v56 = vpop.f32.mrb[15].mxu0  ;;  %v1046_v61 = vmul.f32 %v2175_v49, %v967_v47 }
 0x10a   : > { %v866_v57 = vpop.f32.mrb[15].mxu1  ;;  %v1124_v58 = vadd.f32 %v2184_v60, %v1045_v45  ;;  %v1160_v59 = vadd.f32 %v2184_v60, %v1081_v46  ;;  %v1082_v62 = vmul.f32 %v2175_v49, %v1003_v48  ;;  %v1776_v63 = vpack.c.bf16 %v1126_v52, %v1126_v52 }
 0x10b   : > { %v1812_v0 = vpack.c.bf16 %v1162_v53, %v1162_v53  ;;  %v1127_v1 = vadd.f32 %v2184_v60, %v1048_v54  ;;  %v1163_v2 = vadd.f32 %v2184_v60, %v1084_v55  ;;  %v1125_v5 = vadd.f32 %v2184_v60, %v1046_v61 }
 0x10c   : > { %v1774_v3 = vpack.c.bf16 %v1124_v58, %v1124_v58  ;;  %v1810_v4 = vpack.c.bf16 %v1160_v59, %v1160_v59  ;;  %v1161_v6 = vadd.f32 %v2184_v60, %v1082_v62  ;;  %1487 = vst.msk [vmem:[%s2201_s19 + $0x28] sm:$0xf] %vm1476_vm2, %v1776_v63  ;;  %v872_v10 = vadd.f32 %v1939_v37, %v2168_v42 }
 0x10d   : > { %1523 = vst.msk [vmem:[%s2201_s19 + $0xb8] sm:$0xf] %vm1476_vm2, %v1812_v0  ;;  %v1777_v7 = vpack.c.bf16 %v1127_v1, %v1127_v1  ;;  %v1813_v8 = vpack.c.bf16 %v1163_v2, %v1163_v2  ;;  %v1775_v11 = vpack.c.bf16 %v1125_v5, %v1125_v5  ;;  %v720_v13 = vadd.f32 %v2168_v42, %v719_v43  ;;  %v1907_v15 = vpop.f32.mrb[16].mxu0  ;;  %v1943_v16 = vpop.f32.mrb[16].mxu1 }
 0x10e   : > { %1485 = vst.msk [vmem:[%s2201_s19 + $0x20] sm:$0xf] %vm1476_vm2, %v1774_v3  ;;  %1521 = vst.msk [vmem:[%s2201_s19 + $0xb0] sm:$0xf] %vm1476_vm2, %v1810_v4  ;;  %v1811_v12 = vpack.c.bf16 %v1161_v6, %v1161_v6  ;;  %v864_v14 = vadd.f32 %v2168_v42, %v863_v44  ;;  %v972_v17 = vmax.f32 %v728_v9, 0.0  ;;  %v1008_v18 = vmax.f32 %v872_v10, 0.0 }
 0x10f   : > { %1488 = vst.msk [vmem:[%s2201_s19 + $0x2c] sm:$0xf] %vm1476_vm2, %v1777_v7  ;;  %1524 = vst.msk [vmem:[%s2201_s19 + $0xbc] sm:$0xf] %vm1476_vm2, %v1813_v8  ;;  %v731_v19 = vadd.f32 %v1904_v50, %v2168_v42  ;;  %v875_v20 = vadd.f32 %v1940_v51, %v2168_v42  ;;  %v735_v21 = vpop.f32.mrb[17].mxu0  ;;  %v879_v22 = vpop.f32.mrb[17].mxu1  ;;  %v723_v25 = vadd.f32 %v2168_v42, %v722_v56 }
 0x110   : > { %1486 = vst.msk [vmem:[%s2201_s19 + $0x24] sm:$0xf] %vm1476_vm2, %v1775_v11  ;;  %1522 = vst.msk [vmem:[%s2201_s19 + $0xb4] sm:$0xf] %vm1476_vm2, %v1811_v12  ;;  %v970_v23 = vmax.f32 %v720_v13, 0.0  ;;  %v1006_v24 = vmax.f32 %v864_v14, 0.0  ;;  %v867_v26 = vadd.f32 %v2168_v42, %v866_v57  ;;  %v1051_v29 = vmul.f32 %v2175_v49, %v972_v17 }
 0x111   : > { %v1908_v27 = vpop.f32.mrb[18].mxu0  ;;  %v1944_v28 = vpop.f32.mrb[18].mxu1  ;;  %v1087_v30 = vmul.f32 %v2175_v49, %v1008_v18  ;;  %v973_v31 = vmax.f32 %v731_v19, 0.0  ;;  %v1009_v32 = vmax.f32 %v875_v20, 0.0  ;;  %v971_v37 = vmax.f32 %v723_v25, 0.0 }
 0x112   : > { %v738_v33 = vpop.f32.mrb[19].mxu0  ;;  %v882_v34 = vpop.f32.mrb[19].mxu1  ;;  %v1049_v35 = vmul.f32 %v2175_v49, %v970_v23  ;;  %v1085_v36 = vmul.f32 %v2175_v49, %v1006_v24  ;;  %v1007_v38 = vmax.f32 %v867_v26, 0.0  ;;  %v1130_v39 = vadd.f32 %v2184_v60, %v1051_v29 }
 0x113   : > { %v1166_v40 = vadd.f32 %v2184_v60, %v1087_v30  ;;  %v1052_v41 = vmul.f32 %v2175_v49, %v973_v31  ;;  %v1088_v43 = vmul.f32 %v2175_v49, %v1009_v32  ;;  %v1050_v46 = vmul.f32 %v2175_v49, %v971_v37 }
 0x114   : > { %v1128_v44 = vadd.f32 %v2184_v60, %v1049_v35  ;;  %v1164_v45 = vadd.f32 %v2184_v60, %v1085_v36  ;;  %v1086_v47 = vmul.f32 %v2175_v49, %v1007_v38  ;;  %v1780_v48 = vpack.c.bf16 %v1130_v39, %v1130_v39 }
 0x115   : > { %v1816_v50 = vpack.c.bf16 %v1166_v40, %v1166_v40  ;;  %v1131_v51 = vadd.f32 %v2184_v60, %v1052_v41  ;;  %v1167_v52 = vadd.f32 %v2184_v60, %v1088_v43  ;;  %v1129_v55 = vadd.f32 %v2184_v60, %v1050_v46  ;;  %v2331_v57 = vpop.f32.mrb[20].mxu0  ;;  %v2333_v58 = vpop.f32.mrb[20].mxu1 }
 0x116   : > { %v1778_v53 = vpack.c.bf16 %v1128_v44, %v1128_v44  ;;  %v1814_v54 = vpack.c.bf16 %v1164_v45, %v1164_v45  ;;  %v1165_v56 = vadd.f32 %v2184_v60, %v1086_v47  ;;  %1491 = vst.msk [vmem:[%s2201_s19 + $0x38] sm:$0xf] %vm1476_vm2, %v1780_v48  ;;  %v744_v62 = vadd.f32 %v1907_v15, %v2168_v42  ;;  %v2341_v0 = vpop.f32.mrb[21].mxu0  ;;  %v2343_v1 = vpop.f32.mrb[21].mxu1 }
 0x117   : > { %1527 = vst.msk [vmem:[%s2201_s19 + $0xc8] sm:$0xf] %vm1476_vm2, %v1816_v50  ;;  %v1781_v59 = vpack.c.bf16 %v1131_v51, %v1131_v51  ;;  %v1817_v61 = vpack.c.bf16 %v1167_v52, %v1167_v52  ;;  %v888_v63 = vadd.f32 %v1943_v16, %v2168_v42  ;;  %v1779_v2 = vpack.c.bf16 %v1129_v55, %v1129_v55  ;;  %v2351_v6 = vpop.f32.mrb[22].mxu0  ;;  %v2353_v7 = vpop.f32.mrb[22].mxu1 }
 0x118   : > { %1489 = vst.msk [vmem:[%s2201_s19 + $0x30] sm:$0xf] %vm1476_vm2, %v1778_v53  ;;  %1525 = vst.msk [vmem:[%s2201_s19 + $0xc0] sm:$0xf] %vm1476_vm2, %v1814_v54  ;;  %v1815_v3 = vpack.c.bf16 %v1165_v56, %v1165_v56  ;;  %v736_v4 = vadd.f32 %v2168_v42, %v735_v21  ;;  %v880_v5 = vadd.f32 %v2168_v42, %v879_v22  ;;  %v976_v8 = vmax.f32 %v744_v62, 0.0  ;;  %v754_v12 = vpop.f32.mrb[23].mxu0 }
 0x119   : > { %1492 = vst.msk [vmem:[%s2201_s19 + $0x3c] sm:$0xf] %vm1476_vm2, %v1781_v59  ;;  %1528 = vst.msk [vmem:[%s2201_s19 + $0xcc] sm:$0xf] %vm1476_vm2, %v1817_v61  ;;  %v1012_v9 = vmax.f32 %v888_v63, 0.0  ;;  %v747_v10 = vadd.f32 %v1908_v27, %v2168_v42  ;;  %v891_v11 = vadd.f32 %v1944_v28, %v2168_v42  ;;  %v898_v13 = vpop.f32.mrb[23].mxu1  ;;  %v739_v16 = vadd.f32 %v2168_v42, %v738_v33 }
 0x11a   : > { %1490 = vst.msk [vmem:[%s2201_s19 + $0x34] sm:$0xf] %vm1476_vm2, %v1779_v2  ;;  %1526 = vst.msk [vmem:[%s2201_s19 + $0xc4] sm:$0xf] %vm1476_vm2, %v1815_v3  ;;  %v974_v14 = vmax.f32 %v736_v4, 0.0  ;;  %v1010_v15 = vmax.f32 %v880_v5, 0.0  ;;  %v883_v17 = vadd.f32 %v2168_v42, %v882_v34  ;;  %v1055_v18 = vmul.f32 %v2175_v49, %v976_v8 }
 0x11b   : > { %v1091_v19 = vmul.f32 %v2175_v49, %v1012_v9  ;;  %v977_v20 = vmax.f32 %v747_v10, 0.0  ;;  %v1013_v21 = vmax.f32 %v891_v11, 0.0  ;;  %v975_v24 = vmax.f32 %v739_v16, 0.0 }
 0x11c   : > { %v1053_v22 = vmul.f32 %v2175_v49, %v974_v14  ;;  %v1089_v23 = vmul.f32 %v2175_v49, %v1010_v15  ;;  %v1011_v25 = vmax.f32 %v883_v17, 0.0  ;;  %v1134_v26 = vadd.f32 %v2184_v60, %v1055_v18 }
 0x11d   : > { %v1170_v27 = vadd.f32 %v2184_v60, %v1091_v19  ;;  %v1056_v28 = vmul.f32 %v2175_v49, %v977_v20  ;;  %v1092_v29 = vmul.f32 %v2175_v49, %v1013_v21  ;;  %v1054_v32 = vmul.f32 %v2175_v49, %v975_v24  ;;  %v2379_v34 = vpop.f32.mrb[24].mxu0  ;;  %v2381_v35 = vpop.f32.mrb[24].mxu1 }
 0x11e   : > { %v1132_v30 = vadd.f32 %v2184_v60, %v1053_v22  ;;  %v1168_v31 = vadd.f32 %v2184_v60, %v1089_v23  ;;  %v1090_v33 = vmul.f32 %v2175_v49, %v1011_v25  ;;  %v1784_v36 = vpack.c.bf16 %v1134_v26, %v1134_v26  ;;  %v2385_v40 = vpop.f32.mrb[25].mxu0  ;;  %v2387_v41 = vpop.f32.mrb[25].mxu1 }
 0x11f   : > { %v1820_v37 = vpack.c.bf16 %v1170_v27, %v1170_v27  ;;  %v1135_v38 = vadd.f32 %v2184_v60, %v1056_v28  ;;  %v1171_v39 = vadd.f32 %v2184_v60, %v1092_v29  ;;  %v1133_v45 = vadd.f32 %v2184_v60, %v1054_v32  ;;  %v2391_v47 = vpop.f32.mrb[26].mxu0  ;;  %v2393_v48 = vpop.f32.mrb[26].mxu1 }
 0x120   : > { %v1782_v43 = vpack.c.bf16 %v1132_v30, %v1132_v30  ;;  %v1818_v44 = vpack.c.bf16 %v1168_v31, %v1168_v31  ;;  %v1169_v46 = vadd.f32 %v2184_v60, %v1090_v33  ;;  %1495 = vst.msk [vmem:[%s2201_s19 + $0x48] sm:$0xf] %vm1476_vm2, %v1784_v36  ;;  %v760_v52 = vadd.f32 %v2331_v57, %v2168_v42  ;;  %v2403_v54 = vpop.f32.mrb[27].mxu0  ;;  %v2405_v55 = vpop.f32.mrb[27].mxu1 }
 0x121   : > { %1531 = vst.msk [vmem:[%s2201_s19 + $0xd8] sm:$0xf] %vm1476_vm2, %v1820_v37  ;;  %v1785_v50 = vpack.c.bf16 %v1135_v38, %v1135_v38  ;;  %v1821_v51 = vpack.c.bf16 %v1171_v39, %v1171_v39  ;;  %v904_v53 = vadd.f32 %v2333_v58, %v2168_v42  ;;  %v1783_v56 = vpack.c.bf16 %v1133_v45, %v1133_v45 }
 0x122   : > { %1493 = vst.msk [vmem:[%s2201_s19 + $0x40] sm:$0xf] %vm1476_vm2, %v1782_v43  ;;  %1529 = vst.msk [vmem:[%s2201_s19 + $0xd0] sm:$0xf] %vm1476_vm2, %v1818_v44  ;;  %v1819_v59 = vpack.c.bf16 %v1169_v46, %v1169_v46  ;;  %v752_v61 = vadd.f32 %v2168_v42, %v2341_v0  ;;  %v896_v57 = vadd.f32 %v2168_v42, %v2343_v1  ;;  %v980_v58 = vmax.f32 %v760_v52, 0.0 }
 0x123   : > { %1496 = vst.msk [vmem:[%s2201_s19 + $0x4c] sm:$0xf] %vm1476_vm2, %v1785_v50  ;;  %1532 = vst.msk [vmem:[%s2201_s19 + $0xdc] sm:$0xf] %vm1476_vm2, %v1821_v51  ;;  %v1016_v62 = vmax.f32 %v904_v53, 0.0  ;;  %v763_v63 = vadd.f32 %v2351_v6, %v2168_v42  ;;  %v907_v2 = vadd.f32 %v2353_v7, %v2168_v42  ;;  %v755_v1 = vadd.f32 %v2168_v42, %v754_v12 }
 0x124   : > { %1494 = vst.msk [vmem:[%s2201_s19 + $0x44] sm:$0xf] %vm1476_vm2, %v1783_v56  ;;  %1530 = vst.msk [vmem:[%s2201_s19 + $0xd4] sm:$0xf] %vm1476_vm2, %v1819_v59  ;;  %v978_v0 = vmax.f32 %v752_v61, 0.0  ;;  %v1014_v3 = vmax.f32 %v896_v57, 0.0  ;;  %v899_v4 = vadd.f32 %v2168_v42, %v898_v13  ;;  %v1059_v5 = vmul.f32 %v2175_v49, %v980_v58 }
 0x125   : > { %v1095_v8 = vmul.f32 %v2175_v49, %v1016_v62  ;;  %v981_v9 = vmax.f32 %v763_v63, 0.0  ;;  %v1017_v10 = vmax.f32 %v907_v2, 0.0  ;;  %v979_v11 = vmax.f32 %v755_v1, 0.0  ;;  %v2433_v15 = vpop.f32.mrb[28].mxu0  ;;  %v2435_v16 = vpop.f32.mrb[28].mxu1 }
 0x126   : > { %v1057_v6 = vmul.f32 %v2175_v49, %v978_v0  ;;  %v1093_v7 = vmul.f32 %v2175_v49, %v1014_v3  ;;  %v1015_v14 = vmax.f32 %v899_v4, 0.0  ;;  %v1138_v12 = vadd.f32 %v2184_v60, %v1059_v5  ;;  %v2441_v19 = vpop.f32.mrb[29].mxu0  ;;  %v2443_v20 = vpop.f32.mrb[29].mxu1 }
 0x127   : > { %v1174_v13 = vadd.f32 %v2184_v60, %v1095_v8  ;;  %v1060_v17 = vmul.f32 %v2175_v49, %v981_v9  ;;  %v1096_v18 = vmul.f32 %v2175_v49, %v1017_v10  ;;  %v1058_v23 = vmul.f32 %v2175_v49, %v979_v11  ;;  %v2449_v25 = vpop.f32.mrb[30].mxu0  ;;  %v2451_v26 = vpop.f32.mrb[30].mxu1 }
 0x128   : > { %v1136_v21 = vadd.f32 %v2184_v60, %v1057_v6  ;;  %v1172_v22 = vadd.f32 %v2184_v60, %v1093_v7  ;;  %v1094_v24 = vmul.f32 %v2175_v49, %v1015_v14  ;;  %v1788_v27 = vpack.c.bf16 %v1138_v12, %v1138_v12  ;;  %v2455_v31 = vpop.f32.mrb[31].mxu0  ;;  %v2457_v32 = vpop.f32.mrb[31].mxu1 }
 0x129   : > { %v1824_v28 = vpack.c.bf16 %v1174_v13, %v1174_v13  ;;  %v1139_v29 = vadd.f32 %v2184_v60, %v1060_v17  ;;  %v1175_v30 = vadd.f32 %v2184_v60, %v1096_v18  ;;  %v1137_v37 = vadd.f32 %v2184_v60, %v1058_v23 }
 0x12a   : > { %v1786_v33 = vpack.c.bf16 %v1136_v21, %v1136_v21  ;;  %v1822_v36 = vpack.c.bf16 %v1172_v22, %v1172_v22  ;;  %v1173_v38 = vadd.f32 %v2184_v60, %v1094_v24  ;;  %1499 = vst.msk [vmem:[%s2201_s19 + $0x58] sm:$0xf] %vm1476_vm2, %v1788_v27  ;;  %v776_v44 = vadd.f32 %v2379_v34, %v2168_v42 }
 0x12b   : > { %1535 = vst.msk [vmem:[%s2201_s19 + $0xe8] sm:$0xf] %vm1476_vm2, %v1824_v28  ;;  %v1789_v39 = vpack.c.bf16 %v1139_v29, %v1139_v29  ;;  %v1825_v43 = vpack.c.bf16 %v1175_v30, %v1175_v30  ;;  %v920_v45 = vadd.f32 %v2381_v35, %v2168_v42  ;;  %v1787_v46 = vpack.c.bf16 %v1137_v37, %v1137_v37 }
 0x12c   : > { %1497 = vst.msk [vmem:[%s2201_s19 + $0x50] sm:$0xf] %vm1476_vm2, %v1786_v33  ;;  %1533 = vst.msk [vmem:[%s2201_s19 + $0xe0] sm:$0xf] %vm1476_vm2, %v1822_v36  ;;  %v1823_v50 = vpack.c.bf16 %v1173_v38, %v1173_v38  ;;  %v768_v51 = vadd.f32 %v2168_v42, %v2385_v40  ;;  %v912_v52 = vadd.f32 %v2168_v42, %v2387_v41  ;;  %v984_v34 = vmax.f32 %v776_v44, 0.0 }
 0x12d   : > { %1500 = vst.msk [vmem:[%s2201_s19 + $0x5c] sm:$0xf] %vm1476_vm2, %v1789_v39  ;;  %1536 = vst.msk [vmem:[%s2201_s19 + $0xec] sm:$0xf] %vm1476_vm2, %v1825_v43  ;;  %v1020_v53 = vmax.f32 %v920_v45, 0.0  ;;  %v779_v35 = vadd.f32 %v2391_v47, %v2168_v42  ;;  %v923_v56 = vadd.f32 %v2393_v48, %v2168_v42  ;;  %v771_v41 = vadd.f32 %v2168_v42, %v2403_v54  ;;  %v2493_v57 = vpop.f32.mrb[32].mxu0 }
 0x12e   : > { %1498 = vst.msk [vmem:[%s2201_s19 + $0x54] sm:$0xf] %vm1476_vm2, %v1787_v46  ;;  %1534 = vst.msk [vmem:[%s2201_s19 + $0xe4] sm:$0xf] %vm1476_vm2, %v1823_v50  ;;  %v982_v40 = vmax.f32 %v768_v51, 0.0  ;;  %v1018_v59 = vmax.f32 %v912_v52, 0.0  ;;  %v915_v61 = vadd.f32 %v2168_v42, %v2405_v55  ;;  %v1063_v47 = vmul.f32 %v2175_v49, %v984_v34 }
 0x12f   : > { %v2495_v58 = vpop.f32.mrb[32].mxu1  ;;  %v1099_v48 = vmul.f32 %v2175_v49, %v1020_v53  ;;  %v985_v62 = vmax.f32 %v779_v35, 0.0  ;;  %v1021_v63 = vmax.f32 %v923_v56, 0.0  ;;  %v2499_v2 = vpop.f32.mrb[33].mxu0  ;;  %v983_v1 = vmax.f32 %v771_v41, 0.0 }
 0x130   : > { %v2501_v0 = vpop.f32.mrb[33].mxu1  ;;  %v1061_v3 = vmul.f32 %v2175_v49, %v982_v40  ;;  %v1097_v54 = vmul.f32 %v2175_v49, %v1018_v59  ;;  %v1019_v55 = vmax.f32 %v915_v61, 0.0  ;;  %v2505_v4 = vpop.f32.mrb[34].mxu0  ;;  %v1142_v8 = vadd.f32 %v2184_v60, %v1063_v47 }
 0x131   : > { %v2507_v5 = vpop.f32.mrb[34].mxu1  ;;  %v1178_v9 = vadd.f32 %v2184_v60, %v1099_v48  ;;  %v1064_v10 = vmul.f32 %v2175_v49, %v985_v62  ;;  %v1100_v6 = vmul.f32 %v2175_v49, %v1021_v63  ;;  %v2513_v7 = vpop.f32.mrb[35].mxu0  ;;  %v1062_v13 = vmul.f32 %v2175_v49, %v983_v1 }
 0x132   : > { %v2515_v11 = vpop.f32.mrb[35].mxu1  ;;  %v1140_v14 = vadd.f32 %v2184_v60, %v1061_v3  ;;  %v1176_v12 = vadd.f32 %v2184_v60, %v1097_v54  ;;  %v1098_v17 = vmul.f32 %v2175_v49, %v1019_v55  ;;  %v1792_v18 = vpack.c.bf16 %v1142_v8, %v1142_v8 }
 0x133   : > { %v1828_v21 = vpack.c.bf16 %v1178_v9, %v1178_v9  ;;  %v1143_v22 = vadd.f32 %v2184_v60, %v1064_v10  ;;  %v1179_v23 = vadd.f32 %v2184_v60, %v1100_v6  ;;  %v1141_v28 = vadd.f32 %v2184_v60, %v1062_v13 }
 0x134   : > { %v1790_v24 = vpack.c.bf16 %v1140_v14, %v1140_v14  ;;  %v1826_v27 = vpack.c.bf16 %v1176_v12, %v1176_v12  ;;  %v1177_v29 = vadd.f32 %v2184_v60, %v1098_v17  ;;  %1503 = vst.msk [vmem:[%s2201_s19 + $0x68] sm:$0xf] %vm1476_vm2, %v1792_v18  ;;  %v792_v36 = vadd.f32 %v2433_v15, %v2168_v42 }
 0x135   : > { %1539 = vst.msk [vmem:[%s2201_s19 + $0xf8] sm:$0xf] %vm1476_vm2, %v1828_v21  ;;  %v1793_v30 = vpack.c.bf16 %v1143_v22, %v1143_v22  ;;  %v1829_v33 = vpack.c.bf16 %v1179_v23, %v1179_v23  ;;  %v936_v37 = vadd.f32 %v2435_v16, %v2168_v42  ;;  %v1791_v38 = vpack.c.bf16 %v1141_v28, %v1141_v28 }
 0x136   : > { %1501 = vst.msk [vmem:[%s2201_s19 + $0x60] sm:$0xf] %vm1476_vm2, %v1790_v24  ;;  %1537 = vst.msk [vmem:[%s2201_s19 + $0xf0] sm:$0xf] %vm1476_vm2, %v1826_v27  ;;  %v1827_v39 = vpack.c.bf16 %v1177_v29, %v1177_v29  ;;  %v784_v43 = vadd.f32 %v2168_v42, %v2441_v19  ;;  %v928_v44 = vadd.f32 %v2168_v42, %v2443_v20  ;;  %v988_v15 = vmax.f32 %v792_v36, 0.0 }
 0x137   : > { %1504 = vst.msk [vmem:[%s2201_s19 + $0x6c] sm:$0xf] %vm1476_vm2, %v1793_v30  ;;  %1540 = vst.msk [vmem:[%s2201_s19 + $0xfc] sm:$0xf] %vm1476_vm2, %v1829_v33  ;;  %v1024_v45 = vmax.f32 %v936_v37, 0.0  ;;  %v795_v16 = vadd.f32 %v2449_v25, %v2168_v42  ;;  %v939_v46 = vadd.f32 %v2451_v26, %v2168_v42  ;;  %v787_v20 = vadd.f32 %v2168_v42, %v2455_v31 }
 0x138   : > { %1502 = vst.msk [vmem:[%s2201_s19 + $0x64] sm:$0xf] %vm1476_vm2, %v1791_v38  ;;  %1538 = vst.msk [vmem:[%s2201_s19 + $0xf4] sm:$0xf] %vm1476_vm2, %v1827_v39  ;;  %v986_v19 = vmax.f32 %v784_v43, 0.0  ;;  %v1022_v50 = vmax.f32 %v928_v44, 0.0  ;;  %v931_v51 = vadd.f32 %v2168_v42, %v2457_v32  ;;  %v1067_v52 = vmul.f32 %v2175_v49, %v988_v15 }
 0x139   : > { %v1103_v34 = vmul.f32 %v2175_v49, %v1024_v45  ;;  %v989_v25 = vmax.f32 %v795_v16, 0.0  ;;  %v1025_v53 = vmax.f32 %v939_v46, 0.0  ;;  %v987_v56 = vmax.f32 %v787_v20, 0.0 }
 0x13a   : > { %v1065_v26 = vmul.f32 %v2175_v49, %v986_v19  ;;  %v1101_v35 = vmul.f32 %v2175_v49, %v1022_v50  ;;  %v1023_v40 = vmax.f32 %v931_v51, 0.0  ;;  %v1146_v59 = vadd.f32 %v2184_v60, %v1067_v52 }
 0x13b   : > { %v1182_v31 = vadd.f32 %v2184_v60, %v1103_v34  ;;  %v1068_v32 = vmul.f32 %v2175_v49, %v989_v25  ;;  %v1104_v41 = vmul.f32 %v2175_v49, %v1025_v53  ;;  %v1066_v48 = vmul.f32 %v2175_v49, %v987_v56 }
 0x13c   : > { %v1144_v61 = vadd.f32 %v2184_v60, %v1065_v26  ;;  %v1180_v47 = vadd.f32 %v2184_v60, %v1101_v35  ;;  %v1102_v62 = vmul.f32 %v2175_v49, %v1023_v40  ;;  %v1796_v63 = vpack.c.bf16 %v1146_v59, %v1146_v59 }
 0x13d   : > { %v1832_v3 = vpack.c.bf16 %v1182_v31, %v1182_v31  ;;  %v1147_v54 = vadd.f32 %v2184_v60, %v1068_v32  ;;  %v1183_v1 = vadd.f32 %v2184_v60, %v1104_v41  ;;  %v1145_v9 = vadd.f32 %v2184_v60, %v1066_v48 }
 0x13e   : > { %v1794_v55 = vpack.c.bf16 %v1144_v61, %v1144_v61  ;;  %v1830_v8 = vpack.c.bf16 %v1180_v47, %v1180_v47  ;;  %v1181_v10 = vadd.f32 %v2184_v60, %v1102_v62  ;;  %1507 = vst.msk [vmem:[%s2201_s19 + $0x78] sm:$0xf] %vm1476_vm2, %v1796_v63  ;;  %v808_v12 = vadd.f32 %v2493_v57, %v2168_v42 }
 0x13f   : > { %1543 = vst.msk [vmem:[%s2201_s19 + $0x108] sm:$0xf] %vm1476_vm2, %v1832_v3  ;;  %v1797_v6 = vpack.c.bf16 %v1147_v54, %v1147_v54  ;;  %v1833_v14 = vpack.c.bf16 %v1183_v1, %v1183_v1  ;;  %v952_v13 = vadd.f32 %v2495_v58, %v2168_v42  ;;  %v1795_v17 = vpack.c.bf16 %v1145_v9, %v1145_v9 }
 0x140   : > { %1505 = vst.msk [vmem:[%s2201_s19 + $0x70] sm:$0xf] %vm1476_vm2, %v1794_v55  ;;  %1541 = vst.msk [vmem:[%s2201_s19 + $0x100] sm:$0xf] %vm1476_vm2, %v1830_v8  ;;  %v1831_v18 = vpack.c.bf16 %v1181_v10, %v1181_v10  ;;  %v800_v21 = vadd.f32 %v2168_v42, %v2499_v2  ;;  %v944_v22 = vadd.f32 %v2168_v42, %v2501_v0  ;;  %v992_v57 = vmax.f32 %v808_v12, 0.0 }
 0x141   : > { %1508 = vst.msk [vmem:[%s2201_s19 + $0x7c] sm:$0xf] %vm1476_vm2, %v1797_v6  ;;  %1544 = vst.msk [vmem:[%s2201_s19 + $0x10c] sm:$0xf] %vm1476_vm2, %v1833_v14  ;;  %v1028_v23 = vmax.f32 %v952_v13, 0.0  ;;  %v811_v58 = vadd.f32 %v2505_v4, %v2168_v42  ;;  %v955_v24 = vadd.f32 %v2507_v5, %v2168_v42  ;;  %v803_v0 = vadd.f32 %v2168_v42, %v2513_v7 }
 0x142   : > { %1506 = vst.msk [vmem:[%s2201_s19 + $0x74] sm:$0xf] %vm1476_vm2, %v1795_v17  ;;  %1542 = vst.msk [vmem:[%s2201_s19 + $0x104] sm:$0xf] %vm1476_vm2, %v1831_v18  ;;  %v990_v2 = vmax.f32 %v800_v21, 0.0  ;;  %v1026_v27 = vmax.f32 %v944_v22, 0.0  ;;  %v947_v28 = vadd.f32 %v2168_v42, %v2515_v11  ;;  %v1071_v29 = vmul.f32 %v2175_v49, %v992_v57 }
 0x143   : > { %v1107_v30 = vmul.f32 %v2175_v49, %v1028_v23  ;;  %v993_v4 = vmax.f32 %v811_v58, 0.0  ;;  %v1029_v33 = vmax.f32 %v955_v24, 0.0  ;;  %v991_v37 = vmax.f32 %v803_v0, 0.0 }
 0x144   : > { %v1069_v5 = vmul.f32 %v2175_v49, %v990_v2  ;;  %v1105_v36 = vmul.f32 %v2175_v49, %v1026_v27  ;;  %v1027_v38 = vmax.f32 %v947_v28, 0.0  ;;  %v1150_v39 = vadd.f32 %v2184_v60, %v1071_v29 }
 0x145   : > { %v1186_v7 = vadd.f32 %v2184_v60, %v1107_v30  ;;  %v1072_v42 = vmul.f32 %v2175_v49, %v993_v4  ;;  %v1108_v11 = vmul.f32 %v2175_v49, %v1029_v33  ;;  %v1070_v15 = vmul.f32 %v2175_v49, %v991_v37 }
 0x146   : > { %v1148_v43 = vadd.f32 %v2184_v60, %v1069_v5  ;;  %v1184_v44 = vadd.f32 %v2184_v60, %v1105_v36  ;;  %v1106_v45 = vmul.f32 %v2175_v49, %v1027_v38  ;;  %v1800_v16 = vpack.c.bf16 %v1150_v39, %v1150_v39 }
 0x147   : > { %v1836_v46 = vpack.c.bf16 %v1186_v7, %v1186_v7  ;;  %v1151_v19 = vadd.f32 %v2184_v60, %v1072_v42  ;;  %v1187_v50 = vadd.f32 %v2184_v60, %v1108_v11  ;;  %v1149_v52 = vadd.f32 %v2184_v60, %v1070_v15 }
 0x148   : > { %v1798_v20 = vpack.c.bf16 %v1148_v43, %v1148_v43  ;;  %v1834_v51 = vpack.c.bf16 %v1184_v44, %v1184_v44  ;;  %v1185_v34 = vadd.f32 %v2184_v60, %v1106_v45  ;;  %1511 = vst.msk [vmem:[%s2201_s19 + $0x88] sm:$0xf] %vm1476_vm2, %v1800_v16 }
 0x149   : > { %1547 = vst.msk [vmem:[%s2201_s19 + $0x118] sm:$0xf] %vm1476_vm2, %v1836_v46  ;;  %v1801_v49 = vpack.c.bf16 %v1151_v19, %v1151_v19  ;;  %v1837_v25 = vpack.c.bf16 %v1187_v50, %v1187_v50  ;;  %v1799_v53 = vpack.c.bf16 %v1149_v52, %v1149_v52 }
 0x14a   : > { %1509 = vst.msk [vmem:[%s2201_s19 + $0x80] sm:$0xf] %vm1476_vm2, %v1798_v20  ;;  %1545 = vst.msk [vmem:[%s2201_s19 + $0x110] sm:$0xf] %vm1476_vm2, %v1834_v51  ;;  %v1835_v26 = vpack.c.bf16 %v1185_v34, %v1185_v34 }
 0x14b   : > { %1512 = vst.msk [vmem:[%s2201_s19 + $0x8c] sm:$0xf] %vm1476_vm2, %v1801_v49  ;;  %1548 = vst.msk [vmem:[%s2201_s19 + $0x11c] sm:$0xf] %vm1476_vm2, %v1837_v25 }
 0x14c   : > { %1510 = vst.msk [vmem:[%s2201_s19 + $0x84] sm:$0xf] %vm1476_vm2, %v1799_v53  ;;  %1546 = vst.msk [vmem:[%s2201_s19 + $0x114] sm:$0xf] %vm1476_vm2, %v1835_v26 }
 0x14d PF: > { %s15_s18 = sadd.s32 1, %s2028_s18  }
 0x14e   : > { %p12_p4 = scmp.ge.s32.totalorder %s15_s18, 4  }
 0x150   :  { %14 = sbr.rel (!%p12_p4) target bundleno = 1 (0x1), region = 70 }

// kernel: net_forward.8
= control target key start
LH: loop header
LB: loop body
LE: loop exit
PB: predicated region body
PF: predicated region fallthrough
CT: control target
= control target key end

     0   :  { %v802_v0 = vmov 0   ;;  %vm239_vm0 = vcmask 130048   ;;  %vm605_vm1 = vcmask 125952   ;;  %s1138_s1 = inlined_call_operand.vmem [shape: bf16[144,16], index: 1, kind: input, shape index: {}]   ;;  %s1139_s0 = inlined_call_operand.vmem [shape: bf16[200,144], index: 0, kind: input, shape index: {}]   ;;  %s1140_s2 = inlined_call_operand.vmem [shape: f32[1,16], index: 2, kind: input, shape index: {}]   ;;  %s1141_s3 = inlined_call_operand.vmem [shape: f32[1,16], index: 3, kind: input, shape index: {}]   ;;  %s1142_s4 = inlined_call_operand.vmem [shape: f32[1,16], index: 4, kind: input, shape index: {}]   ;;  %s1143_s5 = inlined_call_operand.vmem [shape: bf16[200,16], index: 5, kind: output, shape index: {}]  }
   0x1   :  { %279 = vmatprep.subr.bf16.mxu0 %v802_v0  ;;  %v755_v1 = vld [vmem:[%s1138_s1] sm:$0xff]   ;;  %736 = vmatprep.subr.bf16.mxu1 %v802_v0  ;;  %v756_v2 = vld [vmem:[%s1138_s1 + $0x8] sm:$0xff]   ;;  %v757_v3 = vld [vmem:[%s1138_s1 + $0x10] sm:$0xff]  }
   0x2   :  { %280 = vmatpush1.bf16.msra.mxu0 %v755_v1  ;;  %745 = vmatpush1.bf16.msra.mxu1 %v755_v1  ;;  %v758_v4 = vld [vmem:[%s1138_s1 + $0x18] sm:$0xff]   ;;  %v766_v5 = vld [vmem:[%s1139_s0 + $0x4] ss:$8 sps:$4 sm:$0xff]   ;;  %v761_v9 = vld [vmem:[%s1138_s1 + $0x30] sm:$0xff]  }
   0x3   :  { %281 = vmatprep.subr.bf16.mxu0 %v802_v0  ;;  %737 = vmatprep.subr.bf16.mxu1 %v802_v0  ;;  %v769_v6 = vld [vmem:[%s1139_s0 + $0x74] ss:$8 sps:$4 sm:$0xff]   ;;  %v759_v7 = vld [vmem:[%s1138_s1 + $0x20] sm:$0xff]   ;;  %v760_v8 = vld [vmem:[%s1138_s1 + $0x28] sm:$0xff]  }
   0x4   :  { %671 = vmatprep.mubr.msk.bf16.mxu0 %vm239_vm0, %v766_v5  ;;  %678 = vmatprep.mubr.msk.bf16.mxu1 %vm239_vm0, %v769_v6  ;;  %v762_v10 = vld [vmem:[%s1138_s1 + $0x38] sm:$0xff]   ;;  %v763_v11 = vld [vmem:[%s1138_s1 + $0x40] sm:$0xff]  }
   0x5   :  { %v764_v12 = vld [vmem:[%s1139_s0] ss:$8 sps:$4 sm:$0xff]   ;;  %v767_v13 = vld [vmem:[%s1139_s0 + $0x70] ss:$8 sps:$4 sm:$0xff]   ;;  %v770_v14 = vld [vmem:[%s1139_s0 + $0x14] ss:$8 sps:$4 sm:$0xff]  }
   0x6   :  { %282 = vmatpush1.bf16.msra.mxu0 %v756_v2  ;;  %746 = vmatpush1.bf16.msra.mxu1 %v756_v2  ;;  %v773_v15 = vld [vmem:[%s1139_s0 + $0x84] ss:$8 sps:$4 sm:$0xff]   ;;  %v772_v16 = vld [vmem:[%s1139_s0 + $0x10] ss:$8 sps:$4 sm:$0xff]   ;;  %v777_v17 = vld [vmem:[%s1139_s0 + $0x80] ss:$8 sps:$4 sm:$0xff]  }
   0x7   :  { %283 = vmatprep.subr.bf16.mxu0 %v802_v0  ;;  %738 = vmatprep.subr.bf16.mxu1 %v802_v0  ;;  %v775_v18 = vld [vmem:[%s1139_s0 + $0x24] ss:$8 sps:$4 sm:$0xff]   ;;  %v779_v19 = vld [vmem:[%s1139_s0 + $0x94] ss:$8 sps:$4 sm:$0xff]   ;;  %v778_v20 = vld [vmem:[%s1139_s0 + $0x20] ss:$8 sps:$4 sm:$0xff]  }
   0x8   :  { %v783_v21 = vld [vmem:[%s1139_s0 + $0x90] ss:$8 sps:$4 sm:$0xff]   ;;  %v781_v22 = vld [vmem:[%s1139_s0 + $0x34] ss:$8 sps:$4 sm:$0xff]   ;;  %v785_v23 = vld [vmem:[%s1139_s0 + $0xa4] ss:$8 sps:$4 sm:$0xff]  }
   0x9   :  { %v784_v24 = vld [vmem:[%s1139_s0 + $0x30] ss:$8 sps:$4 sm:$0xff]   ;;  %v789_v25 = vld [vmem:[%s1139_s0 + $0xa0] ss:$8 sps:$4 sm:$0xff]   ;;  %v787_v26 = vld [vmem:[%s1139_s0 + $0x44] ss:$8 sps:$4 sm:$0xff]  }
   0xa   :  { %284 = vmatpush1.bf16.msra.mxu0 %v757_v3  ;;  %747 = vmatpush1.bf16.msra.mxu1 %v757_v3  ;;  %v791_v27 = vld [vmem:[%s1139_s0 + $0xb4] ss:$8 sps:$4 sm:$0xff]   ;;  %v45_v28 = vld [vmem:[%s1139_s0 + $0xc0] sm:$0xff]  ;;  %v795_v30 = vld [vmem:[%s1139_s0 + $0xb0] ss:$8 sps:$4 sm:$0xff]  }
   0xb   :  { %285 = vmatprep.subr.bf16.mxu0 %v802_v0  ;;  %739 = vmatprep.subr.bf16.mxu1 %v802_v0  ;;  %v790_v29 = vld [vmem:[%s1139_s0 + $0x40] ss:$8 sps:$4 sm:$0xff]   ;;  %v793_v31 = vld [vmem:[%s1139_s0 + $0x54] ss:$8 sps:$4 sm:$0xff]   ;;  %v661_v32 = vcombine.high %v45_v28, %v45_v28  ;;  %v796_v33 = vld [vmem:[%s1139_s0 + $0x50] ss:$8 sps:$4 sm:$0xff]   ;;  %v660_v34 = vcombine.low %v45_v28, %v45_v28 }
   0xc   :  { %v798_v35 = vld [vmem:[%s1139_s0 + $0x64] ss:$8 sps:$4 sm:$0xff]   ;;  %v801_v36 = vld [vmem:[%s1139_s0 + $0x60] ss:$8 sps:$4 sm:$0xff]  }
   0xd   :  { %v951_v37 = vld [vmem:[%s1140_s2] ss:$0 sm:$0xff] }
   0xe   :  { %286 = vmatpush1.bf16.msra.mxu0 %v758_v4  ;;  %748 = vmatpush1.bf16.msra.mxu1 %v758_v4  ;;  %v958_v44 = vld [vmem:[%s1141_s3] ss:$0 sm:$0xff] }
   0xf   :  { %287 = vmatprep.subr.bf16.mxu0 %v802_v0  ;;  %740 = vmatprep.subr.bf16.mxu1 %v802_v0  ;;  %v965_v53 = vld [vmem:[%s1142_s4] ss:$0 sm:$0xff] }
  0x12   :  { %288 = vmatpush1.bf16.msra.mxu0 %v759_v7  ;;  %749 = vmatpush1.bf16.msra.mxu1 %v759_v7 }
  0x13   :  { %289 = vmatprep.subr.bf16.mxu0 %v802_v0  ;;  %741 = vmatprep.subr.bf16.mxu1 %v802_v0 }
  0x16   :  { %290 = vmatpush1.bf16.msra.mxu0 %v760_v8  ;;  %750 = vmatpush1.bf16.msra.mxu1 %v760_v8 }
  0x17   :  { %291 = vmatprep.subr.bf16.mxu0 %v802_v0  ;;  %742 = vmatprep.subr.bf16.mxu1 %v802_v0 }
  0x1a   :  { %292 = vmatpush1.bf16.msra.mxu0 %v761_v9  ;;  %751 = vmatpush1.bf16.msra.mxu1 %v761_v9 }
  0x1b   :  { %293 = vmatprep.subr.bf16.mxu0 %v802_v0  ;;  %743 = vmatprep.subr.bf16.mxu1 %v802_v0 }
  0x1e   :  { %294 = vmatpush1.bf16.msra.mxu0 %v762_v10  ;;  %752 = vmatpush1.bf16.msra.mxu1 %v762_v10 }
  0x1f   :  { %295 = vmatprep.subr.bf16.mxu0 %v802_v0  ;;  %744 = vmatprep.subr.bf16.mxu1 %v802_v0 }
  0x22   :  { %296 = vmatpush1.bf16.msra.mxu0 %v763_v11  ;;  %753 = vmatpush1.bf16.msra.mxu1 %v763_v11 }
  0x25   :  { %312 = vmatmul.mubr.bf16.vlgmr.msra.gmra.mrb[0].mxu0 %v764_v12  ;;  %368 = vmatmul.mubr.bf16.vlgmr.msra.gmra.mrb[0].mxu1 %v767_v13 }
  0x26   :  { %672 = vmatprep.mubr.msk.bf16.mxu0 %vm239_vm0, %v770_v14  ;;  %679 = vmatprep.mubr.msk.bf16.mxu1 %vm239_vm0, %v773_v15 }
  0x2d   :  { %320 = vmatmul.mubr.bf16.gmra.mrb[4].mxu0 %v772_v16  ;;  %376 = vmatmul.mubr.bf16.gmra.mrb[4].mxu1 %v777_v17 }
  0x2e   :  { %673 = vmatprep.mubr.msk.bf16.mxu0 %vm239_vm0, %v775_v18  ;;  %680 = vmatprep.mubr.msk.bf16.mxu1 %vm239_vm0, %v779_v19 }
  0x35   :  { %328 = vmatmul.mubr.bf16.gmra.mrb[8].mxu0 %v778_v20  ;;  %384 = vmatmul.mubr.bf16.gmra.mrb[8].mxu1 %v783_v21 }
  0x36   :  { %674 = vmatprep.mubr.msk.bf16.mxu0 %vm239_vm0, %v781_v22  ;;  %681 = vmatprep.mubr.msk.bf16.mxu1 %vm239_vm0, %v785_v23 }
  0x3d   :  { %336 = vmatmul.mubr.bf16.gmra.mrb[12].mxu0 %v784_v24  ;;  %392 = vmatmul.mubr.bf16.gmra.mrb[12].mxu1 %v789_v25 }
  0x3e   :  { %675 = vmatprep.mubr.msk.bf16.mxu0 %vm239_vm0, %v787_v26  ;;  %682 = vmatprep.mubr.msk.bf16.mxu1 %vm239_vm0, %v791_v27 }
  0x45   :  { %344 = vmatmul.mubr.bf16.gmra.mrb[16].mxu0 %v790_v29  ;;  %400 = vmatmul.mubr.bf16.gmra.mrb[16].mxu1 %v795_v30 }
  0x46   :  { %676 = vmatprep.mubr.msk.bf16.mxu0 %vm239_vm0, %v793_v31  ;;  %683 = vmatprep.mubr.msk.bf16.mxu1 %vm239_vm0, %v661_v32 }
  0x4d   :  { %352 = vmatmul.mubr.bf16.gmra.mrb[20].mxu0 %v796_v33  ;;  %408 = vmatmul.mubr.bf16.gmra.mrb[20].mxu1 %v660_v34 }
  0x4e   :  { %677 = vmatprep.mubr.msk.bf16.mxu0 %vm239_vm0, %v798_v35 }
  0x55   :  { %360 = vmatmul.mubr.bf16.gmra.mrb[24].mxu0 %v801_v36 }
  0xf8   :  { %v313_v38 = vpop.f32.mrb[0].mxu0  ;;  %v369_v39 = vpop.f32.mrb[0].mxu1 }
  0xf9   :  { %v314_v40 = vadd.f32 %v951_v37, %v313_v38  ;;  %v315_v41 = vpop.f32.mrb[1].mxu0  ;;  %v370_v42 = vadd.f32 %v951_v37, %v369_v39  ;;  %v371_v43 = vpop.f32.mrb[1].mxu1 }
  0xfa   :  { %v316_v45 = vpop.f32.mrb[2].mxu0  ;;  %v372_v46 = vpop.f32.mrb[2].mxu1 }
  0xfb   :  { %v415_v47 = vmax.f32 %v314_v40, 0.0  ;;  %v317_v48 = vadd.f32 %v951_v37, %v316_v45  ;;  %v318_v49 = vpop.f32.mrb[3].mxu0  ;;  %v429_v50 = vmax.f32 %v370_v42, 0.0  ;;  %v373_v51 = vadd.f32 %v951_v37, %v372_v46  ;;  %v374_v52 = vpop.f32.mrb[3].mxu1 }
  0xfd   :  { %v447_v54 = vmul.f32 %v958_v44, %v415_v47  ;;  %v416_v55 = vmax.f32 %v317_v48, 0.0  ;;  %v461_v56 = vmul.f32 %v958_v44, %v429_v50  ;;  %v430_v57 = vmax.f32 %v373_v51, 0.0 }
  0xff   :  { %v479_v58 = vadd.f32 %v965_v53, %v447_v54  ;;  %v448_v59 = vmul.f32 %v958_v44, %v416_v55  ;;  %v493_v60 = vadd.f32 %v965_v53, %v461_v56  ;;  %v462_v61 = vmul.f32 %v958_v44, %v430_v57 }
 0x100   :  { %v321_v62 = vpop.f32.mrb[4].mxu0  ;;  %v377_v63 = vpop.f32.mrb[4].mxu1 }
 0x101   :  { %v711_v0 = vpack.c.bf16 %v479_v58, %v479_v58  ;;  %v480_v1 = vadd.f32 %v965_v53, %v448_v59  ;;  %v725_v2 = vpack.c.bf16 %v493_v60, %v493_v60  ;;  %v322_v3 = vadd.f32 %v951_v37, %v321_v62  ;;  %v323_v4 = vpop.f32.mrb[5].mxu0  ;;  %v379_v5 = vpop.f32.mrb[5].mxu1 }
 0x102   :  { %v494_v6 = vadd.f32 %v965_v53, %v462_v61  ;;  %v324_v7 = vpop.f32.mrb[6].mxu0  ;;  %v378_v8 = vadd.f32 %v951_v37, %v377_v63  ;;  %v380_v9 = vpop.f32.mrb[6].mxu1 }
 0x103   :  { %606 = vst.msk [vmem:[%s1143_s5] sm:$0xf] %vm605_vm1, %v711_v0  ;;  %v712_v10 = vpack.c.bf16 %v480_v1, %v480_v1  ;;  %620 = vst.msk [vmem:[%s1143_s5 + $0x38] sm:$0xf] %vm605_vm1, %v725_v2  ;;  %v417_v11 = vmax.f32 %v322_v3, 0.0  ;;  %v325_v12 = vadd.f32 %v951_v37, %v324_v7  ;;  %v326_v13 = vpop.f32.mrb[7].mxu0  ;;  %v381_v14 = vadd.f32 %v951_v37, %v380_v9 }
 0x104   :  { %v382_v15 = vpop.f32.mrb[7].mxu1  ;;  %v726_v16 = vpack.c.bf16 %v494_v6, %v494_v6  ;;  %v431_v17 = vmax.f32 %v378_v8, 0.0 }
 0x105   :  { %607 = vst.msk [vmem:[%s1143_s5 + $0x4] sm:$0xf] %vm605_vm1, %v712_v10  ;;  %v449_v18 = vmul.f32 %v958_v44, %v417_v11  ;;  %v418_v19 = vmax.f32 %v325_v12, 0.0  ;;  %v432_v20 = vmax.f32 %v381_v14, 0.0 }
 0x106   :  { %621 = vst.msk [vmem:[%s1143_s5 + $0x3c] sm:$0xf] %vm605_vm1, %v726_v16  ;;  %v463_v21 = vmul.f32 %v958_v44, %v431_v17 }
 0x107   :  { %v481_v22 = vadd.f32 %v965_v53, %v449_v18  ;;  %v450_v23 = vmul.f32 %v958_v44, %v418_v19  ;;  %v464_v24 = vmul.f32 %v958_v44, %v432_v20 }
 0x108   :  { %v495_v25 = vadd.f32 %v965_v53, %v463_v21  ;;  %v329_v26 = vpop.f32.mrb[8].mxu0  ;;  %v385_v27 = vpop.f32.mrb[8].mxu1 }
 0x109   :  { %v713_v28 = vpack.c.bf16 %v481_v22, %v481_v22  ;;  %v482_v29 = vadd.f32 %v965_v53, %v450_v23  ;;  %v330_v30 = vadd.f32 %v951_v37, %v329_v26  ;;  %v331_v31 = vpop.f32.mrb[9].mxu0  ;;  %v496_v32 = vadd.f32 %v965_v53, %v464_v24  ;;  %v387_v33 = vpop.f32.mrb[9].mxu1 }
 0x10a   :  { %v727_v34 = vpack.c.bf16 %v495_v25, %v495_v25  ;;  %v332_v35 = vpop.f32.mrb[10].mxu0  ;;  %v386_v36 = vadd.f32 %v951_v37, %v385_v27  ;;  %v388_v38 = vpop.f32.mrb[10].mxu1 }
 0x10b   :  { %608 = vst.msk [vmem:[%s1143_s5 + $0x8] sm:$0xf] %vm605_vm1, %v713_v28  ;;  %v714_v39 = vpack.c.bf16 %v482_v29, %v482_v29  ;;  %v419_v40 = vmax.f32 %v330_v30, 0.0  ;;  %v728_v41 = vpack.c.bf16 %v496_v32, %v496_v32  ;;  %v333_v42 = vadd.f32 %v951_v37, %v332_v35  ;;  %v334_v43 = vpop.f32.mrb[11].mxu0  ;;  %v390_v45 = vpop.f32.mrb[11].mxu1 }
 0x10c   :  { %622 = vst.msk [vmem:[%s1143_s5 + $0x40] sm:$0xf] %vm605_vm1, %v727_v34  ;;  %v433_v46 = vmax.f32 %v386_v36, 0.0  ;;  %v389_v47 = vadd.f32 %v951_v37, %v388_v38 }
 0x10d   :  { %609 = vst.msk [vmem:[%s1143_s5 + $0xc] sm:$0xf] %vm605_vm1, %v714_v39  ;;  %v451_v48 = vmul.f32 %v958_v44, %v419_v40  ;;  %623 = vst.msk [vmem:[%s1143_s5 + $0x44] sm:$0xf] %vm605_vm1, %v728_v41  ;;  %v420_v49 = vmax.f32 %v333_v42, 0.0 }
 0x10e   :  { %v465_v50 = vmul.f32 %v958_v44, %v433_v46  ;;  %v434_v51 = vmax.f32 %v389_v47, 0.0 }
 0x10f   :  { %v483_v52 = vadd.f32 %v965_v53, %v451_v48  ;;  %v452_v54 = vmul.f32 %v958_v44, %v420_v49 }
 0x110   :  { %v497_v55 = vadd.f32 %v965_v53, %v465_v50  ;;  %v337_v56 = vpop.f32.mrb[12].mxu0  ;;  %v466_v57 = vmul.f32 %v958_v44, %v434_v51  ;;  %v393_v58 = vpop.f32.mrb[12].mxu1 }
 0x111   :  { %v715_v59 = vpack.c.bf16 %v483_v52, %v483_v52  ;;  %v484_v60 = vadd.f32 %v965_v53, %v452_v54  ;;  %v338_v61 = vadd.f32 %v951_v37, %v337_v56  ;;  %v339_v62 = vpop.f32.mrb[13].mxu0  ;;  %v394_v63 = vadd.f32 %v951_v37, %v393_v58  ;;  %v395_v0 = vpop.f32.mrb[13].mxu1 }
 0x112   :  { %v729_v1 = vpack.c.bf16 %v497_v55, %v497_v55  ;;  %v498_v2 = vadd.f32 %v965_v53, %v466_v57  ;;  %v340_v3 = vpop.f32.mrb[14].mxu0  ;;  %v396_v4 = vpop.f32.mrb[14].mxu1 }
 0x113   :  { %610 = vst.msk [vmem:[%s1143_s5 + $0x10] sm:$0xf] %vm605_vm1, %v715_v59  ;;  %v716_v5 = vpack.c.bf16 %v484_v60, %v484_v60  ;;  %v421_v6 = vmax.f32 %v338_v61, 0.0  ;;  %v341_v7 = vadd.f32 %v951_v37, %v340_v3  ;;  %v342_v8 = vpop.f32.mrb[15].mxu0  ;;  %v435_v9 = vmax.f32 %v394_v63, 0.0  ;;  %v398_v10 = vpop.f32.mrb[15].mxu1 }
 0x114   :  { %624 = vst.msk [vmem:[%s1143_s5 + $0x48] sm:$0xf] %vm605_vm1, %v729_v1  ;;  %v730_v11 = vpack.c.bf16 %v498_v2, %v498_v2  ;;  %v397_v12 = vadd.f32 %v951_v37, %v396_v4 }
 0x115   :  { %611 = vst.msk [vmem:[%s1143_s5 + $0x14] sm:$0xf] %vm605_vm1, %v716_v5  ;;  %v453_v13 = vmul.f32 %v958_v44, %v421_v6  ;;  %v422_v14 = vmax.f32 %v341_v7, 0.0  ;;  %v467_v15 = vmul.f32 %v958_v44, %v435_v9 }
 0x116   :  { %625 = vst.msk [vmem:[%s1143_s5 + $0x4c] sm:$0xf] %vm605_vm1, %v730_v11  ;;  %v436_v16 = vmax.f32 %v397_v12, 0.0 }
 0x117   :  { %v485_v17 = vadd.f32 %v965_v53, %v453_v13  ;;  %v454_v18 = vmul.f32 %v958_v44, %v422_v14  ;;  %v499_v19 = vadd.f32 %v965_v53, %v467_v15 }
 0x118   :  { %v345_v20 = vpop.f32.mrb[16].mxu0  ;;  %v468_v21 = vmul.f32 %v958_v44, %v436_v16  ;;  %v401_v22 = vpop.f32.mrb[16].mxu1 }
 0x119   :  { %v717_v23 = vpack.c.bf16 %v485_v17, %v485_v17  ;;  %v486_v24 = vadd.f32 %v965_v53, %v454_v18  ;;  %v731_v25 = vpack.c.bf16 %v499_v19, %v499_v19  ;;  %v346_v26 = vadd.f32 %v951_v37, %v345_v20  ;;  %v347_v27 = vpop.f32.mrb[17].mxu0  ;;  %v403_v28 = vpop.f32.mrb[17].mxu1 }
 0x11a   :  { %v500_v29 = vadd.f32 %v965_v53, %v468_v21  ;;  %v348_v30 = vpop.f32.mrb[18].mxu0  ;;  %v402_v31 = vadd.f32 %v951_v37, %v401_v22  ;;  %v404_v32 = vpop.f32.mrb[18].mxu1 }
 0x11b   :  { %612 = vst.msk [vmem:[%s1143_s5 + $0x18] sm:$0xf] %vm605_vm1, %v717_v23  ;;  %v718_v33 = vpack.c.bf16 %v486_v24, %v486_v24  ;;  %626 = vst.msk [vmem:[%s1143_s5 + $0x50] sm:$0xf] %vm605_vm1, %v731_v25  ;;  %v423_v34 = vmax.f32 %v346_v26, 0.0  ;;  %v349_v35 = vadd.f32 %v951_v37, %v348_v30  ;;  %v350_v36 = vpop.f32.mrb[19].mxu0  ;;  %v405_v38 = vadd.f32 %v951_v37, %v404_v32 }
 0x11c   :  { %v406_v39 = vpop.f32.mrb[19].mxu1  ;;  %v732_v40 = vpack.c.bf16 %v500_v29, %v500_v29  ;;  %v437_v41 = vmax.f32 %v402_v31, 0.0 }
 0x11d   :  { %613 = vst.msk [vmem:[%s1143_s5 + $0x1c] sm:$0xf] %vm605_vm1, %v718_v33  ;;  %v455_v42 = vmul.f32 %v958_v44, %v423_v34  ;;  %v424_v43 = vmax.f32 %v349_v35, 0.0  ;;  %v438_v45 = vmax.f32 %v405_v38, 0.0 }
 0x11e   :  { %627 = vst.msk [vmem:[%s1143_s5 + $0x54] sm:$0xf] %vm605_vm1, %v732_v40  ;;  %v469_v46 = vmul.f32 %v958_v44, %v437_v41 }
 0x11f   :  { %v487_v47 = vadd.f32 %v965_v53, %v455_v42  ;;  %v456_v48 = vmul.f32 %v958_v44, %v424_v43  ;;  %v470_v49 = vmul.f32 %v958_v44, %v438_v45 }
 0x120   :  { %v501_v50 = vadd.f32 %v965_v53, %v469_v46  ;;  %v353_v51 = vpop.f32.mrb[20].mxu0  ;;  %v409_v52 = vpop.f32.mrb[20].mxu1 }
 0x121   :  { %v719_v54 = vpack.c.bf16 %v487_v47, %v487_v47  ;;  %v488_v55 = vadd.f32 %v965_v53, %v456_v48  ;;  %v354_v56 = vadd.f32 %v951_v37, %v353_v51  ;;  %v355_v57 = vpop.f32.mrb[21].mxu0  ;;  %v502_v58 = vadd.f32 %v965_v53, %v470_v49  ;;  %v411_v59 = vpop.f32.mrb[21].mxu1 }
 0x122   :  { %v733_v60 = vpack.c.bf16 %v501_v50, %v501_v50  ;;  %v356_v61 = vpop.f32.mrb[22].mxu0  ;;  %v410_v62 = vadd.f32 %v951_v37, %v409_v52  ;;  %v412_v63 = vpop.f32.mrb[22].mxu1 }
 0x123   :  { %614 = vst.msk [vmem:[%s1143_s5 + $0x20] sm:$0xf] %vm605_vm1, %v719_v54  ;;  %v720_v0 = vpack.c.bf16 %v488_v55, %v488_v55  ;;  %v425_v1 = vmax.f32 %v354_v56, 0.0  ;;  %v734_v2 = vpack.c.bf16 %v502_v58, %v502_v58  ;;  %v357_v3 = vadd.f32 %v951_v37, %v356_v61  ;;  %v358_v4 = vpop.f32.mrb[23].mxu0  ;;  %v413_v5 = vpop.f32.mrb[23].mxu1 }
 0x124   :  { %628 = vst.msk [vmem:[%s1143_s5 + $0x58] sm:$0xf] %vm605_vm1, %v733_v60  ;;  %v439_v6 = vmax.f32 %v410_v62, 0.0 }
 0x125   :  { %615 = vst.msk [vmem:[%s1143_s5 + $0x24] sm:$0xf] %vm605_vm1, %v720_v0  ;;  %v457_v7 = vmul.f32 %v958_v44, %v425_v1  ;;  %629 = vst.msk [vmem:[%s1143_s5 + $0x5c] sm:$0xf] %vm605_vm1, %v734_v2  ;;  %v426_v8 = vmax.f32 %v357_v3, 0.0 }
 0x126   :  { %v471_v9 = vmul.f32 %v958_v44, %v439_v6 }
 0x127   :  { %v489_v10 = vadd.f32 %v965_v53, %v457_v7  ;;  %v458_v11 = vmul.f32 %v958_v44, %v426_v8 }
 0x128   :  { %v503_v12 = vadd.f32 %v965_v53, %v471_v9  ;;  %v361_v13 = vpop.f32.mrb[24].mxu0 }
 0x129   :  { %v721_v14 = vpack.c.bf16 %v489_v10, %v489_v10  ;;  %v490_v15 = vadd.f32 %v965_v53, %v458_v11  ;;  %v362_v16 = vadd.f32 %v951_v37, %v361_v13  ;;  %v363_v17 = vpop.f32.mrb[25].mxu0 }
 0x12a   :  { %v735_v18 = vpack.c.bf16 %v503_v12, %v503_v12  ;;  %v364_v19 = vpop.f32.mrb[26].mxu0 }
 0x12b   :  { %616 = vst.msk [vmem:[%s1143_s5 + $0x28] sm:$0xf] %vm605_vm1, %v721_v14  ;;  %v722_v20 = vpack.c.bf16 %v490_v15, %v490_v15  ;;  %v427_v21 = vmax.f32 %v362_v16, 0.0  ;;  %v365_v22 = vadd.f32 %v951_v37, %v364_v19  ;;  %v366_v23 = vpop.f32.mrb[27].mxu0 }
 0x12c   :  { %630 = vst.msk [vmem:[%s1143_s5 + $0x60] sm:$0xf] %vm605_vm1, %v735_v18 }
 0x12d   :  { %617 = vst.msk [vmem:[%s1143_s5 + $0x2c] sm:$0xf] %vm605_vm1, %v722_v20  ;;  %v459_v24 = vmul.f32 %v958_v44, %v427_v21  ;;  %v428_v25 = vmax.f32 %v365_v22, 0.0 }
 0x12f   :  { %v491_v26 = vadd.f32 %v965_v53, %v459_v24  ;;  %v460_v27 = vmul.f32 %v958_v44, %v428_v25 }
 0x131   :  { %v723_v28 = vpack.c.bf16 %v491_v26, %v491_v26  ;;  %v492_v37 = vadd.f32 %v965_v53, %v460_v27 }
 0x133   :  { %618 = vst.msk [vmem:[%s1143_s5 + $0x30] sm:$0xf] %vm605_vm1, %v723_v28  ;;  %v724_v29 = vpack.c.bf16 %v492_v37, %v492_v37 }
 0x135   :  { %619 = vst.msk [vmem:[%s1143_s5 + $0x34] sm:$0xf] %vm605_vm1, %v724_v29 }

// kernel: net_forward.9
= control target key start
LH: loop header
LB: loop body
LE: loop exit
PB: predicated region body
PF: predicated region fallthrough
CT: control target
= control target key end

     0   :  { %v577_v0 = vmov 0   ;;  %vm188_vm0 = vcmask 130048   ;;  %vm436_vm1 = vcmask 125952   ;;  %s818_s1 = inlined_call_operand.vmem [shape: bf16[144,16], index: 1, kind: input, shape index: {}]   ;;  %s819_s0 = inlined_call_operand.vmem [shape: bf16[128,144], index: 0, kind: input, shape index: {}]   ;;  %s820_s2 = inlined_call_operand.vmem [shape: f32[1,16], index: 2, kind: input, shape index: {}]   ;;  %s821_s3 = inlined_call_operand.vmem [shape: f32[1,16], index: 3, kind: input, shape index: {}]   ;;  %s822_s4 = inlined_call_operand.vmem [shape: f32[1,16], index: 4, kind: input, shape index: {}]   ;;  %s823_s5 = inlined_call_operand.vmem [shape: bf16[128,16], index: 5, kind: output, shape index: {}]  }
   0x1   :  { %213 = vmatprep.subr.bf16.mxu0 %v577_v0  ;;  %525 = vmatprep.subr.bf16.mxu1 %v577_v0  ;;  %v544_v1 = vld [vmem:[%s818_s1] sm:$0xff]   ;;  %v545_v2 = vld [vmem:[%s818_s1 + $0x8] sm:$0xff]   ;;  %v546_v3 = vld [vmem:[%s818_s1 + $0x10] sm:$0xff]  }
   0x2   :  { %214 = vmatpush1.bf16.msra.mxu0 %v544_v1  ;;  %534 = vmatpush1.bf16.msra.mxu1 %v544_v1  ;;  %v547_v4 = vld [vmem:[%s818_s1 + $0x18] sm:$0xff]   ;;  %v555_v5 = vld [vmem:[%s819_s0 + $0x4] ss:$8 sps:$4 sm:$0xff]   ;;  %v550_v9 = vld [vmem:[%s818_s1 + $0x30] sm:$0xff]  }
   0x3   :  { %215 = vmatprep.subr.bf16.mxu0 %v577_v0  ;;  %526 = vmatprep.subr.bf16.mxu1 %v577_v0  ;;  %v558_v6 = vld [vmem:[%s819_s0 + $0x44] ss:$8 sps:$4 sm:$0xff]   ;;  %v551_v10 = vld [vmem:[%s818_s1 + $0x38] sm:$0xff]   ;;  %v553_v12 = vld [vmem:[%s819_s0] ss:$8 sps:$4 sm:$0xff]  }
   0x4   :  { %483 = vmatprep.mubr.msk.bf16.mxu0 %vm188_vm0, %v555_v5  ;;  %487 = vmatprep.mubr.msk.bf16.mxu1 %vm188_vm0, %v558_v6  ;;  %v548_v7 = vld [vmem:[%s818_s1 + $0x20] sm:$0xff]   ;;  %v549_v8 = vld [vmem:[%s818_s1 + $0x28] sm:$0xff]   ;;  %v559_v14 = vld [vmem:[%s819_s0 + $0x14] ss:$8 sps:$4 sm:$0xff]  }
   0x5   :  { %v552_v11 = vld [vmem:[%s818_s1 + $0x40] sm:$0xff]   ;;  %v561_v15 = vld [vmem:[%s819_s0 + $0x54] ss:$8 sps:$4 sm:$0xff]   ;;  %v563_v16 = vld [vmem:[%s819_s0 + $0x10] ss:$8 sps:$4 sm:$0xff]  }
   0x6   :  { %216 = vmatpush1.bf16.msra.mxu0 %v545_v2  ;;  %535 = vmatpush1.bf16.msra.mxu1 %v545_v2  ;;  %v556_v13 = vld [vmem:[%s819_s0 + $0x40] ss:$8 sps:$4 sm:$0xff]   ;;  %v564_v17 = vld [vmem:[%s819_s0 + $0x50] ss:$8 sps:$4 sm:$0xff]   ;;  %v565_v18 = vld [vmem:[%s819_s0 + $0x24] ss:$8 sps:$4 sm:$0xff]  }
   0x7   :  { %217 = vmatprep.subr.bf16.mxu0 %v577_v0  ;;  %527 = vmatprep.subr.bf16.mxu1 %v577_v0  ;;  %v567_v19 = vld [vmem:[%s819_s0 + $0x64] ss:$8 sps:$4 sm:$0xff]   ;;  %v569_v20 = vld [vmem:[%s819_s0 + $0x20] ss:$8 sps:$4 sm:$0xff]   ;;  %v571_v22 = vld [vmem:[%s819_s0 + $0x34] ss:$8 sps:$4 sm:$0xff]  }
   0x8   :  { %v570_v21 = vld [vmem:[%s819_s0 + $0x60] ss:$8 sps:$4 sm:$0xff]   ;;  %v573_v23 = vld [vmem:[%s819_s0 + $0x74] ss:$8 sps:$4 sm:$0xff]   ;;  %v575_v24 = vld [vmem:[%s819_s0 + $0x30] ss:$8 sps:$4 sm:$0xff]  }
   0x9   :  { %v576_v25 = vld [vmem:[%s819_s0 + $0x70] ss:$8 sps:$4 sm:$0xff]   ;;  %v694_v26 = vld [vmem:[%s820_s2] ss:$0 sm:$0xff] }
   0xa   :  { %218 = vmatpush1.bf16.msra.mxu0 %v546_v3  ;;  %536 = vmatpush1.bf16.msra.mxu1 %v546_v3  ;;  %v701_v33 = vld [vmem:[%s821_s3] ss:$0 sm:$0xff] }
   0xb   :  { %219 = vmatprep.subr.bf16.mxu0 %v577_v0  ;;  %528 = vmatprep.subr.bf16.mxu1 %v577_v0  ;;  %v708_v42 = vld [vmem:[%s822_s4] ss:$0 sm:$0xff] }
   0xe   :  { %220 = vmatpush1.bf16.msra.mxu0 %v547_v4  ;;  %537 = vmatpush1.bf16.msra.mxu1 %v547_v4 }
   0xf   :  { %221 = vmatprep.subr.bf16.mxu0 %v577_v0  ;;  %529 = vmatprep.subr.bf16.mxu1 %v577_v0 }
  0x12   :  { %222 = vmatpush1.bf16.msra.mxu0 %v548_v7  ;;  %538 = vmatpush1.bf16.msra.mxu1 %v548_v7 }
  0x13   :  { %223 = vmatprep.subr.bf16.mxu0 %v577_v0  ;;  %530 = vmatprep.subr.bf16.mxu1 %v577_v0 }
  0x16   :  { %224 = vmatpush1.bf16.msra.mxu0 %v549_v8  ;;  %539 = vmatpush1.bf16.msra.mxu1 %v549_v8 }
  0x17   :  { %225 = vmatprep.subr.bf16.mxu0 %v577_v0  ;;  %531 = vmatprep.subr.bf16.mxu1 %v577_v0 }
  0x1a   :  { %226 = vmatpush1.bf16.msra.mxu0 %v550_v9  ;;  %540 = vmatpush1.bf16.msra.mxu1 %v550_v9 }
  0x1b   :  { %227 = vmatprep.subr.bf16.mxu0 %v577_v0  ;;  %532 = vmatprep.subr.bf16.mxu1 %v577_v0 }
  0x1e   :  { %228 = vmatpush1.bf16.msra.mxu0 %v551_v10  ;;  %541 = vmatpush1.bf16.msra.mxu1 %v551_v10 }
  0x1f   :  { %229 = vmatprep.subr.bf16.mxu0 %v577_v0  ;;  %533 = vmatprep.subr.bf16.mxu1 %v577_v0 }
  0x22   :  { %230 = vmatpush1.bf16.msra.mxu0 %v552_v11  ;;  %542 = vmatpush1.bf16.msra.mxu1 %v552_v11 }
  0x25   :  { %246 = vmatmul.mubr.bf16.vlgmr.msra.gmra.mrb[0].mxu0 %v553_v12  ;;  %278 = vmatmul.mubr.bf16.vlgmr.msra.gmra.mrb[0].mxu1 %v556_v13 }
  0x26   :  { %484 = vmatprep.mubr.msk.bf16.mxu0 %vm188_vm0, %v559_v14  ;;  %488 = vmatprep.mubr.msk.bf16.mxu1 %vm188_vm0, %v561_v15 }
  0x2d   :  { %254 = vmatmul.mubr.bf16.gmra.mrb[4].mxu0 %v563_v16  ;;  %286 = vmatmul.mubr.bf16.gmra.mrb[4].mxu1 %v564_v17 }
  0x2e   :  { %485 = vmatprep.mubr.msk.bf16.mxu0 %vm188_vm0, %v565_v18  ;;  %489 = vmatprep.mubr.msk.bf16.mxu1 %vm188_vm0, %v567_v19 }
  0x35   :  { %262 = vmatmul.mubr.bf16.gmra.mrb[8].mxu0 %v569_v20  ;;  %294 = vmatmul.mubr.bf16.gmra.mrb[8].mxu1 %v570_v21 }
  0x36   :  { %486 = vmatprep.mubr.msk.bf16.mxu0 %vm188_vm0, %v571_v22  ;;  %490 = vmatprep.mubr.msk.bf16.mxu1 %vm188_vm0, %v573_v23 }
  0x3d   :  { %270 = vmatmul.mubr.bf16.gmra.mrb[12].mxu0 %v575_v24  ;;  %302 = vmatmul.mubr.bf16.gmra.mrb[12].mxu1 %v576_v25 }
  0xf8   :  { %v247_v27 = vpop.f32.mrb[0].mxu0  ;;  %v279_v28 = vpop.f32.mrb[0].mxu1 }
  0xf9   :  { %v248_v29 = vadd.f32 %v694_v26, %v247_v27  ;;  %v280_v30 = vadd.f32 %v694_v26, %v279_v28  ;;  %v249_v31 = vpop.f32.mrb[1].mxu0  ;;  %v281_v32 = vpop.f32.mrb[1].mxu1 }
  0xfa   :  { %v250_v34 = vpop.f32.mrb[2].mxu0  ;;  %v282_v35 = vpop.f32.mrb[2].mxu1 }
  0xfb   :  { %v310_v36 = vmax.f32 %v248_v29, 0.0  ;;  %v318_v37 = vmax.f32 %v280_v30, 0.0  ;;  %v251_v38 = vadd.f32 %v694_v26, %v250_v34  ;;  %v283_v39 = vadd.f32 %v694_v26, %v282_v35  ;;  %v252_v40 = vpop.f32.mrb[3].mxu0  ;;  %v284_v41 = vpop.f32.mrb[3].mxu1 }
  0xfd   :  { %v333_v43 = vmul.f32 %v701_v33, %v310_v36  ;;  %v341_v44 = vmul.f32 %v701_v33, %v318_v37  ;;  %v311_v45 = vmax.f32 %v251_v38, 0.0  ;;  %v319_v46 = vmax.f32 %v283_v39, 0.0 }
  0xff   :  { %v356_v47 = vadd.f32 %v708_v42, %v333_v43  ;;  %v364_v48 = vadd.f32 %v708_v42, %v341_v44  ;;  %v334_v49 = vmul.f32 %v701_v33, %v311_v45  ;;  %v342_v50 = vmul.f32 %v701_v33, %v319_v46 }
 0x100   :  { %v255_v51 = vpop.f32.mrb[4].mxu0  ;;  %v287_v52 = vpop.f32.mrb[4].mxu1 }
 0x101   :  { %v509_v53 = vpack.c.bf16 %v356_v47, %v356_v47  ;;  %v517_v54 = vpack.c.bf16 %v364_v48, %v364_v48  ;;  %v357_v55 = vadd.f32 %v708_v42, %v334_v49  ;;  %v365_v56 = vadd.f32 %v708_v42, %v342_v50  ;;  %v257_v57 = vpop.f32.mrb[5].mxu0  ;;  %v289_v58 = vpop.f32.mrb[5].mxu1 }
 0x102   :  { %v256_v59 = vadd.f32 %v694_v26, %v255_v51  ;;  %v288_v60 = vadd.f32 %v694_v26, %v287_v52  ;;  %v258_v61 = vpop.f32.mrb[6].mxu0  ;;  %v290_v62 = vpop.f32.mrb[6].mxu1 }
 0x103   :  { %437 = vst.msk [vmem:[%s823_s5] sm:$0xf] %vm436_vm1, %v509_v53  ;;  %445 = vst.msk [vmem:[%s823_s5 + $0x20] sm:$0xf] %vm436_vm1, %v517_v54  ;;  %v510_v63 = vpack.c.bf16 %v357_v55, %v357_v55  ;;  %v518_v0 = vpack.c.bf16 %v365_v56, %v365_v56  ;;  %v259_v1 = vadd.f32 %v694_v26, %v258_v61  ;;  %v260_v3 = vpop.f32.mrb[7].mxu0  ;;  %v292_v4 = vpop.f32.mrb[7].mxu1 }
 0x104   :  { %v291_v2 = vadd.f32 %v694_v26, %v290_v62  ;;  %v312_v5 = vmax.f32 %v256_v59, 0.0  ;;  %v320_v6 = vmax.f32 %v288_v60, 0.0 }
 0x105   :  { %438 = vst.msk [vmem:[%s823_s5 + $0x4] sm:$0xf] %vm436_vm1, %v510_v63  ;;  %446 = vst.msk [vmem:[%s823_s5 + $0x24] sm:$0xf] %vm436_vm1, %v518_v0  ;;  %v313_v7 = vmax.f32 %v259_v1, 0.0 }
 0x106   :  { %v321_v8 = vmax.f32 %v291_v2, 0.0  ;;  %v335_v9 = vmul.f32 %v701_v33, %v312_v5  ;;  %v343_v10 = vmul.f32 %v701_v33, %v320_v6 }
 0x107   :  { %v336_v11 = vmul.f32 %v701_v33, %v313_v7 }
 0x108   :  { %v344_v12 = vmul.f32 %v701_v33, %v321_v8  ;;  %v358_v13 = vadd.f32 %v708_v42, %v335_v9  ;;  %v366_v14 = vadd.f32 %v708_v42, %v343_v10  ;;  %v263_v15 = vpop.f32.mrb[8].mxu0  ;;  %v295_v16 = vpop.f32.mrb[8].mxu1 }
 0x109   :  { %v359_v17 = vadd.f32 %v708_v42, %v336_v11  ;;  %v264_v19 = vadd.f32 %v694_v26, %v263_v15  ;;  %v296_v20 = vadd.f32 %v694_v26, %v295_v16  ;;  %v265_v21 = vpop.f32.mrb[9].mxu0  ;;  %v297_v22 = vpop.f32.mrb[9].mxu1 }
 0x10a   :  { %v367_v18 = vadd.f32 %v708_v42, %v344_v12  ;;  %v511_v23 = vpack.c.bf16 %v358_v13, %v358_v13  ;;  %v519_v24 = vpack.c.bf16 %v366_v14, %v366_v14  ;;  %v266_v25 = vpop.f32.mrb[10].mxu0  ;;  %v298_v27 = vpop.f32.mrb[10].mxu1 }
 0x10b   :  { %v512_v28 = vpack.c.bf16 %v359_v17, %v359_v17  ;;  %v314_v30 = vmax.f32 %v264_v19, 0.0  ;;  %v322_v31 = vmax.f32 %v296_v20, 0.0  ;;  %v268_v32 = vpop.f32.mrb[11].mxu0  ;;  %v300_v34 = vpop.f32.mrb[11].mxu1  ;;  %v267_v35 = vadd.f32 %v694_v26, %v266_v25 }
 0x10c   :  { %v520_v29 = vpack.c.bf16 %v367_v18, %v367_v18  ;;  %439 = vst.msk [vmem:[%s823_s5 + $0x8] sm:$0xf] %vm436_vm1, %v511_v23  ;;  %447 = vst.msk [vmem:[%s823_s5 + $0x28] sm:$0xf] %vm436_vm1, %v519_v24  ;;  %v299_v36 = vadd.f32 %v694_v26, %v298_v27 }
 0x10d   :  { %440 = vst.msk [vmem:[%s823_s5 + $0xc] sm:$0xf] %vm436_vm1, %v512_v28  ;;  %v337_v37 = vmul.f32 %v701_v33, %v314_v30  ;;  %v345_v38 = vmul.f32 %v701_v33, %v322_v31  ;;  %v315_v39 = vmax.f32 %v267_v35, 0.0 }
 0x10e   :  { %448 = vst.msk [vmem:[%s823_s5 + $0x2c] sm:$0xf] %vm436_vm1, %v520_v29  ;;  %v323_v40 = vmax.f32 %v299_v36, 0.0 }
 0x10f   :  { %v360_v41 = vadd.f32 %v708_v42, %v337_v37  ;;  %v368_v43 = vadd.f32 %v708_v42, %v345_v38  ;;  %v338_v44 = vmul.f32 %v701_v33, %v315_v39 }
 0x110   :  { %v346_v45 = vmul.f32 %v701_v33, %v323_v40  ;;  %v271_v46 = vpop.f32.mrb[12].mxu0  ;;  %v303_v47 = vpop.f32.mrb[12].mxu1 }
 0x111   :  { %v513_v48 = vpack.c.bf16 %v360_v41, %v360_v41  ;;  %v521_v49 = vpack.c.bf16 %v368_v43, %v368_v43  ;;  %v272_v50 = vadd.f32 %v694_v26, %v271_v46  ;;  %v304_v51 = vadd.f32 %v694_v26, %v303_v47  ;;  %v273_v52 = vpop.f32.mrb[13].mxu0  ;;  %v305_v53 = vpop.f32.mrb[13].mxu1 }
 0x112   :  { %v361_v54 = vadd.f32 %v708_v42, %v338_v44  ;;  %v369_v55 = vadd.f32 %v708_v42, %v346_v45  ;;  %v274_v56 = vpop.f32.mrb[14].mxu0  ;;  %v306_v57 = vpop.f32.mrb[14].mxu1 }
 0x113   :  { %441 = vst.msk [vmem:[%s823_s5 + $0x10] sm:$0xf] %vm436_vm1, %v513_v48  ;;  %449 = vst.msk [vmem:[%s823_s5 + $0x30] sm:$0xf] %vm436_vm1, %v521_v49  ;;  %v316_v58 = vmax.f32 %v272_v50, 0.0  ;;  %v324_v59 = vmax.f32 %v304_v51, 0.0  ;;  %v275_v60 = vadd.f32 %v694_v26, %v274_v56  ;;  %v307_v61 = vadd.f32 %v694_v26, %v306_v57 }
 0x114   :  { %v276_v62 = vpop.f32.mrb[15].mxu0  ;;  %v308_v63 = vpop.f32.mrb[15].mxu1  ;;  %v514_v0 = vpack.c.bf16 %v361_v54, %v361_v54  ;;  %v522_v1 = vpack.c.bf16 %v369_v55, %v369_v55 }
 0x115   :  { %v339_v2 = vmul.f32 %v701_v33, %v316_v58  ;;  %v347_v3 = vmul.f32 %v701_v33, %v324_v59  ;;  %v317_v4 = vmax.f32 %v275_v60, 0.0  ;;  %v325_v5 = vmax.f32 %v307_v61, 0.0 }
 0x116   :  { %442 = vst.msk [vmem:[%s823_s5 + $0x14] sm:$0xf] %vm436_vm1, %v514_v0  ;;  %450 = vst.msk [vmem:[%s823_s5 + $0x34] sm:$0xf] %vm436_vm1, %v522_v1 }
 0x117   :  { %v362_v26 = vadd.f32 %v708_v42, %v339_v2  ;;  %v370_v6 = vadd.f32 %v708_v42, %v347_v3  ;;  %v340_v7 = vmul.f32 %v701_v33, %v317_v4  ;;  %v348_v8 = vmul.f32 %v701_v33, %v325_v5 }
 0x119   :  { %v515_v9 = vpack.c.bf16 %v362_v26, %v362_v26  ;;  %v523_v10 = vpack.c.bf16 %v370_v6, %v370_v6  ;;  %v363_v11 = vadd.f32 %v708_v42, %v340_v7  ;;  %v371_v12 = vadd.f32 %v708_v42, %v348_v8 }
 0x11b   :  { %443 = vst.msk [vmem:[%s823_s5 + $0x18] sm:$0xf] %vm436_vm1, %v515_v9  ;;  %451 = vst.msk [vmem:[%s823_s5 + $0x38] sm:$0xf] %vm436_vm1, %v523_v10  ;;  %v516_v13 = vpack.c.bf16 %v363_v11, %v363_v11  ;;  %v524_v14 = vpack.c.bf16 %v371_v12, %v371_v12 }
 0x11d   :  { %444 = vst.msk [vmem:[%s823_s5 + $0x1c] sm:$0xf] %vm436_vm1, %v516_v13  ;;  %452 = vst.msk [vmem:[%s823_s5 + $0x3c] sm:$0xf] %vm436_vm1, %v524_v14 }

// kernel: net_forward.10
= control target key start
LH: loop header
LB: loop body
LE: loop exit
PB: predicated region body
PF: predicated region fallthrough
CT: control target
= control target key end

     0   :  { %v178_v0 = vmov 0   ;;  %vm101_vm0 = vcmask 130048   ;;  %vm147_vm1 = vcmask 125952   ;;  %s235_s1 = inlined_call_operand.vmem [shape: bf16[144,16], index: 1, kind: input, shape index: {}]   ;;  %s236_s0 = inlined_call_operand.vmem [shape: bf16[8,144], index: 0, kind: input, shape index: {}]   ;;  %s237_s2 = inlined_call_operand.vmem [shape: f32[1,16], index: 2, kind: input, shape index: {}]   ;;  %s238_s3 = inlined_call_operand.vmem [shape: bf16[8,16], index: 3, kind: output, shape index: {}]  }
   0x1   :  { %105 = vmatprep.subr.bf16.mxu0 %v178_v0  ;;  %v167_v1 = vld [vmem:[%s235_s1] sm:$0xff]   ;;  %v168_v2 = vld [vmem:[%s235_s1 + $0x8] sm:$0xff]   ;;  %v169_v3 = vld [vmem:[%s235_s1 + $0x10] sm:$0xff]  }
   0x2   :  { %106 = vmatpush1.bf16.msra.mxu0 %v167_v1  ;;  %v15_v4 = vld [vmem:[%s236_s0] sm:$0xff]  ;;  %v170_v5 = vld [vmem:[%s235_s1 + $0x18] sm:$0xff]   ;;  %v172_v8 = vld [vmem:[%s235_s1 + $0x28] sm:$0xff]  }
   0x3   :  { %107 = vmatprep.subr.bf16.mxu0 %v178_v0  ;;  %v155_v6 = vcombine.high %v15_v4, %v15_v4  ;;  %v171_v7 = vld [vmem:[%s235_s1 + $0x20] sm:$0xff]   ;;  %v173_v9 = vld [vmem:[%s235_s1 + $0x30] sm:$0xff]   ;;  %v174_v10 = vld [vmem:[%s235_s1 + $0x38] sm:$0xff]   ;;  %v154_v12 = vcombine.low %v15_v4, %v15_v4 }
   0x4   :  { %v175_v11 = vld [vmem:[%s235_s1 + $0x40] sm:$0xff]  }
   0x5   :  { %165 = vmatprep.mubr.msk.bf16.mxu0 %vm101_vm0, %v155_v6  ;;  %v153_v13 = vld [vmem:[%s237_s2] ss:$0 sm:$0xff] }
   0x6   :  { %108 = vmatpush1.bf16.msra.mxu0 %v168_v2 }
   0x7   :  { %109 = vmatprep.subr.bf16.mxu0 %v178_v0 }
   0xa   :  { %110 = vmatpush1.bf16.msra.mxu0 %v169_v3 }
   0xb   :  { %111 = vmatprep.subr.bf16.mxu0 %v178_v0 }
   0xe   :  { %112 = vmatpush1.bf16.msra.mxu0 %v170_v5 }
   0xf   :  { %113 = vmatprep.subr.bf16.mxu0 %v178_v0 }
  0x12   :  { %114 = vmatpush1.bf16.msra.mxu0 %v171_v7 }
  0x13   :  { %115 = vmatprep.subr.bf16.mxu0 %v178_v0 }
  0x16   :  { %116 = vmatpush1.bf16.msra.mxu0 %v172_v8 }
  0x17   :  { %117 = vmatprep.subr.bf16.mxu0 %v178_v0 }
  0x1a   :  { %118 = vmatpush1.bf16.msra.mxu0 %v173_v9 }
  0x1b   :  { %119 = vmatprep.subr.bf16.mxu0 %v178_v0 }
  0x1e   :  { %120 = vmatpush1.bf16.msra.mxu0 %v174_v10 }
  0x1f   :  { %121 = vmatprep.subr.bf16.mxu0 %v178_v0 }
  0x22   :  { %122 = vmatpush1.bf16.msra.mxu0 %v175_v11 }
  0x25   :  { %138 = vmatmul.mubr.bf16.vlgmr.msra.gmra.mrb[0].mxu0 %v154_v12 }
  0xf8   :  { %v139_v14 = vpop.f32.mrb[0].mxu0 }
  0xf9   :  { %v140_v15 = vadd.f32 %v153_v13, %v139_v14  ;;  %v141_v16 = vpop.f32.mrb[1].mxu0 }
  0xfa   :  { %v142_v17 = vpop.f32.mrb[2].mxu0 }
  0xfb   :  { %v145_v18 = vmax.f32 %v140_v15, 0.0  ;;  %v143_v19 = vpop.f32.mrb[3].mxu0 }
  0xfd   :  { %v146_v20 = vpack.c.bf16 %v145_v18, %v145_v18 }
  0xff   :  { %148 = vst.msk [vmem:[%s238_s3] sm:$0xf] %vm147_vm1, %v146_v20 }

// kernel: net_forward.11
= control target key start
LH: loop header
LB: loop body
LE: loop exit
PB: predicated region body
PF: predicated region fallthrough
CT: control target
= control target key end

     0   :  { %v186_v1 = vmov 0.0   ;;  %vm187_vm0 = vmmov 0   ;;  %s242_s0 = inlined_call_operand.vmem [shape: bf16[2,64], index: 0, kind: input, shape index: {}]   ;;  %s243_s1 = inlined_call_operand.vmem [shape: bf16[64,10], index: 1, kind: input, shape index: {}]   ;;  %s244_s2 = inlined_call_operand.vmem [shape: f32[1,10], index: 2, kind: input, shape index: {}]   ;;  %s245_s3 = inlined_call_operand.hbm [shape: f32[2,10], index: 3, kind: output, shape index: {}]  }
   0x1   :  { %v154_v0 = vld [vmem:[%s243_s1] sm:$0xff]   ;;  %139 = vmatprep.subr.bf16.mxu0 %v186_v1  ;;  %v155_v2 = vld [vmem:[%s243_s1 + $0x8] sm:$0xff]   ;;  %147 = vmatprep.mubr.msk.bf16.mxu0 %vm187_vm0, %v186_v1 }
   0x2   :  { %140 = vmatpush3.bf16.msra.mxu0 %v154_v0 }
   0x3   :  { %141 = vmatprep.subr.bf16.mxu0 %v186_v1 }
   0x4   :  { %8 = vsyncpa [#allocation3], 0  ;;  %v156_v3 = vld [vmem:[%s243_s1 + $0x10] sm:$0xff]   ;;  %v157_v4 = vld [vmem:[%s243_s1 + $0x18] sm:$0xff]   ;;  %vm56_vm1 = vcmask 523264   ;;  %vm100_vm2 = vcmask 74752  }
   0x5   :  { %v16_v5 = vld [vmem:[%s242_s0] sm:$0x1]  ;;  %s188_s0 = smov [#allocation2]  }
   0x6   :  { %142 = vmatpush3.bf16.msra.mxu0 %v155_v2  ;;  %v128_v6 = vld [vmem:[%s244_s2] ss:$0 sm:$0xff]  ;;  %s120_s1 = sshll.u32 %s188_s0, 4  ;;  %s121_s1 = int_to_ptr.vmem [resolvable:$true] %s120_s1 }
   0x7   :  { %143 = vmatprep.subr.bf16.mxu0 %v186_v1  ;;  %s162_s2 = scalar_lea.vmem %s121_s1, 32  ;;  %p167_p1 = scmp.lt.s32.totalorder %s121_s1, %s121_s1 }
   0x8   :  { %p163_p0 = scmp.ne.s32.totalorder %s121_s1, %s162_s2  ;;  %p168_p2 = scmp.lt.s32.totalorder %s162_s2, %s162_s2 }
   0xa   :  { %144 = vmatpush3.bf16.msra.mxu0 %v156_v3  ;;  %p169_p3 = por %p168_p2, %p167_p1 }
   0xb   :  { %145 = vmatprep.subr.bf16.mxu0 %v186_v1 }
   0xc   :  { %p170_p4 = pnand %p169_p3, %p163_p0 }
   0xe   :  { %146 = vmatpush3.bf16.msra.mxu0 %v157_v4 }
  0x11   :  { %148 = vmatmul.mubr.msk.bf16.vlgmr.msra.gmra.mrb[0].mxu0 %vm56_vm1, %v16_v5 }
  0xe4   :  { %v94_v7 = vpop.f32.mrb[0].mxu0 }
  0xe5   :  { %v95_v8 = vadd.f32 %v128_v6, %v94_v7  ;;  %v149_v9 = vpop.f32.mrb[1].mxu0 }
  0xe6   :  { %v97_v10 = vpop.f32.mrb[2].mxu0 }
  0xe7   :  { %v150_v11 = vpop.f32.mrb[3].mxu0  ;;  %v101_v12 = vsel %vm100_vm2, %v95_v8, -inf }
  0xe8   :  { %102 = vmax.xlane.f32.xlu0 %v101_v12 }
 0x175   :  { %v103_v13 = vpop.xlane.xlu0 %102 }
 0x176   :  { %v104_v14 = vsub.f32 %v95_v8, %v103_v13 }
 0x178   :  { %v105_v15 = vmul.f32 1.442695, %v104_v14 }
 0x17a   :  { %158 = vpow2.f32 %v105_v15 }
 0x184   :  { %v159_v16 = vpop.eup %158 }
 0x185   :  { %v107_v17 = vsel %vm100_vm2, %v159_v16, 0.0 }
 0x186   :  { %108 = vadd.xlane.f32.xlu0 %v107_v17 }
 0x213   :  { %v109_v18 = vpop.xlane.xlu0 %108 }
 0x214   :  { %160 = vlog2.f32 %v109_v18 }
 0x21e   :  { %v161_v19 = vpop.eup %160 }
 0x21f   :  { %v111_v20 = vmul.f32 0.6931472, %v161_v19 }
 0x221   :  { %v112_v21 = vsub.f32 %v104_v14, %v111_v20 }
 0x223   :  { %113 = vst.msk [vmem:[#allocation2] sm:$0x3] %vm100_vm2, %v112_v21 }
 0x224   :  { %173 = shalt.err (!%p170_p4)
}
 0x225   :  { %s174_s26 = scalar_lea.hbm %s245_s3, 32 }
 0x226   :  { %p175_p5 = scmp.ne.s32.totalorder %s245_s3, %s174_s26  ;;  %p178_p6 = scmp.lt.u32.totalorder %s174_s26, %s245_s3 }
 0x228   :  { %p180_p7 = pnand %p178_p6, %p175_p5 }
 0x22a   :  { %183 = shalt.err (!%p180_p7)
}
 0x22b   :  { %123 = dma.vmem_to_hbm [thread:$0]  %s121_s1, 32, %s245_s3, [#allocation3]  }
 0x22c   :  { %184 = dma.done.wait [#allocation3], 32  }
 0x22d   :  { %185 = vsyncadd [#allocation3], 4294967264 }
 0x22e   :  { %127 = vsyncpa [#allocation3], 1 }

</bundles_post_ra>
